<compile_context>
chip_gen: v6e
topology: v6e:2x2x1
jax: 0.10.0
libtpu: 0.0.40
codegen_flags: <defaults>
</compile_context>

<pallas_src>
import jax
import jax.numpy as jnp
from jax.experimental import pallas as pl
from jax.experimental.pallas import tpu as pltpu

# ----- configuration of the MBConv block (stride=1, Cin==Cout -> residual active) -----
B = 2
H = W = 16
C_IN = 32
EXPAND = 4
C_EXP = C_IN * EXPAND            # 128
C_SQ = max(1, C_IN // 4)         # 8   (torchvision: squeeze_channels = max(1, in // 4))
C_OUT = C_IN                     # 32  (residual connection active)
EMBED = 64                       # FiLM embedding_dim
KH = KW = 3
BN_EPS = 1e-3

WP = 32                          # padded W extent of the depthwise scratch (multiple of 8)
COL0 = 8                         # sublane-aligned column where the image columns start
HSTRIP = 8                       # H strip height for the depthwise conv
assert H % HSTRIP == 0

# packed per-channel vector layout (rows of `vecc`, all C_EXP wide, f32):
#   rows 0..8 : depthwise 3x3 weights with BN2 scale folded in
#   row 9     : BN1 bias (after expand conv)
#   row 10    : BN2 bias (after depthwise conv)
#   row 11    : SE fc2 bias
#   row 12    : SE fc1 bias, zero-padded from C_SQ to C_EXP
N_VECC = KH * KW + 4
# packed output-width vectors (rows of `veco`, 2*C_OUT wide, f32):
#   row 0 : [FiLM add bias | FiLM mult bias]
#   row 1 : [BN3 bias | zeros]


def mbconv_film_kernel(x_ref, ctx_ref,
                       w_exp_ref, w_se1_ref, w_se2_ref, w_proj_ref, w_film_ref,
                       vecc_ref, veco_ref,
                       out_ref, hpad_ref, h2_ref):
    b = pl.program_id(0)

    # ---- unpack the small per-channel vectors ----
    vecc = vecc_ref[...]                                   # (13, C_EXP) f32
    w_dw = vecc[0:KH * KW]                                 # (9, C_EXP)  (BN2 scale folded)
    bn1_b = vecc[KH * KW:KH * KW + 1]                      # (1, C_EXP)
    bn2_b = vecc[KH * KW + 1:KH * KW + 2]                  # (1, C_EXP)
    b_se2 = vecc[KH * KW + 2:KH * KW + 3]                  # (1, C_EXP)
    b_se1 = vecc[KH * KW + 3:KH * KW + 4, :C_SQ]           # (1, C_SQ)

    veco = veco_ref[...]                                   # (2, 2*C_OUT) f32
    b_film = veco[0:1]                                     # (1, 2*C_OUT) = [b_add | b_mult]
    bn3_b = veco[1:2, :C_OUT]                              # (1, C_OUT)

    # ---- FiLM projection for this image: one tiny (1,EMBED)x(EMBED,2*C_OUT) matmul (f32) ----
    ctx = ctx_ref[pl.ds(b, 1), :]                          # (1, EMBED)
    film = jnp.dot(ctx, w_film_ref[...],
                   preferred_element_type=jnp.float32) + b_film
    film_add = film[:, :C_OUT]                             # (1, C_OUT)
    film_mult = film[:, C_OUT:]                            # (1, C_OUT)

    # ---- zero the scratch borders (interior is fully overwritten below; no masks needed) ----
    hpad_ref[pl.ds(0, 1), :, :] = jnp.zeros((1, WP, C_EXP), jnp.float32)
    hpad_ref[pl.ds(H + 1, 1), :, :] = jnp.zeros((1, WP, C_EXP), jnp.float32)
    hpad_ref[pl.ds(1, H), pl.ds(0, COL0), :] = jnp.zeros((H, COL0, C_EXP), jnp.float32)
    hpad_ref[pl.ds(1, H), pl.ds(COL0 + W, WP - COL0 - W), :] = (
        jnp.zeros((H, WP - COL0 - W, C_EXP), jnp.float32))

    # ---- expand 1x1 conv (bf16 MXU, f32 acc) + folded-BN bias + SiLU ----
    xv = x_ref[...].reshape(H * W, C_IN)                   # (256, 32) f32
    h = jnp.dot(xv.astype(jnp.bfloat16), w_exp_ref[...],
                preferred_element_type=jnp.float32) + bn1_b
    h = h * jax.nn.sigmoid(h)                              # SiLU, (256, 128)

    # stash into the padded scratch at a sublane-aligned column offset (aligned store)
    hpad_ref[pl.ds(1, H), pl.ds(COL0, W), :] = h.reshape(H, W, C_EXP)

    # ---- depthwise 3x3 conv (stride 1, pad 1), strip-mined over H ----
    # per strip: window per column-shift is 20 vregs, accumulator 16 vregs -> no spills;
    # H shifts are free leading-dim slices of the loaded window.
    for s in range(H // HSTRIP):                           # static loop (2 strips)
        r0 = s * HSTRIP
        acc = None
        for kj in range(KW):                               # 3 column shifts
            win = hpad_ref[pl.ds(r0, HSTRIP + 2), pl.ds(COL0 + kj - 1, W), :]  # (10, W, C_EXP)
            for ki in range(KH):
                k = ki * KW + kj
                t = win[ki:ki + HSTRIP] * w_dw[k:k + 1]
                acc = t if acc is None else acc + t
        hs = acc.reshape(HSTRIP * W, C_EXP) + bn2_b
        h2_ref[pl.ds(r0 * W, HSTRIP * W), :] = hs * jax.nn.sigmoid(hs)   # SiLU'd strip

    h2 = h2_ref[...]                                       # (256, 128)

    # ---- squeeze-and-excitation (tiny matmuls kept in f32) ----
    pooled = jnp.mean(h2, axis=0, keepdims=True)           # (1, C_EXP)
    se = jnp.dot(pooled, w_se1_ref[...],
                 preferred_element_type=jnp.float32) + b_se1
    se = se * jax.nn.sigmoid(se)                           # SiLU
    se = jnp.dot(se, w_se2_ref[...],
                 preferred_element_type=jnp.float32) + b_se2
    se = jax.nn.sigmoid(se)                                # (1, C_EXP)
    h2 = h2 * se

    # ---- project 1x1 conv (bf16 MXU, f32 acc) + folded-BN bias ----
    y = jnp.dot(h2.astype(jnp.bfloat16), w_proj_ref[...],
                preferred_element_type=jnp.float32) + bn3_b          # (256, C_OUT)

    # ---- residual (StochasticDepth == identity in eval) + FiLM ----
    y = y + x_ref[...].reshape(H * W, C_IN)
    y = (1.0 + film_mult) * y + film_add
    out_ref[...] = y.reshape(1, H, W, C_OUT)


def _full_spec(arr):
    n = arr.ndim
    return pl.BlockSpec(arr.shape, lambda b, _n=n: (0,) * _n)


def pack_params(params):
    """Fold BN scales into the conv weights, cast MXU weights to bf16, pack small vectors."""
    (w_exp, bn1_s, bn1_b, w_dw, bn2_s, bn2_b,
     w_se1, b_se1, w_se2, b_se2,
     w_proj, bn3_s, bn3_b,
     w_add, b_add, w_mult, b_mult) = params

    w_exp_p = (w_exp * bn1_s).astype(jnp.bfloat16)                     # (C_IN, C_EXP)
    w_dw_p = w_dw * bn2_s                                              # (9, C_EXP), f32
    w_proj_p = (w_proj * bn3_s).astype(jnp.bfloat16)                   # (C_EXP, C_OUT)
    w_se1_p = w_se1.astype(jnp.float32)                                # (C_EXP, C_SQ)
    w_se2_p = w_se2.astype(jnp.float32)                                # (C_SQ, C_EXP)
    w_film_p = jnp.concatenate([w_add, w_mult], axis=1).astype(jnp.float32)   # (EMBED, 2*C_OUT)

    b_se1_pad = jnp.zeros((1, C_EXP), jnp.float32).at[:, :C_SQ].set(b_se1)
    vecc = jnp.concatenate([w_dw_p, bn1_b, bn2_b, b_se2, b_se1_pad],
                           axis=0).astype(jnp.float32)                 # (13, C_EXP)

    b_film = jnp.concatenate([b_add, b_mult], axis=1)                  # (1, 2*C_OUT)
    bn3_pad = jnp.concatenate([bn3_b, jnp.zeros((1, C_OUT), jnp.float32)], axis=1)
    veco = jnp.concatenate([b_film, bn3_pad], axis=0).astype(jnp.float32)     # (2, 2*C_OUT)

    return (w_exp_p, w_se1_p, w_se2_p, w_proj_p, w_film_p, vecc, veco)


def _mbconv_film_nhwc(x_nhwc, context, params):
    """Transpose-free NHWC entry point (preferred in an NHWC end-to-end model)."""
    x = x_nhwc.astype(jnp.float32)
    context = context.astype(jnp.float32)
    w_exp, w_se1, w_se2, w_proj, w_film, vecc, veco = pack_params(params)

    in_specs = [
        pl.BlockSpec((1, H, W, C_IN), lambda b: (b, 0, 0, 0)),   # per-image activation block
        _full_spec(context),                                     # tiny; row-indexed in kernel
        _full_spec(w_exp), _full_spec(w_se1), _full_spec(w_se2),
        _full_spec(w_proj), _full_spec(w_film),
        _full_spec(vecc), _full_spec(veco),
    ]
    grid_spec = pltpu.PrefetchScalarGridSpec(
        num_scalar_prefetch=0,
        grid=(B,),                                               # batch on the grid
        in_specs=in_specs,
        out_specs=pl.BlockSpec((1, H, W, C_OUT), lambda b: (b, 0, 0, 0)),
        scratch_shapes=[
            pltpu.VMEM((H + 2, WP, C_EXP), jnp.float32),         # padded DW input scratch
            pltpu.VMEM((H * W, C_EXP), jnp.float32),             # DW output strips
        ],
    )
    return pl.pallas_call(
        mbconv_film_kernel,
        out_shape=jax.ShapeDtypeStruct((B, H, W, C_OUT), jnp.float32),
        grid_spec=grid_spec,
        compiler_params=pltpu.CompilerParams(
            dimension_semantics=("parallel",)),                  # batch can split across TCs (v7x)
    )(x, context, w_exp, w_se1, w_se2, w_proj, w_film, vecc, veco)


mbconv_film_nhwc = jax.jit(_mbconv_film_nhwc)


@jax.jit
def mbconv_film(x_nchw, context, params):
    # NCHW adapter matching the PyTorch module interface; in an NHWC end-to-end model call
    # mbconv_film_nhwc directly and these boundary transposes disappear.
    x = jnp.transpose(x_nchw, (0, 2, 3, 1))                      # NCHW -> NHWC
    y = _mbconv_film_nhwc(x, context, params)
    return jnp.transpose(y, (0, 3, 1, 2))                        # NHWC -> NCHW


# ---------------- deterministic parameter construction (synthetic) ----------------
def make_params(key):
    keys = iter(jax.random.split(key, 32))

    def nrm(shape, scale=0.1):
        return (scale * jax.random.normal(next(keys), shape)).astype(jnp.float32)

    def folded_bn(c):
        gamma = 1.0 + nrm((c,))
        beta = nrm((c,))
        mean = nrm((c,))
        var = jnp.abs(nrm((c,), 0.5)) + 1.0
        scale = gamma / jnp.sqrt(var + BN_EPS)
        bias = beta - mean * scale
        return scale.reshape(1, c), bias.reshape(1, c)

    # expand 1x1 conv: torch weight (C_EXP, C_IN, 1, 1) -> (C_IN, C_EXP)
    w_exp = jnp.transpose(nrm((C_EXP, C_IN, 1, 1))[:, :, 0, 0], (1, 0))
    bn1_s, bn1_b = folded_bn(C_EXP)

    # depthwise 3x3 conv: torch weight (C_EXP, 1, 3, 3) -> (9, C_EXP)
    w_dw = jnp.transpose(nrm((C_EXP, 1, KH, KW))[:, 0], (1, 2, 0)).reshape(KH * KW, C_EXP)
    bn2_s, bn2_b = folded_bn(C_EXP)

    # squeeze-excitation (1x1 convs with bias)
    w_se1 = jnp.transpose(nrm((C_SQ, C_EXP, 1, 1))[:, :, 0, 0], (1, 0))   # (C_EXP, C_SQ)
    b_se1 = nrm((C_SQ,)).reshape(1, C_SQ)
    w_se2 = jnp.transpose(nrm((C_EXP, C_SQ, 1, 1))[:, :, 0, 0], (1, 0))   # (C_SQ, C_EXP)
    b_se2 = nrm((C_EXP,)).reshape(1, C_EXP)

    # project 1x1 conv: (C_OUT, C_EXP, 1, 1) -> (C_EXP, C_OUT)
    w_proj = jnp.transpose(nrm((C_OUT, C_EXP, 1, 1))[:, :, 0, 0], (1, 0))
    bn3_s, bn3_b = folded_bn(C_OUT)

    # FiLM projections (nn.Linear weights (C_OUT, EMBED)); RT-1 zero-inits these —
    # random values used here so the FiLM path is numerically exercised.
    w_add = nrm((C_OUT, EMBED)).T
    b_add = nrm((C_OUT,)).reshape(1, C_OUT)
    w_mult = nrm((C_OUT, EMBED)).T
    b_mult = nrm((C_OUT,)).reshape(1, C_OUT)

    return (w_exp, bn1_s, bn1_b, w_dw, bn2_s, bn2_b,
            w_se1, b_se1, w_se2, b_se2,
            w_proj, bn3_s, bn3_b,
            w_add, b_add, w_mult, b_mult)


# ---------------- pure-JAX f32 reference for verification ----------------
def reference(x_nchw, context, params):
    (w_exp, bn1_s, bn1_b, w_dw, bn2_s, bn2_b,
     w_se1, b_se1, w_se2, b_se2,
     w_proj, bn3_s, bn3_b,
     w_add, b_add, w_mult, b_mult) = params
    x = jnp.transpose(x_nchw, (0, 2, 3, 1))
    h = jax.nn.silu(jnp.einsum('bhwi,io->bhwo', x, w_exp) * bn1_s[0] + bn1_b[0])
    hp = jnp.pad(h, ((0, 0), (1, 1), (1, 1), (0, 0)))
    acc = jnp.zeros_like(h)
    for ki in range(KH):
        for kj in range(KW):
            acc = acc + hp[:, ki:ki + H, kj:kj + W, :] * w_dw[ki * KW + kj]
    h = jax.nn.silu(acc * bn2_s[0] + bn2_b[0])
    pooled = h.mean(axis=(1, 2))
    s = jax.nn.silu(pooled @ w_se1 + b_se1[0])
    s = jax.nn.sigmoid(s @ w_se2 + b_se2[0])
    h = h * s[:, None, None, :]
    y = jnp.einsum('bhwe,eo->bhwo', h, w_proj) * bn3_s[0] + bn3_b[0]
    y = y + x
    add = context @ w_add + b_add[0]
    mult = context @ w_mult + b_mult[0]
    y = (1.0 + mult[:, None, None, :]) * y + add[:, None, None, :]
    return jnp.transpose(y, (0, 3, 1, 2))


if __name__ == "__main__":
    key = jax.random.PRNGKey(0)
    kx, kc, kp = jax.random.split(key, 3)
    x = jax.random.normal(kx, (B, C_IN, H, W), dtype=jnp.float32)    # NCHW, like PyTorch
    context = jax.random.normal(kc, (B, EMBED), dtype=jnp.float32)
    params = make_params(kp)

    out = mbconv_film(x, context, params)
    out = jax.block_until_ready(out)

    ref = reference(x, context, params)
    assert out.shape == (B, C_OUT, H, W)
    # expand/project matmuls use bf16 MXU inputs (f32 accumulate) -> tolerance relaxed vs f32 ref
    max_err = float(jnp.max(jnp.abs(out - ref)))
    assert bool(jnp.allclose(out, ref, atol=3e-2, rtol=3e-2)), f"mismatch vs reference (max |err|={max_err})"
    print("KERNEL_OK")
</pallas_src>

<mosaic_0001>
module attributes {stable_mosaic.version = 11 : i64} {
  func.func @mbconv_film_kernel(%arg0: i32, %arg1: memref<1x16x16x32xf32, #tpu.memory_space<vmem>>, %arg2: memref<2x64xf32, #tpu.memory_space<vmem>>, %arg3: memref<32x128xbf16, #tpu.memory_space<vmem>>, %arg4: memref<128x8xf32, #tpu.memory_space<vmem>>, %arg5: memref<8x128xf32, #tpu.memory_space<vmem>>, %arg6: memref<128x32xbf16, #tpu.memory_space<vmem>>, %arg7: memref<64x64xf32, #tpu.memory_space<vmem>>, %arg8: memref<13x128xf32, #tpu.memory_space<vmem>>, %arg9: memref<2x64xf32, #tpu.memory_space<vmem>>, %arg10: memref<1x16x16x32xf32, #tpu.memory_space<vmem>>, %arg11: memref<18x32x128xf32, #tpu.memory_space<vmem>>, %arg12: memref<256x128xf32, #tpu.memory_space<vmem>>) attributes {dimension_semantics = [#tpu.dimension_semantics<parallel>], iteration_bounds = array<i64: 2>, scalar_prefetch = 0 : i64, scratch_operands = 2 : i64, tpu.core_type = #tpu.core_type<tc>, window_params = [{transform_indices = @transform_0, window_bounds = array<i64: 1, 16, 16, 32>}, {pipeline_mode = #tpu.pipeline_mode<synchronous>, transform_indices = @transform_1, window_bounds = array<i64: 2, 64>}, {pipeline_mode = #tpu.pipeline_mode<synchronous>, transform_indices = @transform_2, window_bounds = array<i64: 32, 128>}, {pipeline_mode = #tpu.pipeline_mode<synchronous>, transform_indices = @transform_3, window_bounds = array<i64: 128, 8>}, {pipeline_mode = #tpu.pipeline_mode<synchronous>, transform_indices = @transform_4, window_bounds = array<i64: 8, 128>}, {pipeline_mode = #tpu.pipeline_mode<synchronous>, transform_indices = @transform_5, window_bounds = array<i64: 128, 32>}, {pipeline_mode = #tpu.pipeline_mode<synchronous>, transform_indices = @transform_6, window_bounds = array<i64: 64, 64>}, {pipeline_mode = #tpu.pipeline_mode<synchronous>, transform_indices = @transform_7, window_bounds = array<i64: 13, 128>}, {pipeline_mode = #tpu.pipeline_mode<synchronous>, transform_indices = @transform_8, window_bounds = array<i64: 2, 64>}, {transform_indices = @transform_9, window_bounds = array<i64: 1, 16, 16, 32>}]} {
    %c0 = arith.constant 0 : index
    %c0_0 = arith.constant 0 : index
    %0 = vector.load %arg8[%c0, %c0_0] : memref<13x128xf32, #tpu.memory_space<vmem>>, vector<13x128xf32>
    %1 = vector.extract_strided_slice %0 {offsets = [0, 0], sizes = [9, 128], strides = [1, 1]} : vector<13x128xf32> to vector<9x128xf32>
    %2 = vector.extract_strided_slice %0 {offsets = [9, 0], sizes = [1, 128], strides = [1, 1]} : vector<13x128xf32> to vector<1x128xf32>
    %3 = vector.extract_strided_slice %0 {offsets = [10, 0], sizes = [1, 128], strides = [1, 1]} : vector<13x128xf32> to vector<1x128xf32>
    %4 = vector.extract_strided_slice %0 {offsets = [11, 0], sizes = [1, 128], strides = [1, 1]} : vector<13x128xf32> to vector<1x128xf32>
    %5 = vector.extract_strided_slice %0 {offsets = [12, 0], sizes = [1, 8], strides = [1, 1]} : vector<13x128xf32> to vector<1x8xf32>
    %c0_1 = arith.constant 0 : index
    %c0_2 = arith.constant 0 : index
    %6 = vector.load %arg9[%c0_1, %c0_2] : memref<2x64xf32, #tpu.memory_space<vmem>>, vector<2x64xf32>
    %7 = vector.extract_strided_slice %6 {offsets = [0, 0], sizes = [1, 64], strides = [1, 1]} : vector<2x64xf32> to vector<1x64xf32>
    %8 = vector.extract_strided_slice %6 {offsets = [1, 0], sizes = [1, 32], strides = [1, 1]} : vector<2x64xf32> to vector<1x32xf32>
    %9 = arith.index_cast %arg0 : i32 to index
    %c0_3 = arith.constant 0 : index
    %10 = vector.load %arg2[%9, %c0_3] : memref<2x64xf32, #tpu.memory_space<vmem>>, vector<1x64xf32>
    %c0_4 = arith.constant 0 : index
    %c0_5 = arith.constant 0 : index
    %11 = vector.load %arg7[%c0_4, %c0_5] : memref<64x64xf32, #tpu.memory_space<vmem>>, vector<64x64xf32>
    %cst = arith.constant dense<0.000000e+00> : vector<1x64xf32>
    %12 = tpu.matmul %10, %11, %cst {dimension_numbers = #tpu.dot_dimension_numbers<[1], [0], [0], [1], [0, 0, 1, 1], [], []>} : vector<1x64xf32>, vector<64x64xf32>, vector<1x64xf32> -> vector<1x64xf32>
    %13 = arith.addf %12, %7 : vector<1x64xf32>
    %14 = vector.extract_strided_slice %13 {offsets = [0, 0], sizes = [1, 32], strides = [1, 1]} : vector<1x64xf32> to vector<1x32xf32>
    %15 = vector.extract_strided_slice %13 {offsets = [0, 32], sizes = [1, 32], strides = [1, 1]} : vector<1x64xf32> to vector<1x32xf32>
    %cst_6 = arith.constant 0.000000e+00 : f32
    %16 = vector.broadcast %cst_6 : f32 to vector<1x32x128xf32>
    %c0_7 = arith.constant 0 : index
    %c0_8 = arith.constant 0 : index
    %c0_9 = arith.constant 0 : index
    %17 = vector.load %arg11[%c0_7, %c0_8, %c0_9] : memref<18x32x128xf32, #tpu.memory_space<vmem>>, vector<1x32x128xf32>
    tpu.vector_store %arg11[%c0_7, %c0_8, %c0_9], %16 {strides = array<i32>} : memref<18x32x128xf32, #tpu.memory_space<vmem>>, vector<1x32x128xf32>,
    %cst_10 = arith.constant 0.000000e+00 : f32
    %18 = vector.broadcast %cst_10 : f32 to vector<1x32x128xf32>
    %c17 = arith.constant 17 : index
    %c0_11 = arith.constant 0 : index
    %c0_12 = arith.constant 0 : index
    %19 = vector.load %arg11[%c17, %c0_11, %c0_12] : memref<18x32x128xf32, #tpu.memory_space<vmem>>, vector<1x32x128xf32>
    tpu.vector_store %arg11[%c17, %c0_11, %c0_12], %18 {strides = array<i32>} : memref<18x32x128xf32, #tpu.memory_space<vmem>>, vector<1x32x128xf32>,
    %cst_13 = arith.constant 0.000000e+00 : f32
    %20 = vector.broadcast %cst_13 : f32 to vector<16x8x128xf32>
    %c1 = arith.constant 1 : index
    %c0_14 = arith.constant 0 : index
    %c0_15 = arith.constant 0 : index
    %21 = vector.load %arg11[%c1, %c0_14, %c0_15] : memref<18x32x128xf32, #tpu.memory_space<vmem>>, vector<16x8x128xf32>
    tpu.vector_store %arg11[%c1, %c0_14, %c0_15], %20 {strides = array<i32>} : memref<18x32x128xf32, #tpu.memory_space<vmem>>, vector<16x8x128xf32>,
    %cst_16 = arith.constant 0.000000e+00 : f32
    %22 = vector.broadcast %cst_16 : f32 to vector<16x8x128xf32>
    %c1_17 = arith.constant 1 : index
    %c24 = arith.constant 24 : index
    %c0_18 = arith.constant 0 : index
    %23 = vector.load %arg11[%c1_17, %c24, %c0_18] : memref<18x32x128xf32, #tpu.memory_space<vmem>>, vector<16x8x128xf32>
    tpu.vector_store %arg11[%c1_17, %c24, %c0_18], %22 {strides = array<i32>} : memref<18x32x128xf32, #tpu.memory_space<vmem>>, vector<16x8x128xf32>,
    %c0_19 = arith.constant 0 : index
    %c0_20 = arith.constant 0 : index
    %c0_21 = arith.constant 0 : index
    %c0_22 = arith.constant 0 : index
    %24 = vector.load %arg1[%c0_19, %c0_20, %c0_21, %c0_22] : memref<1x16x16x32xf32, #tpu.memory_space<vmem>>, vector<1x16x16x32xf32>
    %25 = vector.shape_cast %24 : vector<1x16x16x32xf32> to vector<256x32xf32>
    %26 = arith.truncf %25 : vector<256x32xf32> to vector<256x32xbf16>
    %c0_23 = arith.constant 0 : index
    %c0_24 = arith.constant 0 : index
    %27 = vector.load %arg3[%c0_23, %c0_24] : memref<32x128xbf16, #tpu.memory_space<vmem>>, vector<32x128xbf16>
    %cst_25 = arith.constant dense<0.000000e+00> : vector<256x128xf32>
    %28 = tpu.matmul %26, %27, %cst_25 {dimension_numbers = #tpu.dot_dimension_numbers<[1], [0], [0], [1], [0, 0, 1, 1], [], []>} : vector<256x32xbf16>, vector<32x128xbf16>, vector<256x128xf32> -> vector<256x128xf32>
    %29 = vector.broadcast %2 : vector<1x128xf32> to vector<256x128xf32>
    %30 = arith.addf %28, %29 : vector<256x128xf32>
    %31 = arith.negf %30 : vector<256x128xf32>
    %32 = math.exp %31 : vector<256x128xf32>
    %cst_26 = arith.constant 1.000000e+00 : f32
    %33 = vector.broadcast %cst_26 : f32 to vector<256x128xf32>
    %34 = arith.addf %33, %32 : vector<256x128xf32>
    %35 = arith.divf %33, %34 : vector<256x128xf32>
    %36 = arith.mulf %30, %35 : vector<256x128xf32>
    %37 = vector.shape_cast %36 : vector<256x128xf32> to vector<16x16x128xf32>
    %c1_27 = arith.constant 1 : index
    %c8 = arith.constant 8 : index
    %c0_28 = arith.constant 0 : index
    %38 = vector.load %arg11[%c1_27, %c8, %c0_28] : memref<18x32x128xf32, #tpu.memory_space<vmem>>, vector<16x16x128xf32>
    tpu.vector_store %arg11[%c1_27, %c8, %c0_28], %37 {strides = array<i32>} : memref<18x32x128xf32, #tpu.memory_space<vmem>>, vector<16x16x128xf32>,
    %c0_29 = arith.constant 0 : index
    %c7 = arith.constant 7 : index
    %c0_30 = arith.constant 0 : index
    %39 = vector.load %arg11[%c0_29, %c7, %c0_30] : memref<18x32x128xf32, #tpu.memory_space<vmem>>, vector<10x16x128xf32>
    %40 = vector.extract_strided_slice %39 {offsets = [0, 0, 0], sizes = [8, 16, 128], strides = [1, 1, 1]} : vector<10x16x128xf32> to vector<8x16x128xf32>
    %41 = vector.extract_strided_slice %1 {offsets = [0, 0], sizes = [1, 128], strides = [1, 1]} : vector<9x128xf32> to vector<1x128xf32>
    %42 = vector.shape_cast %41 : vector<1x128xf32> to vector<1x1x128xf32>
    %43 = vector.broadcast %42 : vector<1x1x128xf32> to vector<8x16x128xf32>
    %44 = arith.mulf %40, %43 : vector<8x16x128xf32>
    %45 = vector.extract_strided_slice %39 {offsets = [1, 0, 0], sizes = [8, 16, 128], strides = [1, 1, 1]} : vector<10x16x128xf32> to vector<8x16x128xf32>
    %46 = vector.extract_strided_slice %1 {offsets = [3, 0], sizes = [1, 128], strides = [1, 1]} : vector<9x128xf32> to vector<1x128xf32>
    %47 = vector.shape_cast %46 : vector<1x128xf32> to vector<1x1x128xf32>
    %48 = vector.broadcast %47 : vector<1x1x128xf32> to vector<8x16x128xf32>
    %49 = arith.mulf %45, %48 : vector<8x16x128xf32>
    %50 = arith.addf %44, %49 : vector<8x16x128xf32>
    %51 = vector.extract_strided_slice %39 {offsets = [2, 0, 0], sizes = [8, 16, 128], strides = [1, 1, 1]} : vector<10x16x128xf32> to vector<8x16x128xf32>
    %52 = vector.extract_strided_slice %1 {offsets = [6, 0], sizes = [1, 128], strides = [1, 1]} : vector<9x128xf32> to vector<1x128xf32>
    %53 = vector.shape_cast %52 : vector<1x128xf32> to vector<1x1x128xf32>
    %54 = vector.broadcast %53 : vector<1x1x128xf32> to vector<8x16x128xf32>
    %55 = arith.mulf %51, %54 : vector<8x16x128xf32>
    %56 = arith.addf %50, %55 : vector<8x16x128xf32>
    %c0_31 = arith.constant 0 : index
    %c8_32 = arith.constant 8 : index
    %c0_33 = arith.constant 0 : index
    %57 = vector.load %arg11[%c0_31, %c8_32, %c0_33] : memref<18x32x128xf32, #tpu.memory_space<vmem>>, vector<10x16x128xf32>
    %58 = vector.extract_strided_slice %57 {offsets = [0, 0, 0], sizes = [8, 16, 128], strides = [1, 1, 1]} : vector<10x16x128xf32> to vector<8x16x128xf32>
    %59 = vector.extract_strided_slice %1 {offsets = [1, 0], sizes = [1, 128], strides = [1, 1]} : vector<9x128xf32> to vector<1x128xf32>
    %60 = vector.shape_cast %59 : vector<1x128xf32> to vector<1x1x128xf32>
    %61 = vector.broadcast %60 : vector<1x1x128xf32> to vector<8x16x128xf32>
    %62 = arith.mulf %58, %61 : vector<8x16x128xf32>
    %63 = arith.addf %56, %62 : vector<8x16x128xf32>
    %64 = vector.extract_strided_slice %57 {offsets = [1, 0, 0], sizes = [8, 16, 128], strides = [1, 1, 1]} : vector<10x16x128xf32> to vector<8x16x128xf32>
    %65 = vector.extract_strided_slice %1 {offsets = [4, 0], sizes = [1, 128], strides = [1, 1]} : vector<9x128xf32> to vector<1x128xf32>
    %66 = vector.shape_cast %65 : vector<1x128xf32> to vector<1x1x128xf32>
    %67 = vector.broadcast %66 : vector<1x1x128xf32> to vector<8x16x128xf32>
    %68 = arith.mulf %64, %67 : vector<8x16x128xf32>
    %69 = arith.addf %63, %68 : vector<8x16x128xf32>
    %70 = vector.extract_strided_slice %57 {offsets = [2, 0, 0], sizes = [8, 16, 128], strides = [1, 1, 1]} : vector<10x16x128xf32> to vector<8x16x128xf32>
    %71 = vector.extract_strided_slice %1 {offsets = [7, 0], sizes = [1, 128], strides = [1, 1]} : vector<9x128xf32> to vector<1x128xf32>
    %72 = vector.shape_cast %71 : vector<1x128xf32> to vector<1x1x128xf32>
    %73 = vector.broadcast %72 : vector<1x1x128xf32> to vector<8x16x128xf32>
    %74 = arith.mulf %70, %73 : vector<8x16x128xf32>
    %75 = arith.addf %69, %74 : vector<8x16x128xf32>
    %c0_34 = arith.constant 0 : index
    %c9 = arith.constant 9 : index
    %c0_35 = arith.constant 0 : index
    %76 = vector.load %arg11[%c0_34, %c9, %c0_35] : memref<18x32x128xf32, #tpu.memory_space<vmem>>, vector<10x16x128xf32>
    %77 = vector.extract_strided_slice %76 {offsets = [0, 0, 0], sizes = [8, 16, 128], strides = [1, 1, 1]} : vector<10x16x128xf32> to vector<8x16x128xf32>
    %78 = vector.extract_strided_slice %1 {offsets = [2, 0], sizes = [1, 128], strides = [1, 1]} : vector<9x128xf32> to vector<1x128xf32>
    %79 = vector.shape_cast %78 : vector<1x128xf32> to vector<1x1x128xf32>
    %80 = vector.broadcast %79 : vector<1x1x128xf32> to vector<8x16x128xf32>
    %81 = arith.mulf %77, %80 : vector<8x16x128xf32>
    %82 = arith.addf %75, %81 : vector<8x16x128xf32>
    %83 = vector.extract_strided_slice %76 {offsets = [1, 0, 0], sizes = [8, 16, 128], strides = [1, 1, 1]} : vector<10x16x128xf32> to vector<8x16x128xf32>
    %84 = vector.extract_strided_slice %1 {offsets = [5, 0], sizes = [1, 128], strides = [1, 1]} : vector<9x128xf32> to vector<1x128xf32>
    %85 = vector.shape_cast %84 : vector<1x128xf32> to vector<1x1x128xf32>
    %86 = vector.broadcast %85 : vector<1x1x128xf32> to vector<8x16x128xf32>
    %87 = arith.mulf %83, %86 : vector<8x16x128xf32>
    %88 = arith.addf %82, %87 : vector<8x16x128xf32>
    %89 = vector.extract_strided_slice %76 {offsets = [2, 0, 0], sizes = [8, 16, 128], strides = [1, 1, 1]} : vector<10x16x128xf32> to vector<8x16x128xf32>
    %90 = vector.extract_strided_slice %1 {offsets = [8, 0], sizes = [1, 128], strides = [1, 1]} : vector<9x128xf32> to vector<1x128xf32>
    %91 = vector.shape_cast %90 : vector<1x128xf32> to vector<1x1x128xf32>
    %92 = vector.broadcast %91 : vector<1x1x128xf32> to vector<8x16x128xf32>
    %93 = arith.mulf %89, %92 : vector<8x16x128xf32>
    %94 = arith.addf %88, %93 : vector<8x16x128xf32>
    %95 = vector.shape_cast %94 : vector<8x16x128xf32> to vector<128x128xf32>
    %96 = vector.broadcast %3 : vector<1x128xf32> to vector<128x128xf32>
    %97 = arith.addf %95, %96 : vector<128x128xf32>
    %98 = arith.negf %97 : vector<128x128xf32>
    %99 = math.exp %98 : vector<128x128xf32>
    %cst_36 = arith.constant 1.000000e+00 : f32
    %100 = vector.broadcast %cst_36 : f32 to vector<128x128xf32>
    %101 = arith.addf %100, %99 : vector<128x128xf32>
    %102 = arith.divf %100, %101 : vector<128x128xf32>
    %103 = arith.mulf %97, %102 : vector<128x128xf32>
    %c0_37 = arith.constant 0 : index
    %c0_38 = arith.constant 0 : index
    %104 = vector.load %arg12[%c0_37, %c0_38] : memref<256x128xf32, #tpu.memory_space<vmem>>, vector<128x128xf32>
    tpu.vector_store %arg12[%c0_37, %c0_38], %103 {strides = array<i32>} : memref<256x128xf32, #tpu.memory_space<vmem>>, vector<128x128xf32>,
    %c8_39 = arith.constant 8 : index
    %c7_40 = arith.constant 7 : index
    %c0_41 = arith.constant 0 : index
    %105 = vector.load %arg11[%c8_39, %c7_40, %c0_41] : memref<18x32x128xf32, #tpu.memory_space<vmem>>, vector<10x16x128xf32>
    %106 = vector.extract_strided_slice %105 {offsets = [0, 0, 0], sizes = [8, 16, 128], strides = [1, 1, 1]} : vector<10x16x128xf32> to vector<8x16x128xf32>
    %107 = vector.extract_strided_slice %1 {offsets = [0, 0], sizes = [1, 128], strides = [1, 1]} : vector<9x128xf32> to vector<1x128xf32>
    %108 = vector.shape_cast %107 : vector<1x128xf32> to vector<1x1x128xf32>
    %109 = vector.broadcast %108 : vector<1x1x128xf32> to vector<8x16x128xf32>
    %110 = arith.mulf %106, %109 : vector<8x16x128xf32>
    %111 = vector.extract_strided_slice %105 {offsets = [1, 0, 0], sizes = [8, 16, 128], strides = [1, 1, 1]} : vector<10x16x128xf32> to vector<8x16x128xf32>
    %112 = vector.extract_strided_slice %1 {offsets = [3, 0], sizes = [1, 128], strides = [1, 1]} : vector<9x128xf32> to vector<1x128xf32>
    %113 = vector.shape_cast %112 : vector<1x128xf32> to vector<1x1x128xf32>
    %114 = vector.broadcast %113 : vector<1x1x128xf32> to vector<8x16x128xf32>
    %115 = arith.mulf %111, %114 : vector<8x16x128xf32>
    %116 = arith.addf %110, %115 : vector<8x16x128xf32>
    %117 = vector.extract_strided_slice %105 {offsets = [2, 0, 0], sizes = [8, 16, 128], strides = [1, 1, 1]} : vector<10x16x128xf32> to vector<8x16x128xf32>
    %118 = vector.extract_strided_slice %1 {offsets = [6, 0], sizes = [1, 128], strides = [1, 1]} : vector<9x128xf32> to vector<1x128xf32>
    %119 = vector.shape_cast %118 : vector<1x128xf32> to vector<1x1x128xf32>
    %120 = vector.broadcast %119 : vector<1x1x128xf32> to vector<8x16x128xf32>
    %121 = arith.mulf %117, %120 : vector<8x16x128xf32>
    %122 = arith.addf %116, %121 : vector<8x16x128xf32>
    %c8_42 = arith.constant 8 : index
    %c8_43 = arith.constant 8 : index
    %c0_44 = arith.constant 0 : index
    %123 = vector.load %arg11[%c8_42, %c8_43, %c0_44] : memref<18x32x128xf32, #tpu.memory_space<vmem>>, vector<10x16x128xf32>
    %124 = vector.extract_strided_slice %123 {offsets = [0, 0, 0], sizes = [8, 16, 128], strides = [1, 1, 1]} : vector<10x16x128xf32> to vector<8x16x128xf32>
    %125 = vector.extract_strided_slice %1 {offsets = [1, 0], sizes = [1, 128], strides = [1, 1]} : vector<9x128xf32> to vector<1x128xf32>
    %126 = vector.shape_cast %125 : vector<1x128xf32> to vector<1x1x128xf32>
    %127 = vector.broadcast %126 : vector<1x1x128xf32> to vector<8x16x128xf32>
    %128 = arith.mulf %124, %127 : vector<8x16x128xf32>
    %129 = arith.addf %122, %128 : vector<8x16x128xf32>
    %130 = vector.extract_strided_slice %123 {offsets = [1, 0, 0], sizes = [8, 16, 128], strides = [1, 1, 1]} : vector<10x16x128xf32> to vector<8x16x128xf32>
    %131 = vector.extract_strided_slice %1 {offsets = [4, 0], sizes = [1, 128], strides = [1, 1]} : vector<9x128xf32> to vector<1x128xf32>
    %132 = vector.shape_cast %131 : vector<1x128xf32> to vector<1x1x128xf32>
    %133 = vector.broadcast %132 : vector<1x1x128xf32> to vector<8x16x128xf32>
    %134 = arith.mulf %130, %133 : vector<8x16x128xf32>
    %135 = arith.addf %129, %134 : vector<8x16x128xf32>
    %136 = vector.extract_strided_slice %123 {offsets = [2, 0, 0], sizes = [8, 16, 128], strides = [1, 1, 1]} : vector<10x16x128xf32> to vector<8x16x128xf32>
    %137 = vector.extract_strided_slice %1 {offsets = [7, 0], sizes = [1, 128], strides = [1, 1]} : vector<9x128xf32> to vector<1x128xf32>
    %138 = vector.shape_cast %137 : vector<1x128xf32> to vector<1x1x128xf32>
    %139 = vector.broadcast %138 : vector<1x1x128xf32> to vector<8x16x128xf32>
    %140 = arith.mulf %136, %139 : vector<8x16x128xf32>
    %141 = arith.addf %135, %140 : vector<8x16x128xf32>
    %c8_45 = arith.constant 8 : index
    %c9_46 = arith.constant 9 : index
    %c0_47 = arith.constant 0 : index
    %142 = vector.load %arg11[%c8_45, %c9_46, %c0_47] : memref<18x32x128xf32, #tpu.memory_space<vmem>>, vector<10x16x128xf32>
    %143 = vector.extract_strided_slice %142 {offsets = [0, 0, 0], sizes = [8, 16, 128], strides = [1, 1, 1]} : vector<10x16x128xf32> to vector<8x16x128xf32>
    %144 = vector.extract_strided_slice %1 {offsets = [2, 0], sizes = [1, 128], strides = [1, 1]} : vector<9x128xf32> to vector<1x128xf32>
    %145 = vector.shape_cast %144 : vector<1x128xf32> to vector<1x1x128xf32>
    %146 = vector.broadcast %145 : vector<1x1x128xf32> to vector<8x16x128xf32>
    %147 = arith.mulf %143, %146 : vector<8x16x128xf32>
    %148 = arith.addf %141, %147 : vector<8x16x128xf32>
    %149 = vector.extract_strided_slice %142 {offsets = [1, 0, 0], sizes = [8, 16, 128], strides = [1, 1, 1]} : vector<10x16x128xf32> to vector<8x16x128xf32>
    %150 = vector.extract_strided_slice %1 {offsets = [5, 0], sizes = [1, 128], strides = [1, 1]} : vector<9x128xf32> to vector<1x128xf32>
    %151 = vector.shape_cast %150 : vector<1x128xf32> to vector<1x1x128xf32>
    %152 = vector.broadcast %151 : vector<1x1x128xf32> to vector<8x16x128xf32>
    %153 = arith.mulf %149, %152 : vector<8x16x128xf32>
    %154 = arith.addf %148, %153 : vector<8x16x128xf32>
    %155 = vector.extract_strided_slice %142 {offsets = [2, 0, 0], sizes = [8, 16, 128], strides = [1, 1, 1]} : vector<10x16x128xf32> to vector<8x16x128xf32>
    %156 = vector.extract_strided_slice %1 {offsets = [8, 0], sizes = [1, 128], strides = [1, 1]} : vector<9x128xf32> to vector<1x128xf32>
    %157 = vector.shape_cast %156 : vector<1x128xf32> to vector<1x1x128xf32>
    %158 = vector.broadcast %157 : vector<1x1x128xf32> to vector<8x16x128xf32>
    %159 = arith.mulf %155, %158 : vector<8x16x128xf32>
    %160 = arith.addf %154, %159 : vector<8x16x128xf32>
    %161 = vector.shape_cast %160 : vector<8x16x128xf32> to vector<128x128xf32>
    %162 = vector.broadcast %3 : vector<1x128xf32> to vector<128x128xf32>
    %163 = arith.addf %161, %162 : vector<128x128xf32>
    %164 = arith.negf %163 : vector<128x128xf32>
    %165 = math.exp %164 : vector<128x128xf32>
    %cst_48 = arith.constant 1.000000e+00 : f32
    %166 = vector.broadcast %cst_48 : f32 to vector<128x128xf32>
    %167 = arith.addf %166, %165 : vector<128x128xf32>
    %168 = arith.divf %166, %167 : vector<128x128xf32>
    %169 = arith.mulf %163, %168 : vector<128x128xf32>
    %c128 = arith.constant 128 : index
    %c0_49 = arith.constant 0 : index
    %170 = vector.load %arg12[%c128, %c0_49] : memref<256x128xf32, #tpu.memory_space<vmem>>, vector<128x128xf32>
    tpu.vector_store %arg12[%c128, %c0_49], %169 {strides = array<i32>} : memref<256x128xf32, #tpu.memory_space<vmem>>, vector<128x128xf32>,
    %c0_50 = arith.constant 0 : index
    %c0_51 = arith.constant 0 : index
    %171 = vector.load %arg12[%c0_50, %c0_51] : memref<256x128xf32, #tpu.memory_space<vmem>>, vector<256x128xf32>
    %cst_52 = arith.constant dense<0.000000e+00> : vector<128xf32>
    %172 = vector.multi_reduction <add>, %171, %cst_52 [0] : vector<256x128xf32> to vector<128xf32>
    %173 = vector.shape_cast %172 : vector<128xf32> to vector<1x128xf32>
    %cst_53 = arith.constant 2.560000e+02 : f32
    %174 = vector.broadcast %cst_53 : f32 to vector<1x128xf32>
    %175 = arith.divf %173, %174 : vector<1x128xf32>
    %c0_54 = arith.constant 0 : index
    %c0_55 = arith.constant 0 : index
    %176 = vector.load %arg4[%c0_54, %c0_55] : memref<128x8xf32, #tpu.memory_space<vmem>>, vector<128x8xf32>
    %cst_56 = arith.constant dense<0.000000e+00> : vector<1x8xf32>
    %177 = tpu.matmul %175, %176, %cst_56 {dimension_numbers = #tpu.dot_dimension_numbers<[1], [0], [0], [1], [0, 0, 1, 1], [], []>} : vector<1x128xf32>, vector<128x8xf32>, vector<1x8xf32> -> vector<1x8xf32>
    %178 = arith.addf %177, %5 : vector<1x8xf32>
    %179 = arith.negf %178 : vector<1x8xf32>
    %180 = math.exp %179 : vector<1x8xf32>
    %cst_57 = arith.constant 1.000000e+00 : f32
    %181 = vector.broadcast %cst_57 : f32 to vector<1x8xf32>
    %182 = arith.addf %181, %180 : vector<1x8xf32>
    %183 = arith.divf %181, %182 : vector<1x8xf32>
    %184 = arith.mulf %178, %183 : vector<1x8xf32>
    %c0_58 = arith.constant 0 : index
    %c0_59 = arith.constant 0 : index
    %185 = vector.load %arg5[%c0_58, %c0_59] : memref<8x128xf32, #tpu.memory_space<vmem>>, vector<8x128xf32>
    %cst_60 = arith.constant dense<0.000000e+00> : vector<1x128xf32>
    %186 = tpu.matmul %184, %185, %cst_60 {dimension_numbers = #tpu.dot_dimension_numbers<[1], [0], [0], [1], [0, 0, 1, 1], [], []>} : vector<1x8xf32>, vector<8x128xf32>, vector<1x128xf32> -> vector<1x128xf32>
    %187 = arith.addf %186, %4 : vector<1x128xf32>
    %188 = arith.negf %187 : vector<1x128xf32>
    %189 = math.exp %188 : vector<1x128xf32>
    %cst_61 = arith.constant 1.000000e+00 : f32
    %190 = vector.broadcast %cst_61 : f32 to vector<1x128xf32>
    %191 = arith.addf %190, %189 : vector<1x128xf32>
    %192 = arith.divf %190, %191 : vector<1x128xf32>
    %193 = vector.broadcast %192 : vector<1x128xf32> to vector<256x128xf32>
    %194 = arith.mulf %171, %193 : vector<256x128xf32>
    %195 = arith.truncf %194 : vector<256x128xf32> to vector<256x128xbf16>
    %c0_62 = arith.constant 0 : index
    %c0_63 = arith.constant 0 : index
    %196 = vector.load %arg6[%c0_62, %c0_63] : memref<128x32xbf16, #tpu.memory_space<vmem>>, vector<128x32xbf16>
    %cst_64 = arith.constant dense<0.000000e+00> : vector<256x32xf32>
    %197 = tpu.matmul %195, %196, %cst_64 {dimension_numbers = #tpu.dot_dimension_numbers<[1], [0], [0], [1], [0, 0, 1, 1], [], []>} : vector<256x128xbf16>, vector<128x32xbf16>, vector<256x32xf32> -> vector<256x32xf32>
    %198 = vector.broadcast %8 : vector<1x32xf32> to vector<256x32xf32>
    %199 = arith.addf %197, %198 : vector<256x32xf32>
    %c0_65 = arith.constant 0 : index
    %c0_66 = arith.constant 0 : index
    %c0_67 = arith.constant 0 : index
    %c0_68 = arith.constant 0 : index
    %200 = vector.load %arg1[%c0_65, %c0_66, %c0_67, %c0_68] : memref<1x16x16x32xf32, #tpu.memory_space<vmem>>, vector<1x16x16x32xf32>
    %201 = vector.shape_cast %200 : vector<1x16x16x32xf32> to vector<256x32xf32>
    %202 = arith.addf %199, %201 : vector<256x32xf32>
    %cst_69 = arith.constant 1.000000e+00 : f32
    %203 = vector.broadcast %cst_69 : f32 to vector<1x32xf32>
    %204 = arith.addf %203, %15 : vector<1x32xf32>
    %205 = vector.broadcast %204 : vector<1x32xf32> to vector<256x32xf32>
    %206 = arith.mulf %205, %202 : vector<256x32xf32>
    %207 = vector.broadcast %14 : vector<1x32xf32> to vector<256x32xf32>
    %208 = arith.addf %206, %207 : vector<256x32xf32>
    %209 = vector.shape_cast %208 : vector<256x32xf32> to vector<1x16x16x32xf32>
    %c0_70 = arith.constant 0 : index
    %c0_71 = arith.constant 0 : index
    %c0_72 = arith.constant 0 : index
    %c0_73 = arith.constant 0 : index
    %210 = vector.load %arg10[%c0_70, %c0_71, %c0_72, %c0_73] : memref<1x16x16x32xf32, #tpu.memory_space<vmem>>, vector<1x16x16x32xf32>
    tpu.vector_store %arg10[%c0_70, %c0_71, %c0_72, %c0_73], %209 {strides = array<i32>} : memref<1x16x16x32xf32, #tpu.memory_space<vmem>>, vector<1x16x16x32xf32>,
    return
  }
  func.func @transform_0(%arg0: i32) -> (i32, i32, i32, i32) {
    %c0_i32 = arith.constant 0 : i32
    %c0_i32_0 = arith.constant 0 : i32
    %c0_i32_1 = arith.constant 0 : i32
    %c0_i32_2 = arith.constant 0 : i32
    return %arg0, %c0_i32, %c0_i32_0, %c0_i32_1 : i32, i32, i32, i32
  }
  func.func @transform_1(%arg0: i32) -> (i32, i32) {
    %c0_i32 = arith.constant 0 : i32
    %c0_i32_0 = arith.constant 0 : i32
    %c0_i32_1 = arith.constant 0 : i32
    return %c0_i32, %c0_i32_0 : i32, i32
  }
  func.func @transform_2(%arg0: i32) -> (i32, i32) {
    %c0_i32 = arith.constant 0 : i32
    %c0_i32_0 = arith.constant 0 : i32
    %c0_i32_1 = arith.constant 0 : i32
    return %c0_i32, %c0_i32_0 : i32, i32
  }
  func.func @transform_3(%arg0: i32) -> (i32, i32) {
    %c0_i32 = arith.constant 0 : i32
    %c0_i32_0 = arith.constant 0 : i32
    %c0_i32_1 = arith.constant 0 : i32
    return %c0_i32, %c0_i32_0 : i32, i32
  }
  func.func @transform_4(%arg0: i32) -> (i32, i32) {
    %c0_i32 = arith.constant 0 : i32
    %c0_i32_0 = arith.constant 0 : i32
    %c0_i32_1 = arith.constant 0 : i32
    return %c0_i32, %c0_i32_0 : i32, i32
  }
  func.func @transform_5(%arg0: i32) -> (i32, i32) {
    %c0_i32 = arith.constant 0 : i32
    %c0_i32_0 = arith.constant 0 : i32
    %c0_i32_1 = arith.constant 0 : i32
    return %c0_i32, %c0_i32_0 : i32, i32
  }
  func.func @transform_6(%arg0: i32) -> (i32, i32) {
    %c0_i32 = arith.constant 0 : i32
    %c0_i32_0 = arith.constant 0 : i32
    %c0_i32_1 = arith.constant 0 : i32
    return %c0_i32, %c0_i32_0 : i32, i32
  }
  func.func @transform_7(%arg0: i32) -> (i32, i32) {
    %c0_i32 = arith.constant 0 : i32
    %c0_i32_0 = arith.constant 0 : i32
    %c0_i32_1 = arith.constant 0 : i32
    return %c0_i32, %c0_i32_0 : i32, i32
  }
  func.func @transform_8(%arg0: i32) -> (i32, i32) {
    %c0_i32 = arith.constant 0 : i32
    %c0_i32_0 = arith.constant 0 : i32
    %c0_i32_1 = arith.constant 0 : i32
    return %c0_i32, %c0_i32_0 : i32, i32
  }
  func.func @transform_9(%arg0: i32) -> (i32, i32, i32, i32) {
    %c0_i32 = arith.constant 0 : i32
    %c0_i32_0 = arith.constant 0 : i32
    %c0_i32_1 = arith.constant 0 : i32
    %c0_i32_2 = arith.constant 0 : i32
    return %arg0, %c0_i32, %c0_i32_0, %c0_i32_1 : i32, i32, i32, i32
  }
}

</mosaic_0001>

<bundles_post_ra>
// kernel: mbconv_film.1
= control target key start
LH: loop header
LB: loop body
LE: loop exit
PB: predicated region body
PF: predicated region fallthrough
CT: control target
= control target key end

     0   :  { %14 = vsyncpa [#allocation5], 0  ;;  %s5813_s0 = inlined_call_operand.vmem [shape: f32[2,16,16,32], index: 0, kind: input, shape index: {}]   ;;  %s5814_s1 = inlined_call_operand.vmem [shape: f32[2,64], index: 1, kind: input, shape index: {}]   ;;  %s5815_s2 = inlined_call_operand.vmem [shape: bf16[32,128], index: 2, kind: input, shape index: {}]   ;;  %s5816_s3 = inlined_call_operand.vmem [shape: f32[128,8], index: 3, kind: input, shape index: {}]   ;;  %s5817_s4 = inlined_call_operand.vmem [shape: f32[8,128], index: 4, kind: input, shape index: {}]   ;;  %s5818_s5 = inlined_call_operand.vmem [shape: bf16[128,32], index: 5, kind: input, shape index: {}]   ;;  %s5819_s6 = inlined_call_operand.vmem [shape: f32[64,64], index: 6, kind: input, shape index: {}]   ;;  %s5820_s7 = inlined_call_operand.vmem [shape: f32[13,128], index: 7, kind: input, shape index: {}]   ;;  %s5821_s8 = inlined_call_operand.vmem [shape: f32[2,64], index: 8, kind: input, shape index: {}]   ;;  %s5822_s9 = inlined_call_operand.hbm [shape: f32[2,16,16,32], index: 9, kind: output, shape index: {}]  }
   0x1   :  { %16 = vsyncpa [#allocation5 + $0x1], 0  ;;  %s3788_s30 = smov 0   ;;  %s3790_s10 = smov 0  }
   0x2   :  { %s3792_s11 = smov 0   ;;  %s3794_s12 = smov 0  }
   0x3 LB: > { %s3809_s13 = sadd.s32 4294967295, %s3729_s12   ;;  %s3025_s14 = sadd.s32 4294967294, %s3729_s12   ;;  %s3729_s12 = sphi %s3794_s12, %s6028_s12   ;;  %s3725_s11 = sphi %s3792_s11, %s6027_s11   ;;  %s3721_s10 = sphi %s3790_s10, %s6026_s10   ;;  %s3717_s30 = sphi %s3788_s30, %s6025_s30  }
   0x4   : > { %s3813_s15 = sadd.s32 1, %s3729_s12   ;;  %s223_s16 = sadd.s32 1, %s3725_s11 }
   0x5   : > { %s220_s17 = ssub.s32 %s3729_s12, %s3813_s15  ;;  %p233_p0 = scmp.ne.s32.totalorder %s3725_s11, %s3721_s10 }
   0x6   : > { %p221_p1 = scmp.eq.s32.totalorder %s220_s17, 0  ;;  %p234_p2 = scmp.eq.s32.totalorder %s3809_s13, 1 }
   0x7   : > { %p239_p3 = scmp.ne.s32.totalorder %s3721_s10, %s3717_s30  ;;  %p240_p4 = scmp.eq.s32.totalorder %s3025_s14, 1 }
   0x8   : > { %s3824_s18 = scalar_select %p221_p1, %s3725_s11, %s223_s16  }
   0x9   : > { %p3826_p5 = por %p234_p2, %p233_p0  ;;  %p3830_p6 = por %p240_p4, %p239_p3 }
   0xa   : > { %p3028_p7 = scmp.ge.s32.totalorder %s3729_s12, 1  ;;  %p290_p8 = scmp.lt.s32.totalorder %s3729_s12, 3 }
   0xc   : > { %p291_p9 = pnand %p3028_p7, %p290_p8 }
   0xe   : > { %294 = sbr.rel (%p291_p9) target bundleno = 1533 (0x5fd), region = 56 }
  0x13   : > { %v344_v0 = vld [vmem:[%s5819_s6 + $0x38] sm:$0xff]  ;;  %v3731_v1 = vmov 0.0   ;;  %v343_v2 = vld [vmem:[%s5819_s6 + $0x30] sm:$0xff]  ;;  %vm3732_vm0 = vmmov 0   ;;  %p326_p10 = scmp.lt.s32.totalorder %s3809_s13, 1  ;;  %v342_v3 = vld [vmem:[%s5819_s6 + $0x28] sm:$0xff]  ;;  %v513_v60 = vlaneseq }
  0x14   : > { %3203 = vmatprep.subr.mxu0 %v3731_v1  ;;  %419 = vst [vmem:[#allocation2] sm:$0xff] %v3731_v1  ;;  %420 = vst [vmem:[#allocation2 + $0x8] sm:$0xff] %v3731_v1  ;;  %3219 = vmatprep.mubr.msk.f32.mxu0 %vm3732_vm0, %v3731_v1  ;;  %v341_v4 = vld [vmem:[%s5819_s6 + $0x20] sm:$0xff]  ;;  %v340_v5 = vld [vmem:[%s5819_s6 + $0x18] sm:$0xff]  ;;  %vm345_vm1 = vcmask 523264   ;;  %vm529_vm2 = vcmask 261120  }
  0x15   : > { %421 = vst [vmem:[#allocation2 + $0x10] sm:$0xff] %v3731_v1  ;;  %422 = vst [vmem:[#allocation2 + $0x18] sm:$0xff] %v3731_v1  ;;  %3204 = vmatpush3.msra.mxu0 %v344_v0  ;;  %s327_s27 = scalar_select %p326_p10, %s3809_s13, 1  ;;  %v339_v6 = vld [vmem:[%s5819_s6 + $0x10] sm:$0xff]  ;;  %v338_v7 = vld [vmem:[%s5819_s6 + $0x8] sm:$0xff]  ;;  %v3978_v61 = vshrl.u32 %v513_v60, 7 }
  0x16   : > { %424 = vst [vmem:[#allocation2 + $0x220] sm:$0xff] %v3731_v1  ;;  %425 = vst [vmem:[#allocation2 + $0x228] sm:$0xff] %v3731_v1  ;;  %3205 = vmatprep.subr.mxu0 %v3731_v1  ;;  %v337_v10 = vld [vmem:[%s5819_s6] sm:$0xff]  ;;  %v3391_v11 = vld [vmem:[%s5815_s2 + $0x8] sm:$0xff]   ;;  %vm2158_vm3 = vcmask 64512   ;;  %s3132_s28 = sshll.u32 %s3809_s13, 12 }
  0x17   : > { %426 = vst [vmem:[#allocation2 + $0x230] sm:$0xff] %v3731_v1  ;;  %427 = vst [vmem:[#allocation2 + $0x238] sm:$0xff] %v3731_v1  ;;  %3206 = vmatpush3.msra.mxu0 %v343_v2  ;;  %s3131_s14 = sshll.u32 %s327_s27, 8  ;;  %v3392_v14 = vld [vmem:[%s5815_s2] sm:$0xff]   ;;  %v3984_v63 = vsub.s32 0, %v3978_v61  ;;  %s5763_s21 = scalar_lea.hbm %s5822_s9, %s3132_s28 }
  0x18   : > { %429 = vst [vmem:[#allocation2 + $0x20] sm:$0xff] %v3731_v1  ;;  %430 = vst [vmem:[#allocation2 + $0x40] sm:$0xff] %v3731_v1  ;;  %3207 = vmatprep.subr.mxu0 %v3731_v1  ;;  %s3902_s23 = scalar_lea.vmem %s5813_s0, %s3131_s14  ;;  %s335_s14 = scalar_lea.vmem %s5814_s1, %s3809_s13  ;;  %v334_v62 = vld [vmem:[%s5821_s8] sm:$0x3] }
  0x19   : > { %431 = vst [vmem:[#allocation2 + $0x60] sm:$0xff] %v3731_v1  ;;  %432 = vst [vmem:[#allocation2 + $0x80] sm:$0xff] %v3731_v1  ;;  %3208 = vmatpush3.msra.mxu0 %v342_v3  ;;  %v461_v8 = vld [vmem:[%s3902_s23] sm:$0xff]  ;;  %v462_v9 = vld [vmem:[%s3902_s23 + $0x8] sm:$0xff]  ;;  %v3989_v3 = vsub.s32 1, %v3978_v61  ;;  %s3735_s24 = smov [#allocation4]  }
  0x1a   : > { %433 = vst [vmem:[#allocation2 + $0xa0] sm:$0xff] %v3731_v1  ;;  %434 = vst [vmem:[#allocation2 + $0xc0] sm:$0xff] %v3731_v1  ;;  %3209 = vmatprep.subr.mxu0 %v3731_v1  ;;  %v336_v12 = vld [vmem:[%s335_s14] sm:$0x1]  ;;  %v493_v13 = vpack.c.bf16 %v462_v9, %v461_v8  ;;  %v463_v15 = vld [vmem:[%s3902_s23 + $0x10] sm:$0xff]  ;;  %s3733_s14 = smov 32  }
  0x1b   : > { %435 = vst [vmem:[#allocation2 + $0xe0] sm:$0xff] %v3731_v1  ;;  %436 = vst [vmem:[#allocation2 + $0x100] sm:$0xff] %v3731_v1  ;;  %3210 = vmatpush3.msra.mxu0 %v341_v4  ;;  %v464_v16 = vld [vmem:[%s3902_s23 + $0x18] sm:$0xff]  ;;  %v465_v17 = vld [vmem:[%s3902_s23 + $0x20] sm:$0xff]  ;;  %s3673_s25 = sshll.u32 %s3735_s24, 4  ;;  %s3674_s25 = int_to_ptr.vmem [resolvable:$false] %s3673_s25 }
  0x1c   : > { %437 = vst [vmem:[#allocation2 + $0x120] sm:$0xff] %v3731_v1  ;;  %438 = vst [vmem:[#allocation2 + $0x140] sm:$0xff] %v3731_v1  ;;  %3211 = vmatprep.subr.mxu0 %v3731_v1  ;;  %v466_v18 = vld [vmem:[%s3902_s23 + $0x28] sm:$0xff]  ;;  %v494_v19 = vpack.c.bf16 %v464_v16, %v463_v15  ;;  %v467_v21 = vld [vmem:[%s3902_s23 + $0x30] sm:$0xff] }
  0x1d   : > { %439 = vst [vmem:[#allocation2 + $0x160] sm:$0xff] %v3731_v1  ;;  %440 = vst [vmem:[#allocation2 + $0x180] sm:$0xff] %v3731_v1  ;;  %3212 = vmatpush3.msra.mxu0 %v340_v5  ;;  %v495_v20 = vpack.c.bf16 %v466_v18, %v465_v17  ;;  %v468_v22 = vld [vmem:[%s3902_s23 + $0x38] sm:$0xff]  ;;  %v469_v23 = vld [vmem:[%s3902_s23 + $0x40] sm:$0xff] }
  0x1e   : > { %441 = vst [vmem:[#allocation2 + $0x1a0] sm:$0xff] %v3731_v1  ;;  %442 = vst [vmem:[#allocation2 + $0x1c0] sm:$0xff] %v3731_v1  ;;  %3213 = vmatprep.subr.mxu0 %v3731_v1  ;;  %v470_v24 = vld [vmem:[%s3902_s23 + $0x48] sm:$0xff]  ;;  %v496_v25 = vpack.c.bf16 %v468_v22, %v467_v21  ;;  %v471_v27 = vld [vmem:[%s3902_s23 + $0x50] sm:$0xff] }
  0x1f   : > { %443 = vst [vmem:[#allocation2 + $0x1e0] sm:$0xff] %v3731_v1  ;;  %444 = vst [vmem:[#allocation2 + $0x200] sm:$0xff] %v3731_v1  ;;  %3214 = vmatpush3.msra.mxu0 %v339_v6  ;;  %v497_v26 = vpack.c.bf16 %v470_v24, %v469_v23  ;;  %v472_v28 = vld [vmem:[%s3902_s23 + $0x58] sm:$0xff]  ;;  %v473_v29 = vld [vmem:[%s3902_s23 + $0x60] sm:$0xff] }
  0x20   : > { %445 = vst [vmem:[#allocation2 + $0x38] sm:$0xff] %v3731_v1  ;;  %446 = vst [vmem:[#allocation2 + $0x58] sm:$0xff] %v3731_v1  ;;  %3215 = vmatprep.subr.mxu0 %v3731_v1  ;;  %v474_v30 = vld [vmem:[%s3902_s23 + $0x68] sm:$0xff]  ;;  %v498_v31 = vpack.c.bf16 %v472_v28, %v471_v27  ;;  %v475_v33 = vld [vmem:[%s3902_s23 + $0x70] sm:$0xff] }
  0x21   : > { %447 = vst [vmem:[#allocation2 + $0x78] sm:$0xff] %v3731_v1  ;;  %448 = vst [vmem:[#allocation2 + $0x98] sm:$0xff] %v3731_v1  ;;  %3216 = vmatpush3.msra.mxu0 %v338_v7  ;;  %v499_v32 = vpack.c.bf16 %v474_v30, %v473_v29  ;;  %v476_v34 = vld [vmem:[%s3902_s23 + $0x78] sm:$0xff]  ;;  %v477_v35 = vld [vmem:[%s3902_s23 + $0x80] sm:$0xff] }
  0x22   : > { %449 = vst [vmem:[#allocation2 + $0xb8] sm:$0xff] %v3731_v1  ;;  %450 = vst [vmem:[#allocation2 + $0xd8] sm:$0xff] %v3731_v1  ;;  %3217 = vmatprep.subr.mxu0 %v3731_v1  ;;  %v478_v36 = vld [vmem:[%s3902_s23 + $0x88] sm:$0xff]  ;;  %v500_v37 = vpack.c.bf16 %v476_v34, %v475_v33  ;;  %v479_v39 = vld [vmem:[%s3902_s23 + $0x90] sm:$0xff] }
  0x23   : > { %451 = vst [vmem:[#allocation2 + $0xf8] sm:$0xff] %v3731_v1  ;;  %452 = vst [vmem:[#allocation2 + $0x118] sm:$0xff] %v3731_v1  ;;  %3218 = vmatpush3.msra.mxu0 %v337_v10  ;;  %v501_v38 = vpack.c.bf16 %v478_v36, %v477_v35  ;;  %v480_v40 = vld [vmem:[%s3902_s23 + $0x98] sm:$0xff]  ;;  %v481_v41 = vld [vmem:[%s3902_s23 + $0xa0] sm:$0xff] }
  0x24   : > { %453 = vst [vmem:[#allocation2 + $0x138] sm:$0xff] %v3731_v1  ;;  %454 = vst [vmem:[#allocation2 + $0x158] sm:$0xff] %v3731_v1  ;;  %3220 = vmatmul.mubr.msk.f32.vlgmr.msra.gmra.mxu0 %vm345_vm1, %v336_v12  ;;  %3222 = vmatprep.subr.bf16.mxu0 %v3391_v11  ;;  %v482_v42 = vld [vmem:[%s3902_s23 + $0xa8] sm:$0xff]  ;;  %v502_v43 = vpack.c.bf16 %v480_v40, %v479_v39  ;;  %v483_v45 = vld [vmem:[%s3902_s23 + $0xb0] sm:$0xff] }
  0x25   : > { %455 = vst [vmem:[#allocation2 + $0x178] sm:$0xff] %v3731_v1  ;;  %456 = vst [vmem:[#allocation2 + $0x198] sm:$0xff] %v3731_v1  ;;  %3223 = vmatpush3.bf16.msra.mxu0 %v3391_v11  ;;  %3226 = vmatprep.mubr.msk.bf16.mxu0 %vm529_vm2, %v493_v13  ;;  %v503_v44 = vpack.c.bf16 %v482_v42, %v481_v41  ;;  %v484_v46 = vld [vmem:[%s3902_s23 + $0xb8] sm:$0xff]  ;;  %v485_v47 = vld [vmem:[%s3902_s23 + $0xc0] sm:$0xff] }
  0x26   : > { %457 = vst [vmem:[#allocation2 + $0x1b8] sm:$0xff] %v3731_v1  ;;  %458 = vst [vmem:[#allocation2 + $0x1d8] sm:$0xff] %v3731_v1  ;;  %3224 = vmatprep.subr.bf16.mxu0 %v3392_v14  ;;  %v486_v48 = vld [vmem:[%s3902_s23 + $0xc8] sm:$0xff]  ;;  %v504_v49 = vpack.c.bf16 %v484_v46, %v483_v45  ;;  %v487_v51 = vld [vmem:[%s3902_s23 + $0xd0] sm:$0xff] }
  0x27   : > { %459 = vst [vmem:[#allocation2 + $0x1f8] sm:$0xff] %v3731_v1  ;;  %460 = vst [vmem:[#allocation2 + $0x218] sm:$0xff] %v3731_v1  ;;  %v505_v50 = vpack.c.bf16 %v486_v48, %v485_v47  ;;  %v488_v52 = vld [vmem:[%s3902_s23 + $0xd8] sm:$0xff]  ;;  %v489_v53 = vld [vmem:[%s3902_s23 + $0xe0] sm:$0xff] }
  0x28   : > { %v490_v54 = vld [vmem:[%s3902_s23 + $0xe8] sm:$0xff]  ;;  %v506_v55 = vpack.c.bf16 %v488_v52, %v487_v51  ;;  %v491_v57 = vld [vmem:[%s3902_s23 + $0xf0] sm:$0xff]  ;;  %v492_v58 = vld [vmem:[%s3902_s23 + $0xf8] sm:$0xff]  ;;  %5887 = vst [vmem:[#allocation7_spill] sm:$0xff] %v3984_v63 }
  0x29   : > { %3225 = vmatpush3.bf16.msra.mxu0 %v3392_v14  ;;  %v507_v56 = vpack.c.bf16 %v490_v54, %v489_v53  ;;  %v508_v59 = vpack.c.bf16 %v492_v58, %v491_v57  ;;  %5889 = vst [vmem:[#allocation9_spill] sm:$0xff] %v3989_v3  ;;  %v1201_v57 = vsub.s32 7, %v3978_v61  ;;  %v332_v60 = vld [vmem:[%s5820_s7] sm:$0xff] }
  0x2a   : > { %3258 = vmatprep.subr.mxu0 %v3731_v1 }
  0x2c   : > { %3227 = vmatmul.mubr.msk.bf16.vlgmr.msra.gmra.mxu0 %vm529_vm2, %v494_v19 }
  0x2d   : > { %3230 = vmatprep.mubr.msk.bf16.mxu0 %vm529_vm2, %v495_v20 }
  0x34   : > { %3231 = vmatmul.mubr.msk.bf16.gmra.mxu0 %vm529_vm2, %v496_v25 }
  0x35   : > { %3234 = vmatprep.mubr.msk.bf16.mxu0 %vm529_vm2, %v497_v26 }
  0x3c   : > { %3235 = vmatmul.mubr.msk.bf16.gmra.mxu0 %vm529_vm2, %v498_v31 }
  0x3d   : > { %3238 = vmatprep.mubr.msk.bf16.mxu0 %vm529_vm2, %v499_v32 }
  0x44   : > { %3239 = vmatmul.mubr.msk.bf16.gmra.mxu0 %vm529_vm2, %v500_v37 }
  0x45   : > { %3242 = vmatprep.mubr.msk.bf16.mxu0 %vm529_vm2, %v501_v38 }
  0x4c   : > { %3243 = vmatmul.mubr.msk.bf16.gmra.mxu0 %vm529_vm2, %v502_v43 }
  0x4d   : > { %3246 = vmatprep.mubr.msk.bf16.mxu0 %vm529_vm2, %v503_v44 }
  0x54   : > { %3247 = vmatmul.mubr.msk.bf16.gmra.mxu0 %vm529_vm2, %v504_v49 }
  0x55   : > { %3250 = vmatprep.mubr.msk.bf16.mxu0 %vm529_vm2, %v505_v50 }
  0x5c   : > { %3251 = vmatmul.mubr.msk.bf16.gmra.mxu0 %vm529_vm2, %v506_v55 }
  0x5d   : > { %3254 = vmatprep.mubr.msk.bf16.mxu0 %vm529_vm2, %v507_v56  ;;  %v1165_v56 = vsub.s32 4, %v3978_v61 }
  0x64   : > { %3255 = vmatmul.mubr.msk.bf16.gmra.mxu0 %vm529_vm2, %v508_v59 }
  0x65   : > { %3290 = vmatprep.mubr.msk.f32.mxu0 %vm3732_vm0, %v3731_v1  ;;  %v3994_v1 = vld [vmem:[%s5820_s7 + $0x8] sm:$0x1f] }
  0x66   : > { %v4001_v6 = vrot.slane %v3994_v1, %v3989_v3 }
  0x68   : > { %5890 = vst [vmem:[#allocation10_spill] sm:$0xff] %v4001_v6 }
  0xe4   : > { %v415_v0 = vpop.f32.mrf.mxu0 }
  0xe5   : > { %v3986_v2 = vadd.f32 %v415_v0, %v334_v62 }
  0xe6   : > { %v3221_v4 = vpop.f32.mrf.mxu0 }
  0xe7   : > { %5888 = vst [vmem:[#allocation8_spill] sm:$0xff] %v3986_v2  ;;  %v2751_v5 = vrot.slane %v3986_v2, %v3984_v63  ;;  %v4061_v4 = vrot.slane %v332_v60, %v3989_v3 }
  0xe9   : > { %2753 = vrot.lane.b32.xlu0 %v2751_v5, %s3733_s14  ;;  %5891 = vst [vmem:[#allocation11_spill] sm:$0xff] %v4061_v4  ;;  %v4063_v5 = vrot.slane %v332_v60, %v1165_v56 }
  0xeb   : > { %5892 = vst [vmem:[#allocation12_spill] sm:$0xff] %v4063_v5 }
  0xec   : > { %v3228_v7 = vpop.f32.mrf.mxu0 }
  0xed   : > { %v4004_v8 = vadd.f32 %v3228_v7, %v4001_v6  ;;  %v4065_v7 = vrot.slane %v332_v60, %v1201_v57  ;;  %v4124_v57 = vrot.slane %v3994_v1, %v3984_v63 }
  0xee   : > { %v612_v9 = vpop.f32.mrf.mxu0 }
  0xef   : > { %v3053_v10 = vmul.f32 -1.442695, %v4004_v8  ;;  %v4008_v11 = vadd.f32 %v612_v9, %v4001_v6  ;;  %5893 = vst [vmem:[#allocation13_spill] sm:$0xff] %v4065_v7 }
  0xf0   : > { %v3229_v12 = vpop.f32.mrf.mxu0 }
  0xf1   : > { %3401 = vpow2.f32 %v3053_v10  ;;  %v3051_v13 = vmul.f32 -1.442695, %v4008_v11  ;;  %v4012_v14 = vadd.f32 %v3229_v12, %v4001_v6 }
  0xf2   : > { %v615_v15 = vpop.f32.mrf.mxu0 }
  0xf3   : > { %3403 = vpow2.f32 %v3051_v13  ;;  %v3054_v16 = vmul.f32 -1.442695, %v4012_v14  ;;  %v4016_v17 = vadd.f32 %v615_v15, %v4001_v6 }
  0xf4   : > { %v3232_v18 = vpop.f32.mrf.mxu0 }
  0xf5   : > { %3405 = vpow2.f32 %v3054_v16  ;;  %v3052_v19 = vmul.f32 -1.442695, %v4016_v17  ;;  %v4020_v20 = vadd.f32 %v3232_v18, %v4001_v6 }
  0xf6   : > { %v628_v21 = vpop.f32.mrf.mxu0 }
  0xf7   : > { %3407 = vpow2.f32 %v3052_v19  ;;  %v3057_v22 = vmul.f32 -1.442695, %v4020_v20  ;;  %v4024_v23 = vadd.f32 %v628_v21, %v4001_v6 }
  0xf8   : > { %v3233_v24 = vpop.f32.mrf.mxu0 }
  0xf9   : > { %3409 = vpow2.f32 %v3057_v22  ;;  %v3055_v25 = vmul.f32 -1.442695, %v4024_v23  ;;  %v4028_v26 = vadd.f32 %v3233_v24, %v4001_v6 }
  0xfa   : > { %v631_v27 = vpop.f32.mrf.mxu0 }
  0xfb   : > { %3411 = vpow2.f32 %v3055_v25  ;;  %v3058_v28 = vmul.f32 -1.442695, %v4028_v26  ;;  %v4032_v29 = vadd.f32 %v631_v27, %v4001_v6  ;;  %v1037_v25 = vsub.s32 3, %v3978_v61 }
  0xfc   : > { %v3236_v30 = vpop.f32.mrf.mxu0  ;;  %v1257_v27 = vsub.s32 2, %v3978_v61 }
  0xfd   : > { %3413 = vpow2.f32 %v3058_v28  ;;  %v4035_v31 = vadd.f32 %v3236_v30, %v4001_v6  ;;  %v3056_v33 = vmul.f32 -1.442695, %v4032_v29 }
  0xfe   : > { %v3402_v32 = vpop.eup %3401  ;;  %v644_v34 = vpop.f32.mrf.mxu0 }
  0xff   : > { %v837_v35 = vadd.f32 1.0, %v3402_v32  ;;  %v3061_v37 = vmul.f32 -1.442695, %v4035_v31  ;;  %v4040_v38 = vadd.f32 %v644_v34, %v4001_v6 }
 0x100   : > { %v3404_v36 = vpop.eup %3403  ;;  %v3237_v39 = vpop.f32.mrf.mxu0 }
 0x101   : > { %3415 = vrcp.f32 %v837_v35  ;;  %v835_v40 = vadd.f32 1.0, %v3404_v36  ;;  %v4043_v42 = vadd.f32 %v3237_v39, %v4001_v6  ;;  %v3059_v46 = vmul.f32 -1.442695, %v4040_v38 }
 0x102   : > { %v3406_v41 = vpop.eup %3405  ;;  %3417 = vpow2.f32 %v3056_v33  ;;  %v647_v43 = vpop.f32.mrf.mxu0 }
 0x103   : > { %3419 = vrcp.f32 %v835_v40  ;;  %v838_v44 = vadd.f32 1.0, %v3406_v41  ;;  %v4047_v47 = vadd.f32 %v647_v43, %v4001_v6  ;;  %v3062_v51 = vmul.f32 -1.442695, %v4043_v42 }
 0x104   : > { %v3408_v45 = vpop.eup %3407  ;;  %3421 = vpow2.f32 %v3061_v37  ;;  %v3240_v48 = vpop.f32.mrf.mxu0  ;;  %v995_v37 = vld [vmem:[#allocation2 + $0x7] sm:$0xff] }
 0x105   : > { %3423 = vrcp.f32 %v838_v44  ;;  %v836_v49 = vadd.f32 1.0, %v3408_v45  ;;  %v4051_v52 = vadd.f32 %v3240_v48, %v4001_v6  ;;  %v3060_v55 = vmul.f32 -1.442695, %v4047_v47 }
 0x106   : > { %v3410_v50 = vpop.eup %3409  ;;  %v660_v22 = vpop.f32.mrf.mxu0  ;;  %v4100_v45 = vrot.slane %v332_v60, %v3984_v63 }
 0x107   : > { %3425 = vrcp.f32 %v836_v49  ;;  %v841_v53 = vadd.f32 1.0, %v3410_v50  ;;  %v3065_v62 = vmul.f32 -1.442695, %v4051_v52  ;;  %v4108_v49 = vrot.slane %v332_v60, %v1257_v27 }
 0x108   : > { %v3412_v54 = vpop.eup %3411  ;;  %3427 = vpow2.f32 %v3059_v46  ;;  %5894 = vst [vmem:[#allocation14_spill] sm:$0xff] %v4100_v45  ;;  %v4102_v46 = vrot.slane %v332_v60, %v1037_v25 }
 0x109   : > { %3429 = vrcp.f32 %v841_v53  ;;  %v839_v58 = vadd.f32 1.0, %v3412_v54  ;;  %v4118_v54 = vadd.f32 %v660_v22, %v4001_v6 }
 0x10a   : > { %v3414_v59 = vpop.eup %3413  ;;  %3431 = vpow2.f32 %v3062_v51 }
 0x10b   : > { %3433 = vrcp.f32 %v839_v58  ;;  %v842_v0 = vadd.f32 1.0, %v3414_v59  ;;  %5895 = vst [vmem:[#allocation15_spill] sm:$0xff] %v4118_v54  ;;  %v1019_v58 = vmul.f32 %v4100_v45, %v995_v37 }
 0x10c   : > { %3435 = vpow2.f32 %v3060_v55 }
 0x10d   : > { %3437 = vrcp.f32 %v842_v0 }
 0x10e   : > { %v3416_v9 = vpop.eup %3415  ;;  %3439 = vpow2.f32 %v3065_v62  ;;  %v4128_v62 = vmul.f32 0.0, %v4061_v4 }
 0x10f   : > { %v3418_v10 = vpop.eup %3417  ;;  %v933_v12 = vmul.f32 %v3416_v9, %v4004_v8  ;;  %v1073_v8 = vsub.s32 6, %v3978_v61 }
 0x110   : > { %v3420_v13 = vpop.eup %3419  ;;  %v840_v34 = vadd.f32 1.0, %v3418_v10 }
 0x111   : > { %v3422_v15 = vpop.eup %3421  ;;  %965 = vst [vmem:[#allocation2 + $0x48] sm:$0xff] %v933_v12  ;;  %v4069_v16 = vmul.f32 %v4061_v4, %v933_v12  ;;  %v4072_v18 = vmul.f32 %v4063_v5, %v933_v12  ;;  %v4075_v19 = vmul.f32 %v4065_v7, %v933_v12  ;;  %v931_v21 = vmul.f32 %v3420_v13, %v4008_v11 }
 0x112   : > { %v3424_v24 = vpop.eup %3423  ;;  %v1293_v11 = vsub.s32 5, %v3978_v61  ;;  %v845_v35 = vadd.f32 1.0, %v3422_v15  ;;  %v4104_v48 = vrot.slane %v332_v60, %v1073_v8  ;;  %3441 = vrcp.f32 %v840_v34  ;;  %v996_v8 = vld [vmem:[#allocation2 + $0xf] sm:$0xff] }
 0x113   : > { %963 = vst [vmem:[#allocation2 + $0x28] sm:$0xff] %v931_v21  ;;  %v4082_v28 = vmul.f32 %v4061_v4, %v931_v21  ;;  %v4085_v30 = vmul.f32 %v4063_v5, %v931_v21  ;;  %v934_v32 = vmul.f32 %v3424_v24, %v4012_v14  ;;  %v3241_v14 = vpop.f32.mrf.mxu0  ;;  %v1235_v34 = vld [vmem:[#allocation2 + $0x9] sm:$0xff] }
 0x114   : > { %v3426_v33 = vpop.eup %3425  ;;  %v4120_v56 = vrot.slane %v332_v60, %v1293_v11  ;;  %3443 = vrcp.f32 %v845_v35  ;;  %v4144_v11 = vadd.f32 %v3241_v14, %v4001_v6  ;;  %v1236_v35 = vld [vmem:[#allocation2 + $0x11] sm:$0xff] }
 0x115   : > { %v3428_v36 = vpop.eup %3427  ;;  %966 = vst [vmem:[#allocation2 + $0x50] sm:$0xff] %v934_v32  ;;  %v4090_v39 = vmul.f32 %v4061_v4, %v934_v32  ;;  %v4093_v40 = vmul.f32 %v4063_v5, %v934_v32  ;;  %v4096_v41 = vmul.f32 %v4065_v7, %v934_v32  ;;  %v932_v43 = vmul.f32 %v3426_v33, %v4016_v17  ;;  %v663_v9 = vpop.f32.mrf.mxu0 }
 0x116   : > { %v3430_v44 = vpop.eup %3429  ;;  %v843_v0 = vadd.f32 1.0, %v3428_v36  ;;  %v3063_v33 = vmul.f32 -1.442695, %v4118_v54  ;;  %5898 = vst [vmem:[#allocation18_spill] sm:$0xff] %v4144_v11 }
 0x117   : > { %v3432_v50 = vpop.eup %3431  ;;  %964 = vst [vmem:[#allocation2 + $0x30] sm:$0xff] %v932_v43  ;;  %v4111_v51 = vmul.f32 %v4061_v4, %v932_v43  ;;  %v4114_v17 = vmul.f32 %v4063_v5, %v932_v43  ;;  %v937_v53 = vmul.f32 %v3430_v44, %v4020_v20  ;;  %v4156_v43 = vadd.f32 %v663_v9, %v4001_v6 }
 0x118   : > { %v3434_v55 = vpop.eup %3433  ;;  %v999_v10 = vld [vmem:[#allocation2 + $0x47] sm:$0xff]  ;;  %v846_v22 = vadd.f32 1.0, %v3432_v50  ;;  %3445 = vrcp.f32 %v843_v0  ;;  %v4162_v50 = vrot.slane %v3994_v1, %v1257_v27  ;;  %v1260_v0 = vmul.f32 %v4108_v49, %v1236_v35 }
 0x119   : > { %v3436_v59 = vpop.eup %3435  ;;  %969 = vst [vmem:[#allocation2 + $0x88] sm:$0xff] %v937_v53  ;;  %v4131_v20 = vmul.f32 %v4061_v4, %v937_v53  ;;  %v4134_v13 = vmul.f32 %v4063_v5, %v937_v53  ;;  %v4137_v15 = vmul.f32 %v4065_v7, %v937_v53  ;;  %v935_v21 = vmul.f32 %v3434_v55, %v4024_v23 }
 0x11a   : > { %v3438_v60 = vpop.eup %3437  ;;  %v997_v12 = vld [vmem:[#allocation2 + $0x27] sm:$0xff]  ;;  %5899 = vst [vmem:[#allocation19_spill] sm:$0xff] %v4156_v43  ;;  %v844_v14 = vadd.f32 1.0, %v3436_v59  ;;  %v1020_v55 = vmul.f32 %v4100_v45, %v996_v8  ;;  %3447 = vrcp.f32 %v846_v22  ;;  %v4172_v59 = vmul.f32 -1.442695, %v4144_v11 }
 0x11b   : > { %5896 = vst [vmem:[#allocation16_spill] sm:$0xff] %v4131_v20  ;;  %5897 = vst [vmem:[#allocation17_spill] sm:$0xff] %v4134_v13  ;;  %v3440_v24 = vpop.eup %3439  ;;  %v1039_v25 = vmul.f32 %v4102_v46, %v997_v12  ;;  %v938_v32 = vmul.f32 %v3438_v60, %v4028_v26  ;;  %v4147_v36 = vmul.f32 %v4061_v4, %v935_v21  ;;  %3449 = vpow2.f32 %v3063_v33 }
 0x11c   : > { %967 = vst [vmem:[#allocation2 + $0x68] sm:$0xff] %v935_v21  ;;  %v4150_v23 = vmul.f32 %v4063_v5, %v935_v21  ;;  %v4153_v37 = vmul.f32 %v4065_v7, %v935_v21  ;;  %v1075_v26 = vmul.f32 %v4104_v48, %v999_v10  ;;  %v849_v60 = vadd.f32 1.0, %v3440_v24  ;;  %v3244_v21 = vpop.f32.mrf.mxu0  ;;  %v4167_v2 = vld [vmem:[#allocation2 + $0x4f] sm:$0xff] }
 0x11d   : > { %v1055_v44 = vadd.f32 %v1039_v25, %v1019_v58  ;;  %970 = vst [vmem:[#allocation2 + $0x90] sm:$0xff] %v938_v32  ;;  %v1259_v58 = vmul.f32 %v4108_v49, %v1235_v34  ;;  %v1021_v61 = vmul.f32 %v4100_v45, %v997_v12  ;;  %v4178_v27 = vmul.f32 -1.442695, %v4156_v43  ;;  %v1239_v34 = vld [vmem:[#allocation2 + $0x49] sm:$0xff]  ;;  %v4207_v43 = vld [vmem:[#allocation2 + $0x51] sm:$0xff] }
 0x11e   : > { %v4164_v53 = vld [vmem:[#allocation2 + $0x2f] sm:$0xff]  ;;  %v1023_v22 = vmul.f32 %v4100_v45, %v999_v10  ;;  %3451 = vrcp.f32 %v844_v14  ;;  %v4183_v25 = vadd.f32 %v3244_v21, %v4001_v6  ;;  %v1041_v8 = vmul.f32 %v4102_v46, %v999_v10  ;;  %v676_v33 = vpop.f32.mrf.mxu0 }
 0x11f   : > { %v1091_v9 = vadd.f32 %v1075_v26, %v1055_v44  ;;  %v1040_v1 = vmul.f32 %v4102_v46, %v4164_v53  ;;  %v1076_v12 = vmul.f32 %v4104_v48, %v4167_v2  ;;  %3453 = vrcp.f32 %v849_v60 }
 0x120   : > { %5900 = vst [vmem:[#allocation20_spill] sm:$0xff] %v4183_v25  ;;  %v4189_v44 = vld [vmem:[#allocation2 + $0x87] sm:$0xff]  ;;  %v4194_v14 = vmul.f32 %v4061_v4, %v938_v32  ;;  %v4197_v21 = vmul.f32 %v4063_v5, %v938_v32  ;;  %v4200_v10 = vmul.f32 %v4065_v7, %v938_v32  ;;  %v1263_v11 = vmul.f32 %v4108_v49, %v1239_v34 }
 0x121   : > { %v1147_v24 = vadd.f32 %v4128_v62, %v1091_v9  ;;  %v1056_v35 = vadd.f32 %v1040_v1, %v1020_v55  ;;  %v1057_v9 = vadd.f32 %v1041_v8, %v1021_v61  ;;  %v1237_v55 = vld [vmem:[#allocation2 + $0x29] sm:$0xff]  ;;  %v3442_v1 = vpop.eup %3441  ;;  %v4211_v54 = vmul.f32 -1.442695, %v4183_v25 }
 0x122   : > { %5901 = vst [vmem:[#allocation21_spill] sm:$0xff] %v4194_v14  ;;  %5902 = vst [vmem:[#allocation22_spill] sm:$0xff] %v4197_v21  ;;  %v4214_v32 = vadd.f32 %v676_v33, %v4001_v6  ;;  %v3444_v61 = vpop.eup %3443  ;;  %v1331_v14 = vmul.f32 %v4124_v57, %v1239_v34  ;;  %v1295_v25 = vmul.f32 %v4120_v56, %v1237_v55  ;;  %3455 = vpow2.f32 %v4172_v59 }
 0x123   : > { %v1183_v26 = vadd.f32 %v4085_v30, %v1147_v24  ;;  %v4191_v3 = vld [vmem:[#allocation2 + $0x67] sm:$0xff]  ;;  %v1092_v63 = vadd.f32 %v1076_v12, %v1056_v35  ;;  %v4217_v12 = vld [vmem:[#allocation2 + $0x31] sm:$0xff]  ;;  %v1079_v35 = vmul.f32 %v4104_v48, %v4189_v44  ;;  %v1332_v33 = vmul.f32 %v4124_v57, %v4207_v43 }
 0x124   : > { %v1043_v60 = vmul.f32 %v4102_v46, %v4191_v3  ;;  %v1077_v30 = vmul.f32 %v4104_v48, %v4191_v3  ;;  %v1261_v20 = vmul.f32 %v4108_v49, %v1237_v55  ;;  %3457 = vpow2.f32 %v4178_v27 }
 0x125   : > { %v1219_v24 = vadd.f32 %v4075_v19, %v1183_v26  ;;  %v1148_v8 = vadd.f32 %v4128_v62, %v1092_v63  ;;  %v1297_v26 = vmul.f32 %v4120_v56, %v1239_v34  ;;  %v3446_v34 = vpop.eup %3445  ;;  %3459 = vpow2.f32 %v4211_v54 }
 0x126   : > { %v1059_v21 = vadd.f32 %v1043_v60, %v1023_v22  ;;  %v1093_v19 = vadd.f32 %v1077_v30, %v1057_v9  ;;  %v1296_v22 = vmul.f32 %v4120_v56, %v4217_v12  ;;  %v936_v60 = vmul.f32 %v3442_v1, %v4032_v29 }
 0x127   : > { %v1275_v13 = vadd.f32 %v1259_v58, %v1219_v24  ;;  %v1184_v6 = vadd.f32 %v4114_v17, %v1148_v8  ;;  %v941_v17 = vmul.f32 %v3444_v61, %v4035_v31 }
 0x128   : > { %v1095_v63 = vadd.f32 %v1079_v35, %v1059_v21  ;;  %v1149_v62 = vadd.f32 %v4082_v28, %v1093_v19  ;;  %v3448_v21 = vpop.eup %3447  ;;  %968 = vst [vmem:[#allocation2 + $0x70] sm:$0xff] %v936_v60  ;;  %v4237_v28 = vmul.f32 %v4061_v4, %v936_v60  ;;  %v4240_v55 = vmul.f32 %v4063_v5, %v936_v60 }
 0x129   : > { %v1311_v9 = vadd.f32 %v1295_v25, %v1275_v13  ;;  %v1220_v58 = vadd.f32 %v4096_v41, %v1184_v6  ;;  %v4243_v29 = vmul.f32 %v4065_v7, %v936_v60  ;;  %973 = vst [vmem:[#allocation2 + $0xc8] sm:$0xff] %v941_v17  ;;  %v4248_v31 = vmul.f32 %v4061_v4, %v941_v17 }
 0x12a   : > { %v1151_v30 = vadd.f32 %v4069_v16, %v1095_v63  ;;  %v1185_v24 = vadd.f32 %v4072_v18, %v1149_v62  ;;  %v4250_v18 = vpop.eup %3449  ;;  %v4256_v25 = vmul.f32 %v4063_v5, %v941_v17  ;;  %v942_v35 = vmul.f32 %v3448_v21, %v4043_v42 }
 0x12b   : > { %v1347_v8 = vadd.f32 %v1331_v14, %v1311_v9  ;;  %v1276_v13 = vadd.f32 %v1260_v0, %v1220_v58  ;;  %v4259_v14 = vmul.f32 %v4065_v7, %v941_v17  ;;  %v939_v0 = vmul.f32 %v3446_v34, %v4040_v38 }
 0x12c   : > { %v1187_v6 = vadd.f32 %v4150_v23, %v1151_v30  ;;  %v1221_v16 = vadd.f32 %v4153_v37, %v1185_v24  ;;  %v3452_v23 = vpop.eup %3451  ;;  %v1022_v63 = vmul.f32 %v4100_v45, %v4164_v53  ;;  %974 = vst [vmem:[#allocation2 + $0xd0] sm:$0xff] %v942_v35  ;;  %v4276_v42 = vmul.f32 %v4061_v4, %v942_v35 }
 0x12d   : > { %v4253_v41 = vadd.f32 %v4162_v50, %v1347_v8  ;;  %v1312_v1 = vadd.f32 %v1296_v22, %v1276_v13  ;;  %v3454_v19 = vpop.eup %3453  ;;  %971 = vst [vmem:[#allocation2 + $0xa8] sm:$0xff] %v939_v0  ;;  %v4267_v62 = vmul.f32 %v4061_v4, %v939_v0  ;;  %v4270_v9 = vmul.f32 %v4063_v5, %v939_v0 }
 0x12e   : > { %v1223_v37 = vadd.f32 %v4137_v15, %v1187_v6  ;;  %v1277_v61 = vadd.f32 %v1261_v20, %v1221_v16  ;;  %v4273_v38 = vmul.f32 %v4065_v7, %v939_v0  ;;  %v1042_v20 = vmul.f32 %v4102_v46, %v4167_v2 }
 0x12f   : > { %v1348_v22 = vadd.f32 %v1332_v33, %v1312_v1  ;;  %v4281_v53 = vmul.f32 %v4063_v5, %v942_v35  ;;  %v4284_v34 = vmul.f32 %v4065_v7, %v942_v35  ;;  %v4287_v58 = vmul.f32 %v3452_v23, %v4047_v47  ;;  %v4292_v30 = vld [vmem:[#allocation2 + $0x69] sm:$0xff] }
 0x130   : > { %v1279_v60 = vadd.f32 %v1263_v11, %v1223_v37  ;;  %v1313_v15 = vadd.f32 %v1297_v26, %v1277_v61  ;;  %v1004_v11 = vld [vmem:[#allocation2 + $0x8f] sm:$0xff]  ;;  %v4295_v24 = vmul.f32 %v3454_v19, %v4051_v52  ;;  %v3067_v17 = vmul.f32 -1.442695, %v4214_v32 }
 0x131   : > { %v4290_v33 = vadd.f32 %v4162_v50, %v1348_v22  ;;  %v1002_v26 = vld [vmem:[#allocation2 + $0x6f] sm:$0xff]  ;;  %v1024_v21 = vmul.f32 %v4100_v45, %v4167_v2  ;;  %v1058_v8 = vadd.f32 %v1042_v20, %v1022_v63  ;;  %972 = vst [vmem:[#allocation2 + $0xb0] sm:$0xff] %v4287_v58  ;;  %v1025_v52 = vmul.f32 %v4100_v45, %v4191_v3  ;;  %v4323_v63 = vld [vmem:[#allocation2 + $0xc7] sm:$0xff] }
 0x132   : > { %v4301_v47 = vld [vmem:[#allocation2 + $0x89] sm:$0xff]  ;;  %v1044_v13 = vmul.f32 %v4102_v46, %v1002_v26  ;;  %v1078_v6 = vmul.f32 %v4104_v48, %v1002_v26  ;;  %v1299_v59 = vmul.f32 %v4120_v56, %v4292_v30  ;;  %977 = vst [vmem:[#allocation2 + $0x108] sm:$0xff] %v4295_v24  ;;  %v1080_v2 = vmul.f32 %v4104_v48, %v1004_v11 }
 0x133   : > { %v1333_v23 = vmul.f32 %v4124_v57, %v4292_v30  ;;  %v1045_v1 = vmul.f32 %v4102_v46, %v4189_v44  ;;  %v1335_v3 = vmul.f32 %v4124_v57, %v4301_v47  ;;  %3461 = vpow2.f32 %v3067_v17 }
 0x134   : > { %v1060_v16 = vadd.f32 %v1044_v13, %v1024_v21  ;;  %v1094_v0 = vadd.f32 %v1078_v6, %v1058_v8  ;;  %v1315_v37 = vadd.f32 %v1299_v59, %v1279_v60  ;;  %v4319_v61 = vld [vmem:[#allocation2 + $0xa7] sm:$0xff]  ;;  %v1027_v22 = vmul.f32 %v4100_v45, %v4189_v44  ;;  %v4346_v59 = vld [vmem:[#allocation2 + $0x71] sm:$0xff] }
 0x135   : > { %v1349_v19 = vadd.f32 %v1333_v23, %v1313_v15  ;;  %v1061_v20 = vadd.f32 %v1045_v1, %v1025_v52  ;;  %v1047_v8 = vmul.f32 %v4102_v46, %v4319_v61  ;;  %v1083_v44 = vmul.f32 %v4104_v48, %v4323_v63 }
 0x136   : > { %v1096_v35 = vadd.f32 %v1080_v2, %v1060_v16  ;;  %v1150_v27 = vadd.f32 %v4111_v51, %v1094_v0  ;;  %v1351_v21 = vadd.f32 %v1335_v3, %v1315_v37  ;;  %v1081_v51 = vmul.f32 %v4104_v48, %v4319_v61  ;;  %v4354_v3 = vld [vmem:[#allocation2 + $0x91] sm:$0xff] }
 0x137   : > { %v4332_v54 = vadd.f32 %v4162_v50, %v1349_v19  ;;  %v1063_v17 = vadd.f32 %v1047_v8, %v1027_v22  ;;  %v847_v6 = vadd.f32 1.0, %v4250_v18  ;;  %v1264_v16 = vmul.f32 %v4108_v49, %v4207_v43  ;;  %v3456_v22 = vpop.eup %3455 }
 0x138   : > { %v1152_v60 = vadd.f32 %v4090_v39, %v1096_v35  ;;  %v1186_v13 = vadd.f32 %v4093_v40, %v1150_v27  ;;  %v4337_v15 = vadd.f32 %v4162_v50, %v1351_v21  ;;  %v1262_v39 = vmul.f32 %v4108_v49, %v4217_v12  ;;  %v5904_v27 = vld [vmem:[#allocation16_spill] sm:$0xff] }
 0x139   : > { %v1097_v2 = vadd.f32 %v1081_v51, %v1061_v20  ;;  %v1298_v0 = vmul.f32 %v4120_v56, %v4207_v43  ;;  %v1028_v23 = vmul.f32 %v4100_v45, %v1004_v11  ;;  %v1099_v1 = vadd.f32 %v1083_v44, %v1063_v17  ;;  %v4373_v51 = vpop.eup %3457 }
 0x13a   : > { %5903 = vst [vmem:[#allocation23_spill] sm:$0xff] %v4337_v15  ;;  %v1188_v40 = vadd.f32 %v4240_v55, %v1152_v60  ;;  %v1222_v52 = vadd.f32 %v4243_v29, %v1186_v13  ;;  %v1046_v18 = vmul.f32 %v4102_v46, %v1004_v11  ;;  %v1267_v37 = vmul.f32 %v4108_v49, %v4301_v47  ;;  %v4367_v60 = vld [vmem:[#allocation2 + $0xaf] sm:$0xff] }
 0x13b   : > { %v1153_v29 = vadd.f32 %v4147_v36, %v1097_v2  ;;  %v1026_v35 = vmul.f32 %v4100_v45, %v1002_v26  ;;  %v1300_v43 = vmul.f32 %v4120_v56, %v4346_v59  ;;  %v1155_v19 = vadd.f32 %v5904_v27, %v1099_v1 }
 0x13c   : > { %v1224_v12 = vadd.f32 %v4200_v10, %v1188_v40  ;;  %v1278_v55 = vadd.f32 %v1262_v39, %v1222_v52  ;;  %v1334_v21 = vmul.f32 %v4124_v57, %v4346_v59  ;;  %v5905_v10 = vld [vmem:[#allocation17_spill] sm:$0xff]  ;;  %v3083_v36 = vmul.f32 -1.442695, %v4253_v41 }
 0x13d   : > { %v1189_v8 = vadd.f32 %v5905_v10, %v1153_v29  ;;  %v1336_v26 = vmul.f32 %v4124_v57, %v4354_v3  ;;  %v1191_v13 = vadd.f32 %v4270_v9, %v1155_v19  ;;  %3463 = vrcp.f32 %v847_v6  ;;  %v4378_v52 = vld [vmem:[#allocation2 + $0xcf] sm:$0xff]  ;;  %v3460_v6 = vpop.eup %3459 }
 0x13e   : > { %v1280_v20 = vadd.f32 %v1264_v16, %v1224_v12  ;;  %v1314_v11 = vadd.f32 %v1298_v0, %v1278_v55  ;;  %v1265_v44 = vmul.f32 %v4108_v49, %v4292_v30  ;;  %v3084_v2 = vmul.f32 -1.442695, %v4290_v33 }
 0x13f   : > { %v1225_v40 = vadd.f32 %v4273_v38, %v1189_v8  ;;  %v1062_v16 = vadd.f32 %v1046_v18, %v1026_v35  ;;  %v1227_v0 = vadd.f32 %v4259_v14, %v1191_v13  ;;  %v1048_v9 = vmul.f32 %v4102_v46, %v4367_v60  ;;  %v4408_v8 = vld [vmem:[#allocation2 + $0xc9] sm:$0xff] }
 0x140   : > { %v1316_v17 = vadd.f32 %v1300_v43, %v1280_v20  ;;  %v1350_v39 = vadd.f32 %v1334_v21, %v1314_v11  ;;  %v1082_v55 = vmul.f32 %v4104_v48, %v4367_v60  ;;  %v3462_v38 = vpop.eup %3461  ;;  %3465 = vpow2.f32 %v3083_v36  ;;  %v4401_v20 = vld [vmem:[#allocation2 + $0xa9] sm:$0xff] }
 0x141   : > { %v1281_v30 = vadd.f32 %v1265_v44, %v1225_v40  ;;  %v1084_v29 = vmul.f32 %v4104_v48, %v4378_v52  ;;  %v1064_v18 = vadd.f32 %v1048_v9, %v1028_v23  ;;  %v4393_v14 = vmul.f32 %v4061_v4, %v4287_v58 }
 0x142   : > { %v1352_v1 = vadd.f32 %v1336_v26, %v1316_v17  ;;  %v4385_v12 = vadd.f32 %v4162_v50, %v1350_v39  ;;  %v3085_v43 = vmul.f32 -1.442695, %v4332_v54  ;;  %v1098_v27 = vadd.f32 %v1082_v55, %v1062_v16  ;;  %v5908_v26 = vld [vmem:[#allocation21_spill] sm:$0xff]  ;;  %v5909_v39 = vld [vmem:[#allocation22_spill] sm:$0xff] }
 0x143   : > { %v1176_v19 = vmul.f32 %v4063_v5, %v4287_v58  ;;  %3467 = vpow2.f32 %v3084_v2  ;;  %v3087_v11 = vmul.f32 -1.442695, %v4337_v15  ;;  %v1100_v21 = vadd.f32 %v1084_v29, %v1064_v18 }
 0x144   : > { %5906 = vst [vmem:[#allocation16_spill] sm:$0xff] %v4385_v12  ;;  %v4396_v35 = vadd.f32 %v4162_v50, %v1352_v1  ;;  %v1210_v23 = vmul.f32 %v4065_v7, %v4287_v58  ;;  %v1301_v10 = vmul.f32 %v4120_v56, %v4301_v47  ;;  %v1154_v36 = vadd.f32 %v4237_v28, %v1098_v27 }
 0x145   : > { %v1156_v13 = vadd.f32 %v5908_v26, %v1100_v21  ;;  %v1283_v44 = vadd.f32 %v1267_v37, %v1227_v0  ;;  %v1303_v17 = vmul.f32 %v4120_v56, %v4401_v20  ;;  %3469 = vpow2.f32 %v3085_v43  ;;  %v4421_v0 = vld [vmem:[#allocation2 + $0xb1] sm:$0xff] }
 0x146   : > { %5907 = vst [vmem:[#allocation17_spill] sm:$0xff] %v4396_v35  ;;  %v1190_v40 = vadd.f32 %v5909_v39, %v1154_v36  ;;  %v1317_v2 = vadd.f32 %v1301_v10, %v1281_v30  ;;  %v1337_v58 = vmul.f32 %v4124_v57, %v4401_v20  ;;  %3471 = vpow2.f32 %v3087_v11 }
 0x147   : > { %v1339_v47 = vmul.f32 %v4124_v57, %v4408_v8  ;;  %v1192_v16 = vadd.f32 %v1176_v19, %v1156_v13  ;;  %v1319_v9 = vadd.f32 %v1303_v17, %v1283_v44  ;;  %v1266_v28 = vmul.f32 %v4108_v49, %v4346_v59  ;;  %v4432_v59 = vld [vmem:[#allocation2 + $0xd1] sm:$0xff] }
 0x148   : > { %v1226_v37 = vadd.f32 %v1210_v23, %v1190_v40  ;;  %v1353_v1 = vadd.f32 %v1337_v58, %v1317_v2  ;;  %v850_v55 = vadd.f32 1.0, %v3456_v22  ;;  %v1268_v30 = vmul.f32 %v4108_v49, %v4354_v3  ;;  %v5912_v40 = vld [vmem:[#allocation15_spill] sm:$0xff] }
 0x149   : > { %v1228_v29 = vadd.f32 %v4284_v34, %v1192_v16  ;;  %v1355_v18 = vadd.f32 %v1339_v47, %v1319_v9  ;;  %v4428_v43 = vmul.f32 %v4063_v5, %v4295_v24  ;;  %v1302_v19 = vmul.f32 %v4120_v56, %v4354_v3  ;;  %v3245_v34 = vpop.f32.mrf.mxu0 }
 0x14a   : > { %v3464_v27 = vpop.eup %3463  ;;  %v1282_v11 = vadd.f32 %v1266_v28, %v1226_v37  ;;  %v4435_v21 = vadd.f32 %v4162_v50, %v1353_v1  ;;  %v4439_v22 = vmul.f32 %v4065_v7, %v4295_v24  ;;  %v1304_v10 = vmul.f32 %v4120_v56, %v4421_v0 }
 0x14b   : > { %v1284_v23 = vadd.f32 %v1268_v30, %v1228_v29  ;;  %v4444_v36 = vadd.f32 %v4162_v50, %v1355_v18  ;;  %v1338_v3 = vmul.f32 %v4124_v57, %v4421_v0  ;;  %v4450_v13 = vmul.f32 %v4061_v4, %v4295_v24  ;;  %v679_v28 = vpop.f32.mrf.mxu0 }
 0x14c   : > { %5910 = vst [vmem:[#allocation21_spill] sm:$0xff] %v4435_v21  ;;  %v1318_v26 = vadd.f32 %v1302_v19, %v1282_v11  ;;  %v848_v44 = vadd.f32 1.0, %v4373_v51  ;;  %v1340_v17 = vmul.f32 %v4124_v57, %v4432_v59  ;;  %v943_v2 = vmul.f32 %v3464_v27, %v5912_v40 }
 0x14d   : > { %5911 = vst [vmem:[#allocation22_spill] sm:$0xff] %v4444_v36  ;;  %v1320_v39 = vadd.f32 %v1304_v10, %v1284_v23  ;;  %3473 = vrcp.f32 %v850_v55  ;;  %v3466_v58 = vpop.eup %3465  ;;  %v853_v16 = vadd.f32 1.0, %v3460_v6  ;;  %v851_v9 = vadd.f32 1.0, %v3462_v38  ;;  %v3248_v18 = vpop.f32.mrf.mxu0 }
 0x14e   : > { %v1354_v47 = vadd.f32 %v1338_v3, %v1318_v26  ;;  %975 = vst [vmem:[#allocation2 + $0xe8] sm:$0xff] %v943_v2  ;;  %v4457_v1 = vmul.f32 %v4061_v4, %v943_v2  ;;  %v4460_v24 = vmul.f32 %v4063_v5, %v943_v2  ;;  %v1213_v29 = vmul.f32 %v4065_v7, %v943_v2  ;;  %v5914_v26 = vld [vmem:[#allocation10_spill] sm:$0xff] }
 0x14f   : > { %v1356_v37 = vadd.f32 %v1340_v17, %v1320_v39  ;;  %3475 = vrcp.f32 %v848_v44  ;;  %v1431_v6 = vadd.f32 1.0, %v3466_v58  ;;  %v1029_v38 = vmul.f32 %v4100_v45, %v4319_v61  ;;  %v4486_v58 = vld [vmem:[#allocation2 + $0x107] sm:$0xff] }
 0x150   : > { %v3468_v51 = vpop.eup %3467  ;;  %v4463_v30 = vadd.f32 %v4162_v50, %v1354_v47  ;;  %3477 = vrcp.f32 %v853_v16  ;;  %v3086_v23 = vmul.f32 -1.442695, %v4385_v12  ;;  %v1049_v10 = vmul.f32 %v4102_v46, %v4323_v63 }
 0x151   : > { %v4467_v55 = vadd.f32 %v4162_v50, %v1356_v37  ;;  %3479 = vrcp.f32 %v851_v9  ;;  %v1432_v19 = vadd.f32 1.0, %v3468_v51  ;;  %v4475_v3 = vadd.f32 %v3245_v34, %v5914_v26 }
 0x152   : > { %5913 = vst [vmem:[#allocation15_spill] sm:$0xff] %v4463_v30  ;;  %v3470_v27 = vpop.eup %3469  ;;  %v4478_v44 = vadd.f32 %v679_v28, %v5914_v26  ;;  %v3088_v17 = vmul.f32 -1.442695, %v4396_v35  ;;  %v4482_v61 = vadd.f32 %v3248_v18, %v5914_v26  ;;  %3481 = vrcp.f32 %v1431_v6  ;;  %v692_v28 = vpop.f32.mrf.mxu0 }
 0x153   : > { %v3472_v11 = vpop.eup %3471  ;;  %v1433_v39 = vadd.f32 1.0, %v3470_v27  ;;  %v1031_v40 = vmul.f32 %v4100_v45, %v4323_v63  ;;  %v1065_v2 = vadd.f32 %v1049_v10, %v1029_v38  ;;  %3483 = vrcp.f32 %v1432_v19 }
 0x154   : > { %5915 = vst [vmem:[#allocation10_spill] sm:$0xff] %v4478_v44  ;;  %5916 = vst [vmem:[#allocation24_spill] sm:$0xff] %v4482_v61  ;;  %v1435_v34 = vadd.f32 1.0, %v3472_v11  ;;  %3485 = vpow2.f32 %v3086_v23  ;;  %v3070_v37 = vmul.f32 -1.442695, %v4475_v3  ;;  %v1087_v63 = vmul.f32 %v4104_v48, %v4486_v58 }
 0x155   : > { %v4488_v47 = vld [vmem:[#allocation2 + $0xe7] sm:$0xff]  ;;  %v3068_v51 = vmul.f32 -1.442695, %v4478_v44  ;;  %3487 = vpow2.f32 %v3088_v17  ;;  %v1271_v27 = vmul.f32 %v4108_v49, %v4408_v8  ;;  %v3073_v19 = vmul.f32 -1.442695, %v4482_v61  ;;  %v5918_v17 = vld [vmem:[#allocation18_spill] sm:$0xff] }
 0x156   : > { %v1051_v16 = vmul.f32 %v4102_v46, %v4488_v47  ;;  %v1085_v9 = vmul.f32 %v4104_v48, %v4488_v47  ;;  %3489 = vrcp.f32 %v1433_v39  ;;  %v4502_v11 = vadd.f32 %v692_v28, %v5914_v26 }
 0x157   : > { %3491 = vrcp.f32 %v1435_v34  ;;  %v1030_v39 = vmul.f32 %v4100_v45, %v4367_v60  ;;  %v3089_v28 = vmul.f32 -1.442695, %v4435_v21  ;;  %v3090_v61 = vmul.f32 -1.442695, %v4463_v30 }
 0x158   : > { %v1067_v6 = vadd.f32 %v1051_v16, %v1031_v40  ;;  %v1101_v38 = vadd.f32 %v1085_v9, %v1065_v2  ;;  %5917 = vst [vmem:[#allocation25_spill] sm:$0xff] %v4502_v11  ;;  %v1305_v40 = vmul.f32 %v4120_v56, %v4408_v8  ;;  %v1269_v2 = vmul.f32 %v4108_v49, %v4401_v20  ;;  %v3249_v16 = vpop.f32.mrf.mxu0  ;;  %v5921_v20 = vld [vmem:[#allocation19_spill] sm:$0xff] }
 0x159   : > { %3493 = vpow2.f32 %v3070_v37 }
 0x15a   : > { %v3474_v18 = vpop.eup %3473  ;;  %v1103_v23 = vadd.f32 %v1087_v63, %v1067_v6  ;;  %v1157_v10 = vadd.f32 %v4267_v62, %v1101_v38  ;;  %v3071_v38 = vmul.f32 -1.442695, %v4502_v11  ;;  %3495 = vpow2.f32 %v3068_v51 }
 0x15b   : > { %v946_v35 = vmul.f32 %v3474_v18, %v5918_v17  ;;  %v4529_v17 = vadd.f32 %v3249_v16, %v5914_v26  ;;  %3497 = vpow2.f32 %v3073_v19  ;;  %v4580_v19 = vmul.f32 %v4120_v56, %v4432_v59 }
 0x15c   : > { %v3476_v9 = vpop.eup %3475  ;;  %v1159_v34 = vadd.f32 %v4248_v31, %v1103_v23  ;;  %v1193_v62 = vadd.f32 %v4256_v25, %v1157_v10  ;;  %v5922_v25 = vld [vmem:[#allocation20_spill] sm:$0xff]  ;;  %3499 = vpow2.f32 %v3089_v28  ;;  %v4584_v28 = vmul.f32 %v4108_v49, %v4421_v0 }
 0x15d   : > { %978 = vst [vmem:[#allocation2 + $0x110] sm:$0xff] %v946_v35  ;;  %v4516_v63 = vmul.f32 %v4063_v5, %v946_v35  ;;  %v3478_v8 = vpop.eup %3477  ;;  %v4519_v6 = vmul.f32 %v4065_v7, %v946_v35  ;;  %v4522_v60 = vmul.f32 %v4061_v4, %v946_v35  ;;  %v944_v37 = vmul.f32 %v3476_v9, %v5921_v20 }
 0x15e   : > { %v3480_v18 = vpop.eup %3479  ;;  %v1195_v31 = vadd.f32 %v4460_v24, %v1159_v34  ;;  %v1229_v23 = vadd.f32 %v1213_v29, %v1193_v62  ;;  %v949_v10 = vmul.f32 %v3478_v8, %v5922_v25  ;;  %5923 = vst [vmem:[#allocation19_spill] sm:$0xff] %v4529_v17  ;;  %v3091_v25 = vmul.f32 -1.442695, %v4444_v36 }
 0x15f   : > { %5919 = vst [vmem:[#allocation18_spill] sm:$0xff] %v4516_v63  ;;  %5920 = vst [vmem:[#allocation26_spill] sm:$0xff] %v4522_v60  ;;  %v4532_v63 = vmul.f32 %v4061_v4, %v944_v37  ;;  %v4535_v35 = vmul.f32 %v4063_v5, %v944_v37  ;;  %v4538_v9 = vmul.f32 %v4065_v7, %v944_v37  ;;  %3501 = vpow2.f32 %v3071_v38 }
 0x160   : > { %976 = vst [vmem:[#allocation2 + $0xf0] sm:$0xff] %v944_v37  ;;  %v947_v20 = vmul.f32 %v3480_v18, %v4214_v32  ;;  %v1231_v24 = vadd.f32 %v4439_v22, %v1195_v31  ;;  %v1285_v29 = vadd.f32 %v1269_v2, %v1229_v23  ;;  %981 = vst [vmem:[#allocation2 + $0x148] sm:$0xff] %v949_v10  ;;  %v4557_v32 = vpop.eup %3481  ;;  %v3074_v31 = vmul.f32 -1.442695, %v4529_v17 }
 0x161   : > { %5924 = vst [vmem:[#allocation20_spill] sm:$0xff] %v4532_v63  ;;  %v4543_v34 = vmul.f32 %v4061_v4, %v949_v10  ;;  %v4546_v16 = vmul.f32 %v4063_v5, %v949_v10  ;;  %v4549_v62 = vmul.f32 %v4065_v7, %v949_v10  ;;  %v4563_v23 = vpop.eup %3483  ;;  %v2073_v63 = vld [vmem:[%s5816_s3 + $0x70] sm:$0xff] }
 0x162   : > { %979 = vst [vmem:[#allocation2 + $0x128] sm:$0xff] %v947_v20  ;;  %v4552_v8 = vmul.f32 %v4065_v7, %v947_v20  ;;  %v4555_v37 = vmul.f32 %v4061_v4, %v947_v20  ;;  %v1287_v22 = vadd.f32 %v1271_v27, %v1231_v24  ;;  %v1321_v2 = vadd.f32 %v1305_v40, %v1285_v29  ;;  %v3486_v10 = vpop.eup %3485 }
 0x163   : > { %5925 = vst [vmem:[#allocation27_spill] sm:$0xff] %v4543_v34  ;;  %5926 = vst [vmem:[#allocation28_spill] sm:$0xff] %v4546_v16  ;;  %v4560_v18 = vmul.f32 %v4063_v5, %v947_v20  ;;  %v1050_v16 = vmul.f32 %v4102_v46, %v4378_v52  ;;  %v4568_v51 = vpop.eup %3487  ;;  %v1032_v27 = vmul.f32 %v4100_v45, %v4378_v52  ;;  %v695_v20 = vpop.f32.mrf.mxu0  ;;  %3503 = vpow2.f32 %v3074_v31 }
 0x164   : > { %5927 = vst [vmem:[#allocation29_spill] sm:$0xff] %v4555_v37  ;;  %v4574_v40 = vmul.f32 %v4108_v49, %v4432_v59  ;;  %v4576_v24 = vpop.eup %3489  ;;  %v4586_v36 = vld [vmem:[#allocation2 + $0x10f] sm:$0xff]  ;;  %3505 = vpow2.f32 %v3091_v25  ;;  %v1053_v37 = vmul.f32 %v4102_v46, %v4486_v58  ;;  %v1532_v59 = vmul.f32 %v4100_v45, %v4486_v58  ;;  %v2074_v58 = vld [vmem:[%s5816_s3 + $0x78] sm:$0xff] }
 0x165   : > { %v1066_v29 = vadd.f32 %v1050_v16, %v1030_v39  ;;  %5928 = vst [vmem:[#allocation30_spill] sm:$0xff] %v4586_v36  ;;  %v4592_v38 = vpop.eup %3491  ;;  %v4598_v39 = vld [vmem:[#allocation2 + $0x109] sm:$0xff]  ;;  %v1434_v60 = vadd.f32 1.0, %v3486_v10  ;;  %v4607_v25 = vadd.f32 %v695_v20, %v5914_v26  ;;  %v1033_v10 = vmul.f32 %v4100_v45, %v4488_v47  ;;  %v4621_v20 = vpop.f32.mrf.mxu0  ;;  %3259 = vmatpush3.msra.mxu0 %v2074_v58  ;;  %v4628_v47 = vld [vmem:[#allocation2] sm:$0xff] }
 0x166   : > { %5930 = vst [vmem:[#allocation32_spill] sm:$0xff] %v4592_v38  ;;  %v3494_v16 = vpop.eup %3493  ;;  %v1343_v44 = vmul.f32 %v4124_v57, %v4598_v39  ;;  %5931 = vst [vmem:[#allocation33_spill] sm:$0xff] %v4628_v47  ;;  %3260 = vmatprep.subr.mxu0 %v4628_v47 }
 0x167   : > { %v4588_v52 = vld [vmem:[#allocation2 + $0xef] sm:$0xff]  ;;  %v854_v30 = vadd.f32 1.0, %v3494_v16  ;;  %3261 = vmatpush3.msra.mxu0 %v2073_v63  ;;  %3507 = vrcp.f32 %v1434_v60  ;;  %v1069_v45 = vadd.f32 %v1053_v37, %v1033_v10  ;;  %v1436_v37 = vadd.f32 1.0, %v4568_v51 }
 0x168   : > { %5929 = vst [vmem:[#allocation31_spill] sm:$0xff] %v4588_v52  ;;  %v4590_v34 = vld [vmem:[#allocation2 + $0xe9] sm:$0xff]  ;;  %v1052_v0 = vmul.f32 %v4102_v46, %v4588_v52  ;;  %v1086_v21 = vmul.f32 %v4104_v48, %v4588_v52  ;;  %v1088_v52 = vmul.f32 %v4104_v48, %v4586_v36  ;;  %3262 = vmatprep.subr.mxu0 %v4628_v47  ;;  %3509 = vpow2.f32 %v3090_v61 }
 0x169   : > { %v1307_v31 = vmul.f32 %v4120_v56, %v4590_v34  ;;  %v1341_v11 = vmul.f32 %v4124_v57, %v4590_v34  ;;  %v4626_v12 = vld [vmem:[#allocation2 + $0x127] sm:$0xff]  ;;  %3511 = vrcp.f32 %v854_v30  ;;  %v2069_v51 = vld [vmem:[%s5816_s3 + $0x50] sm:$0xff] }
 0x16a   : > { %v1068_v17 = vadd.f32 %v1052_v0, %v1032_v27  ;;  %v1102_v38 = vadd.f32 %v1086_v21, %v1066_v29  ;;  %v2072_v27 = vld [vmem:[%s5816_s3 + $0x68] sm:$0xff]  ;;  %v3092_v0 = vmul.f32 -1.442695, %v4467_v55  ;;  %v3072_v29 = vmul.f32 -1.442695, %v4607_v25 }
 0x16b   : > { %v1323_v15 = vadd.f32 %v1307_v31, %v1287_v22  ;;  %v1357_v36 = vadd.f32 %v1341_v11, %v1321_v2  ;;  %v2071_v31 = vld [vmem:[%s5816_s3 + $0x60] sm:$0xff]  ;;  %3263 = vmatpush3.msra.mxu0 %v2072_v27  ;;  %v4662_v2 = vld [vmem:[#allocation2 + $0x111] sm:$0xff] }
 0x16c   : > { %v1104_v58 = vadd.f32 %v1088_v52, %v1068_v17  ;;  %v1158_v21 = vadd.f32 %v4393_v14, %v1102_v38  ;;  %v4645_v11 = vld [vmem:[#allocation2 + $0x147] sm:$0xff]  ;;  %v1089_v14 = vmul.f32 %v4104_v48, %v4626_v12  ;;  %3264 = vmatprep.subr.mxu0 %v4628_v47  ;;  %v4665_v52 = vld [vmem:[#allocation2 + $0xf1] sm:$0xff]  ;;  %3513 = vpow2.f32 %v3092_v0 }
 0x16d   : > { %v1359_v22 = vadd.f32 %v1343_v44, %v1323_v15  ;;  %v4643_v17 = vadd.f32 %v4162_v50, %v1357_v36  ;;  %v4649_v15 = vpop.f32.mrf.mxu0  ;;  %v3496_v44 = vpop.eup %3495  ;;  %v2070_v36 = vld [vmem:[%s5816_s3 + $0x58] sm:$0xff]  ;;  %3265 = vmatpush3.msra.mxu0 %v2071_v31  ;;  %v1580_v10 = vmul.f32 %v4645_v11, %v4104_v48  ;;  %3515 = vpow2.f32 %v3072_v29 }
 0x16e   : > { %v1160_v7 = vadd.f32 %v4276_v42, %v1104_v58  ;;  %v1194_v63 = vadd.f32 %v4281_v53, %v1158_v21  ;;  %v1548_v42 = vmul.f32 %v4102_v46, %v4626_v12  ;;  %v1105_v53 = vadd.f32 %v1089_v14, %v1069_v45  ;;  %v3498_v38 = vpop.eup %3497  ;;  %3266 = vmatprep.subr.mxu0 %v4628_v47 }
 0x16f   : > { %v4653_v60 = vadd.f32 %v4162_v50, %v1359_v22  ;;  %v4678_v0 = vpop.f32.mrf.mxu0  ;;  %3267 = vmatpush3.msra.mxu0 %v2070_v36  ;;  %v1308_v21 = vmul.f32 %v4120_v56, %v4665_v52  ;;  %v857_v14 = vadd.f32 1.0, %v3498_v38 }
 0x170   : > { %v1196_v61 = vadd.f32 %v4535_v35, %v1160_v7  ;;  %v1230_v16 = vadd.f32 %v4538_v9, %v1194_v63  ;;  %v1564_v27 = vadd.f32 %v1548_v42, %v1532_v59  ;;  %v4674_v7 = vpop.eup %3499  ;;  %v1161_v30 = vadd.f32 %v4457_v1, %v1105_v53  ;;  %3268 = vmatprep.subr.mxu0 %v4628_v47  ;;  %v2068_v1 = vld [vmem:[%s5816_s3 + $0x48] sm:$0xff] }
 0x171   : > { %5932 = vst [vmem:[#allocation34_spill] sm:$0xff] %v4653_v60  ;;  %v852_v35 = vadd.f32 1.0, %v3496_v44  ;;  %v3502_v9 = vpop.eup %3501  ;;  %v1344_v59 = vmul.f32 %v4124_v57, %v4662_v2  ;;  %3269 = vmatpush3.msra.mxu0 %v2069_v51  ;;  %v1342_v42 = vmul.f32 %v4124_v57, %v4665_v52  ;;  %v711_v38 = vpop.f32.mrf.mxu0 }
 0x172   : > { %v1232_v45 = vadd.f32 %v4519_v6, %v1196_v61  ;;  %v1286_v58 = vadd.f32 %v4584_v28, %v1230_v16  ;;  %v1596_v22 = vadd.f32 %v1580_v10, %v1564_v27  ;;  %v3504_v6 = vpop.eup %3503  ;;  %v1197_v31 = vadd.f32 %v4428_v43, %v1161_v30  ;;  %3270 = vmatprep.subr.mxu0 %v4628_v47  ;;  %v2067_v43 = vld [vmem:[%s5816_s3 + $0x40] sm:$0xff] }
 0x173   : > { %3517 = vrcp.f32 %v852_v35  ;;  %v3506_v44 = vpop.eup %3505  ;;  %v1273_v28 = vmul.f32 %v4108_v49, %v4590_v34  ;;  %v855_v53 = vadd.f32 1.0, %v3502_v9  ;;  %3271 = vmatpush3.msra.mxu0 %v2068_v1  ;;  %v858_v16 = vadd.f32 1.0, %v3504_v6 }
 0x174   : > { %v1288_v29 = vadd.f32 %v4574_v40, %v1232_v45  ;;  %v1322_v63 = vadd.f32 %v4580_v19, %v1286_v58  ;;  %v1648_v36 = vadd.f32 %v4450_v13, %v1596_v22  ;;  %v1233_v61 = vadd.f32 %v4552_v8, %v1197_v31  ;;  %3272 = vmatprep.subr.mxu0 %v4628_v47  ;;  %v2066_v13 = vld [vmem:[%s5816_s3 + $0x38] sm:$0xff]  ;;  %v2065_v45 = vld [vmem:[%s5816_s3 + $0x30] sm:$0xff]  ;;  %v3508_v30 = vpop.eup %3507 }
 0x175   : > { %3519 = vrcp.f32 %v857_v14  ;;  %v1309_v10 = vmul.f32 %v4120_v56, %v4598_v39  ;;  %3273 = vmatpush3.msra.mxu0 %v2067_v43  ;;  %v4721_v35 = vmul.f32 %v4563_v23, %v4290_v33  ;;  %v4732_v58 = vadd.f32 %v4621_v20, %v5914_v26  ;;  %v2064_v33 = vld [vmem:[%s5816_s3 + $0x28] sm:$0xff]  ;;  %v3510_v23 = vpop.eup %3509  ;;  %v2063_v20 = vld [vmem:[%s5816_s3 + $0x20] sm:$0xff] }
 0x176   : > { %v1324_v40 = vadd.f32 %v1308_v21, %v1288_v29  ;;  %3521 = vrcp.f32 %v1436_v37  ;;  %v1358_v34 = vadd.f32 %v1342_v42, %v1322_v63  ;;  %v1680_v19 = vadd.f32 %v4560_v18, %v1648_v36  ;;  %3274 = vmatprep.subr.mxu0 %v4628_v47  ;;  %v3512_v22 = vpop.eup %3511 }
 0x177   : > { %v1289_v8 = vadd.f32 %v1273_v28, %v1233_v61  ;;  %3523 = vrcp.f32 %v855_v53  ;;  %v1748_v37 = vmul.f32 %v4108_v49, %v4598_v39  ;;  %5933 = vst [vmem:[#allocation35_spill] sm:$0xff] %v4721_v35  ;;  %3275 = vmatpush3.msra.mxu0 %v2066_v13  ;;  %v4740_v21 = vmul.f32 %v4557_v32, %v4253_v41 }
 0x178   : > { %v1360_v27 = vadd.f32 %v1344_v59, %v1324_v40  ;;  %v4712_v51 = vadd.f32 %v4162_v50, %v1358_v34  ;;  %v1712_v18 = vadd.f32 %v4549_v62, %v1680_v19  ;;  %3525 = vrcp.f32 %v858_v16  ;;  %v3256_v59 = vpop.f32.mrf.mxu0  ;;  %3276 = vmatprep.subr.mxu0 %v4628_v47  ;;  %v5941_v40 = vld [vmem:[#allocation16_spill] sm:$0xff]  ;;  %v2061_v34 = vld [vmem:[%s5816_s3 + $0x10] sm:$0xff]  ;;  %v5944_v19 = vld [vmem:[#allocation23_spill] sm:$0xff] }
 0x179   : > { %v4726_v39 = vadd.f32 %v1309_v10, %v1289_v8  ;;  %5935 = vst [vmem:[#allocation37_spill] sm:$0xff] %v4740_v21  ;;  %3277 = vmatpush3.msra.mxu0 %v2065_v45  ;;  %v1437_v1 = vadd.f32 1.0, %v4674_v7  ;;  %v3514_v6 = vpop.eup %3513  ;;  %v2020_v29 = vadd.f32 %v4721_v35, %v4740_v21  ;;  %v950_v31 = vmul.f32 %v3512_v22, %v4475_v3  ;;  %v5945_v16 = vld [vmem:[#allocation32_spill] sm:$0xff]  ;;  %v5947_v10 = vld [vmem:[#allocation10_spill] sm:$0xff] }
 0x17a   : > { %v4724_v9 = vadd.f32 %v4162_v50, %v1360_v27  ;;  %v4728_v62 = vadd.f32 %v1748_v37, %v1712_v18  ;;  %3278 = vmatprep.subr.mxu0 %v4628_v47  ;;  %v4752_v41 = vadd.f32 %v4649_v15, %v5914_v26  ;;  %v4756_v32 = vadd.f32 %v4678_v0, %v5914_v26  ;;  %v724_v7 = vpop.f32.mrf.mxu0  ;;  %v3516_v14 = vpop.eup %3515  ;;  %v2062_v15 = vld [vmem:[%s5816_s3 + $0x18] sm:$0xff] }
 0x17b   : > { %3279 = vmatpush3.msra.mxu0 %v2064_v33  ;;  %v4760_v28 = vmul.f32 %v4576_v24, %v4332_v54  ;;  %v1439_v63 = vadd.f32 1.0, %v3506_v44  ;;  %v4763_v42 = vmul.f32 -1.442695, %v4732_v58  ;;  %v4766_v3 = vadd.f32 %v711_v38, %v5914_v26  ;;  %982 = vst [vmem:[#allocation2 + $0x150] sm:$0xff] %v950_v31  ;;  %v5939_v24 = vld [vmem:[#allocation13_spill] sm:$0xff]  ;;  %v2060_v33 = vld [vmem:[%s5816_s3 + $0x8] sm:$0xff] }
 0x17c   : > { %5934 = vst [vmem:[#allocation36_spill] sm:$0xff] %v4724_v9  ;;  %5936 = vst [vmem:[#allocation38_spill] sm:$0xff] %v4756_v32  ;;  %3280 = vmatprep.subr.mxu0 %v4628_v47  ;;  %v4773_v0 = vmul.f32 %v4061_v4, %v950_v31  ;;  %v4776_v54 = vmul.f32 %v4063_v5, %v950_v31  ;;  %v4779_v44 = vmul.f32 %v5939_v24, %v950_v31 }
 0x17d   : > { %5937 = vst [vmem:[#allocation39_spill] sm:$0xff] %v4760_v28  ;;  %5938 = vst [vmem:[#allocation40_spill] sm:$0xff] %v4766_v3  ;;  %v4782_v36 = vadd.f32 %v3256_v59, %v5914_v26  ;;  %3281 = vmatpush3.msra.mxu0 %v2063_v20  ;;  %v4785_v61 = vmul.f32 %v3508_v30, %v5941_v40  ;;  %3527 = vrcp.f32 %v1437_v1  ;;  %v3093_v53 = vmul.f32 -1.442695, %v4643_v17 }
 0x17e   : > { %v4789_v38 = vadd.f32 %v724_v7, %v5914_v26  ;;  %3282 = vmatprep.subr.mxu0 %v4628_v47  ;;  %v4797_v13 = vmul.f32 %v5945_v16, %v5944_v19  ;;  %v4801_v8 = vmul.f32 -1.442695, %v4752_v41  ;;  %v4804_v37 = vmul.f32 -1.442695, %v4756_v32 }
 0x17f   : > { %5940 = vst [vmem:[#allocation13_spill] sm:$0xff] %v4782_v36  ;;  %5942 = vst [vmem:[#allocation16_spill] sm:$0xff] %v4785_v61  ;;  %3283 = vmatpush3.msra.mxu0 %v2062_v15  ;;  %v2021_v45 = vadd.f32 %v2020_v29, %v4760_v28  ;;  %v1438_v30 = vadd.f32 1.0, %v3510_v23  ;;  %v1440_v59 = vadd.f32 1.0, %v3514_v6  ;;  %3529 = vrcp.f32 %v1439_v63  ;;  %v5948_v23 = vld [vmem:[#allocation24_spill] sm:$0xff]  ;;  %v5956_v28 = vld [vmem:[#allocation14_spill] sm:$0xff] }
 0x180   : > { %v3518_v43 = vpop.eup %3517  ;;  %5943 = vst [vmem:[#allocation41_spill] sm:$0xff] %v4789_v38  ;;  %5946 = vst [vmem:[#allocation23_spill] sm:$0xff] %v4797_v13  ;;  %3284 = vmatprep.subr.mxu0 %v4628_v47  ;;  %3531 = vpow2.f32 %v3093_v53  ;;  %v3095_v63 = vmul.f32 -1.442695, %v4653_v60  ;;  %v856_v15 = vadd.f32 1.0, %v3516_v14  ;;  %v5951_v53 = vld [vmem:[#allocation25_spill] sm:$0xff] }
 0x181   : > { %v948_v27 = vmul.f32 %v3518_v43, %v5947_v10  ;;  %3285 = vmatpush3.msra.mxu0 %v2061_v34  ;;  %v2022_v7 = vadd.f32 %v2021_v45, %v4785_v61  ;;  %v2059_v43 = vld [vmem:[%s5816_s3] sm:$0xff]  ;;  %3533 = vrcp.f32 %v1438_v30  ;;  %v4842_v45 = vmul.f32 -1.442695, %v4782_v36 }
 0x182   : > { %v3520_v18 = vpop.eup %3519  ;;  %3286 = vmatprep.subr.mxu0 %v4628_v47  ;;  %v5952_v14 = vld [vmem:[#allocation19_spill] sm:$0xff]  ;;  %3535 = vrcp.f32 %v1440_v59  ;;  %v4851_v30 = vmul.f32 -1.442695, %v4789_v38 }
 0x183   : > { %v3522_v22 = vpop.eup %3521  ;;  %980 = vst [vmem:[#allocation2 + $0x130] sm:$0xff] %v948_v27  ;;  %v4812_v1 = vmul.f32 %v5939_v24, %v948_v27  ;;  %v4815_v20 = vmul.f32 %v4061_v4, %v948_v27  ;;  %v4818_v31 = vmul.f32 %v4063_v5, %v948_v27  ;;  %v953_v6 = vmul.f32 %v3520_v18, %v5948_v23  ;;  %v5953_v23 = vld [vmem:[#allocation17_spill] sm:$0xff] }
 0x184   : > { %v3524_v29 = vpop.eup %3523  ;;  %3287 = vmatpush3.msra.mxu0 %v2060_v33  ;;  %v4839_v18 = vmul.f32 -1.442695, %v4766_v3  ;;  %v4846_v61 = vmul.f32 %v3522_v22, %v5953_v23  ;;  %v2023_v33 = vadd.f32 %v2022_v7, %v4797_v13  ;;  %3537 = vpow2.f32 %v3095_v63 }
 0x185   : > { %v3526_v40 = vpop.eup %3525  ;;  %985 = vst [vmem:[#allocation2 + $0x188] sm:$0xff] %v953_v6  ;;  %v4828_v19 = vmul.f32 %v4061_v4, %v953_v6  ;;  %v4831_v34 = vmul.f32 %v4063_v5, %v953_v6  ;;  %v4834_v16 = vmul.f32 %v5939_v24, %v953_v6  ;;  %v951_v10 = vmul.f32 %v3524_v29, %v5951_v53  ;;  %v5955_v6 = vld [vmem:[#allocation31_spill] sm:$0xff]  ;;  %v5957_v29 = vld [vmem:[#allocation30_spill] sm:$0xff] }
 0x186   : > { %v954_v27 = vmul.f32 %v3526_v40, %v5952_v14  ;;  %3288 = vmatprep.subr.mxu0 %v4628_v47  ;;  %5954 = vst [vmem:[#allocation24_spill] sm:$0xff] %v4846_v61  ;;  %v1034_v35 = vmul.f32 %v5956_v28, %v5955_v6  ;;  %v1054_v40 = vmul.f32 %v4102_v46, %v5957_v29  ;;  %v3094_v53 = vmul.f32 -1.442695, %v4712_v51 }
 0x187   : > { %5949 = vst [vmem:[#allocation32_spill] sm:$0xff] %v4828_v19  ;;  %5950 = vst [vmem:[#allocation10_spill] sm:$0xff] %v4831_v34  ;;  %3289 = vmatpush3.msra.mxu0 %v2059_v43  ;;  %v4859_v59 = vmul.f32 %v4061_v4, %v951_v10  ;;  %v4862_v22 = vmul.f32 %v4063_v5, %v951_v10  ;;  %v4865_v14 = vmul.f32 %v5939_v24, %v951_v10  ;;  %v4881_v34 = vld [vmem:[#allocation2 + $0x14f] sm:$0xff] }
 0x188   : > { %983 = vst [vmem:[#allocation2 + $0x168] sm:$0xff] %v951_v10  ;;  %986 = vst [vmem:[#allocation2 + $0x190] sm:$0xff] %v954_v27  ;;  %3293 = vmatprep.subr.mxu0 %v4628_v47  ;;  %3539 = vrcp.f32 %v856_v15  ;;  %v3096_v7 = vmul.f32 -1.442695, %v4724_v9  ;;  %v4873_v63 = vmul.f32 %v4061_v4, %v954_v27  ;;  %v4876_v6 = vmul.f32 %v4063_v5, %v954_v27 }
 0x189   : > { %5958 = vst [vmem:[#allocation25_spill] sm:$0xff] %v4859_v59  ;;  %v4879_v13 = vmul.f32 %v5939_v24, %v954_v27  ;;  %v1070_v21 = vadd.f32 %v1054_v40, %v1034_v35  ;;  %3541 = vpow2.f32 %v4763_v42  ;;  %v2024_v40 = vadd.f32 %v2023_v33, %v4846_v61  ;;  %v4897_v59 = vld [vmem:[#allocation2 + $0x149] sm:$0xff] }
 0x18a   : > { %v4868_v43 = vld [vmem:[#allocation2 + $0x12f] sm:$0xff]  ;;  %5959 = vst [vmem:[#allocation19_spill] sm:$0xff] %v4873_v63  ;;  %5960 = vst [vmem:[#allocation17_spill] sm:$0xff] %v4876_v6  ;;  %v1310_v63 = vmul.f32 %v4120_v56, %v4662_v2  ;;  %v1533_v6 = vmul.f32 %v5956_v28, %v5957_v29  ;;  %3543 = vpow2.f32 %v3094_v53  ;;  %v3528_v27 = vpop.eup %3527  ;;  %v1749_v19 = vmul.f32 %v4108_v49, %v4662_v2 }
 0x18b   : > { %v4870_v23 = vld [vmem:[#allocation2 + $0x129] sm:$0xff]  ;;  %v1090_v15 = vmul.f32 %v4104_v48, %v4868_v43  ;;  %v1549_v35 = vmul.f32 %v4102_v46, %v4868_v43  ;;  %3545 = vpow2.f32 %v3096_v7  ;;  %v1581_v36 = vmul.f32 %v4881_v34, %v4104_v48 }
 0x18c   : > { %v1345_v10 = vmul.f32 %v4124_v57, %v4870_v23  ;;  %v1780_v53 = vmul.f32 %v4120_v56, %v4870_v23  ;;  %v4904_v3 = vpop.eup %3529  ;;  %v1534_v33 = vmul.f32 %v5956_v28, %v4626_v12  ;;  %v5961_v61 = vld [vmem:[#allocation20_spill] sm:$0xff]  ;;  %3547 = vpow2.f32 %v4801_v8  ;;  %v5965_v8 = vld [vmem:[#allocation18_spill] sm:$0xff] }
 0x18d   : > { %v1106_v38 = vadd.f32 %v1090_v15, %v1070_v21  ;;  %v1565_v29 = vadd.f32 %v1549_v35, %v1533_v6  ;;  %v1812_v6 = vmul.f32 %v4897_v59, %v4124_v57  ;;  %v3532_v35 = vpop.eup %3531  ;;  %v1274_v12 = vmul.f32 %v4108_v49, %v4665_v52 }
 0x18e   : > { %v1361_v42 = vadd.f32 %v1345_v10, %v4726_v39  ;;  %v5963_v39 = vld [vmem:[#allocation21_spill] sm:$0xff]  ;;  %v1796_v10 = vadd.f32 %v1780_v53, %v4728_v62  ;;  %v3534_v52 = vpop.eup %3533  ;;  %3549 = vpow2.f32 %v4804_v37 }
 0x18f   : > { %v1162_v2 = vadd.f32 %v5961_v61, %v1106_v38  ;;  %v4912_v21 = vld [vmem:[#allocation2 + $0x167] sm:$0xff]  ;;  %v4916_v7 = vmul.f32 %v3528_v27, %v5963_v39  ;;  %v1597_v15 = vadd.f32 %v1581_v36, %v1565_v29  ;;  %v1536_v61 = vmul.f32 %v4645_v11, %v5956_v28  ;;  %v5966_v36 = vld [vmem:[#allocation26_spill] sm:$0xff] }
 0x190   : > { %v4910_v9 = vadd.f32 %v4162_v50, %v1361_v42  ;;  %v1550_v38 = vmul.f32 %v4645_v11, %v4102_v46  ;;  %v4928_v27 = vld [vmem:[#allocation2 + $0x187] sm:$0xff]  ;;  %v1828_v62 = vadd.f32 %v1812_v6, %v1796_v10  ;;  %v1552_v53 = vmul.f32 %v4912_v21, %v4102_v46 }
 0x191   : > { %5964 = vst [vmem:[#allocation14_spill] sm:$0xff] %v4916_v7  ;;  %v1198_v42 = vadd.f32 %v5965_v8, %v1162_v2  ;;  %v4931_v39 = vadd.f32 %v2024_v40, %v4916_v7  ;;  %v1649_v29 = vadd.f32 %v5966_v36, %v1597_v15  ;;  %v1582_v11 = vmul.f32 %v4912_v21, %v4104_v48  ;;  %v4940_v2 = vpop.eup %3535  ;;  %v4942_v8 = vld [vmem:[#allocation2 + $0x131] sm:$0xff]  ;;  %v5968_v36 = vld [vmem:[#allocation15_spill] sm:$0xff] }
 0x192   : > { %5962 = vst [vmem:[#allocation31_spill] sm:$0xff] %v4910_v9  ;;  %v1566_v32 = vadd.f32 %v1550_v38, %v1534_v33  ;;  %v4946_v6 = vadd.f32 %v1828_v62, %v4162_v50  ;;  %v1584_v15 = vmul.f32 %v4928_v27, %v4104_v48  ;;  %v1568_v33 = vadd.f32 %v1552_v53, %v1536_v61  ;;  %v3538_v10 = vpop.eup %3537 }
 0x193   : > { %v1234_v60 = vadd.f32 %v4812_v1, %v1198_v42  ;;  %v1681_v40 = vadd.f32 %v4818_v31, %v1649_v29  ;;  %v1441_v1 = vadd.f32 1.0, %v3532_v35  ;;  %3551 = vpow2.f32 %v4839_v18  ;;  %v4956_v29 = vld [vmem:[#allocation2 + $0x151] sm:$0xff] }
 0x194   : > { %5967 = vst [vmem:[#allocation30_spill] sm:$0xff] %v4946_v6  ;;  %v1598_v42 = vadd.f32 %v1582_v11, %v1566_v32  ;;  %v4952_v7 = vmul.f32 %v3534_v52, %v5968_v36  ;;  %v1600_v31 = vadd.f32 %v1584_v15, %v1568_v33  ;;  %3553 = vpow2.f32 %v4842_v45  ;;  %v5970_v35 = vld [vmem:[#allocation29_spill] sm:$0xff] }
 0x195   : > { %v1290_v38 = vadd.f32 %v1274_v12, %v1234_v60  ;;  %v3540_v37 = vpop.eup %3539  ;;  %v1713_v47 = vadd.f32 %v4779_v44, %v1681_v40  ;;  %v1346_v61 = vmul.f32 %v4124_v57, %v4942_v8  ;;  %3555 = vpow2.f32 %v4851_v30  ;;  %v5971_v44 = vld [vmem:[#allocation27_spill] sm:$0xff]  ;;  %v5972_v40 = vld [vmem:[#allocation28_spill] sm:$0xff] }
 0x196   : > { %5969 = vst [vmem:[#allocation20_spill] sm:$0xff] %v4952_v7  ;;  %v1650_v60 = vadd.f32 %v5970_v35, %v1598_v42  ;;  %v3542_v32 = vpop.eup %3541  ;;  %v1443_v18 = vadd.f32 1.0, %v3538_v10  ;;  %v1781_v53 = vmul.f32 %v4120_v56, %v4942_v8  ;;  %v1652_v52 = vadd.f32 %v5971_v44, %v1600_v31 }
 0x197   : > { %v1326_v62 = vadd.f32 %v1310_v63, %v1290_v38  ;;  %v1765_v12 = vadd.f32 %v1749_v19, %v1713_v47  ;;  %v3544_v11 = vpop.eup %3543  ;;  %3557 = vrcp.f32 %v1441_v1  ;;  %v1752_v45 = vmul.f32 %v4897_v59, %v4108_v49 }
 0x198   : > { %v1682_v15 = vadd.f32 %v5972_v40, %v1650_v60  ;;  %v1813_v33 = vmul.f32 %v4956_v29, %v4124_v57  ;;  %v1684_v10 = vadd.f32 %v4862_v22, %v1652_v52  ;;  %v4972_v47 = vmul.f32 %v3540_v37, %v4607_v25  ;;  %v3546_v19 = vpop.eup %3545 }
 0x199   : > { %v1362_v63 = vadd.f32 %v1346_v61, %v1326_v62  ;;  %v1797_v30 = vadd.f32 %v1781_v53, %v1765_v12  ;;  %v1750_v1 = vmul.f32 %v4108_v49, %v4870_v23  ;;  %v861_v36 = vadd.f32 1.0, %v3542_v32  ;;  %v3548_v31 = vpop.eup %3547 }
 0x19a   : > { %v1714_v42 = vadd.f32 %v4865_v14, %v1682_v15  ;;  %v1442_v62 = vadd.f32 1.0, %v3544_v11  ;;  %v1716_v35 = vadd.f32 %v4834_v16, %v1684_v10  ;;  %984 = vst [vmem:[#allocation2 + $0x170] sm:$0xff] %v4972_v47  ;;  %v4984_v25 = vmul.f32 %v4061_v4, %v4972_v47  ;;  %v5001_v11 = vld [vmem:[#allocation2 + $0x18f] sm:$0xff] }
 0x19b   : > { %v4975_v38 = vadd.f32 %v4162_v50, %v1362_v63  ;;  %v1829_v61 = vadd.f32 %v1813_v33, %v1797_v30  ;;  %3559 = vrcp.f32 %v1443_v18  ;;  %v1782_v22 = vmul.f32 %v4897_v59, %v4120_v56  ;;  %v3550_v44 = vpop.eup %3549  ;;  %v5011_v10 = vld [vmem:[#allocation2 + $0x189] sm:$0xff] }
 0x19c   : > { %v1766_v37 = vadd.f32 %v1750_v1, %v1714_v42  ;;  %v4990_v14 = vmul.f32 %v4063_v5, %v4972_v47  ;;  %v1444_v23 = vadd.f32 1.0, %v3546_v19  ;;  %v1768_v16 = vadd.f32 %v1752_v45, %v1716_v35  ;;  %v5974_v45 = vld [vmem:[#allocation22_spill] sm:$0xff] }
 0x19d   : > { %5973 = vst [vmem:[#allocation21_spill] sm:$0xff] %v4975_v38  ;;  %v4993_v60 = vadd.f32 %v1829_v61, %v4162_v50  ;;  %3561 = vrcp.f32 %v861_v36  ;;  %v3097_v32 = vmul.f32 -1.442695, %v4910_v9  ;;  %v1535_v12 = vmul.f32 %v5956_v28, %v4868_v43 }
 0x19e   : > { %v1798_v18 = vadd.f32 %v1782_v22, %v1766_v37  ;;  %v859_v53 = vadd.f32 1.0, %v3548_v31  ;;  %3563 = vrcp.f32 %v1442_v62  ;;  %v1551_v59 = vmul.f32 %v4881_v34, %v4102_v46 }
 0x19f   : > { %v3099_v52 = vmul.f32 -1.442695, %v4946_v6  ;;  %v5005_v40 = vmul.f32 %v4904_v3, %v5974_v45  ;;  %v2026_v43 = vadd.f32 %v4931_v39, %v4952_v7  ;;  %v1537_v33 = vmul.f32 %v4881_v34, %v5956_v28  ;;  %v3257_v6 = vpop.f32.mrf.mxu0 }
 0x1a0   : > { %3565 = vrcp.f32 %v859_v53  ;;  %v3552_v63 = vpop.eup %3551  ;;  %v1567_v30 = vadd.f32 %v1551_v59, %v1535_v12  ;;  %v862_v42 = vadd.f32 1.0, %v3550_v44  ;;  %v3098_v3 = vmul.f32 -1.442695, %v4975_v38 }
 0x1a1   : > { %5975 = vst [vmem:[#allocation18_spill] sm:$0xff] %v5005_v40  ;;  %3567 = vrcp.f32 %v1444_v23  ;;  %v3554_v15 = vpop.eup %3553  ;;  %v5013_v19 = vld [vmem:[#allocation2 + $0x16f] sm:$0xff]  ;;  %v1585_v39 = vmul.f32 %v5001_v11, %v4104_v48  ;;  %v860_v35 = vadd.f32 1.0, %v3552_v63  ;;  %v1816_v37 = vmul.f32 %v5011_v10, %v4124_v57 }
 0x1a2   : > { %3569 = vpow2.f32 %v3097_v32  ;;  %v5015_v1 = vld [vmem:[#allocation2 + $0x169] sm:$0xff]  ;;  %v3556_v36 = vpop.eup %3555  ;;  %v1553_v31 = vmul.f32 %v5013_v19, %v4102_v46  ;;  %v1583_v34 = vmul.f32 %v5013_v19, %v4104_v48  ;;  %v865_v12 = vadd.f32 1.0, %v3554_v15 }
 0x1a3   : > { %3571 = vpow2.f32 %v3099_v52  ;;  %v1784_v62 = vmul.f32 %v5015_v1, %v4120_v56  ;;  %v1814_v61 = vmul.f32 %v5015_v1, %v4124_v57  ;;  %v863_v59 = vadd.f32 1.0, %v3556_v36 }
 0x1a4   : > { %v3558_v22 = vpop.eup %3557  ;;  %v1569_v23 = vadd.f32 %v1553_v31, %v1537_v33  ;;  %v1599_v32 = vadd.f32 %v1583_v34, %v1567_v30  ;;  %3573 = vrcp.f32 %v862_v42  ;;  %v2027_v52 = vadd.f32 %v2026_v43, %v5005_v40 }
 0x1a5   : > { %v1800_v53 = vadd.f32 %v1784_v62, %v1768_v16  ;;  %v1830_v44 = vadd.f32 %v1814_v61, %v1798_v18  ;;  %3575 = vpow2.f32 %v3098_v3  ;;  %v3100_v63 = vmul.f32 -1.442695, %v4993_v60  ;;  %v1737_v62 = vld [vmem:[#allocation2 + $0x191] sm:$0xff] }
 0x1a6   : > { %v1601_v45 = vadd.f32 %v1585_v39, %v1569_v23  ;;  %v1651_v7 = vadd.f32 %v4815_v20, %v1599_v32  ;;  %3577 = vrcp.f32 %v860_v35  ;;  %v1699_v43 = vmul.f32 %v5939_v24, %v4972_v47  ;;  %v1530_v32 = vld [vmem:[#allocation2 + $0x227] sm:$0xff] }
 0x1a7   : > { %v1832_v38 = vadd.f32 %v1816_v37, %v1800_v53  ;;  %v5034_v9 = vadd.f32 %v1830_v44, %v4162_v50  ;;  %3579 = vrcp.f32 %v865_v12  ;;  %v5042_v20 = vmul.f32 %v4940_v2, %v4467_v55  ;;  %v5054_v55 = vld [vmem:[#allocation2 + $0x171] sm:$0xff] }
 0x1a8   : > { %v3560_v33 = vpop.eup %3559  ;;  %v1653_v16 = vadd.f32 %v4773_v0, %v1601_v45  ;;  %v1683_v18 = vadd.f32 %v4776_v54, %v1651_v7  ;;  %3581 = vrcp.f32 %v863_v59  ;;  %v1751_v42 = vmul.f32 %v4108_v49, %v4942_v8  ;;  %v727_v7 = vpop.f32.mrf.mxu0 }
 0x1a9   : > { %5976 = vst [vmem:[#allocation26_spill] sm:$0xff] %v5034_v9  ;;  %5977 = vst [vmem:[#allocation15_spill] sm:$0xff] %v5042_v20  ;;  %v5045_v30 = vadd.f32 %v1832_v38, %v4162_v50  ;;  %v2028_v3 = vadd.f32 %v2027_v52, %v5042_v20  ;;  %3583 = vpow2.f32 %v3100_v63  ;;  %v5057_v2 = vadd.f32 %v3257_v6, %v5914_v26 }
 0x1aa   : > { %v3562_v15 = vpop.eup %3561  ;;  %v1685_v0 = vadd.f32 %v4990_v14, %v1653_v16  ;;  %v1715_v36 = vadd.f32 %v1699_v43, %v1683_v18  ;;  %v1753_v8 = vmul.f32 %v4956_v29, %v4108_v49  ;;  %v1783_v14 = vmul.f32 %v4956_v29, %v4120_v56  ;;  %v5982_v43 = vld [vmem:[#allocation34_spill] sm:$0xff] }
 0x1ab   : > { %5978 = vst [vmem:[#allocation29_spill] sm:$0xff] %v5045_v30  ;;  %v5051_v54 = vmul.f32 %v3562_v15, %v4732_v58  ;;  %v3564_v47 = vpop.eup %3563  ;;  %v5066_v34 = vmul.f32 %v3558_v22, %v4643_v17  ;;  %v5072_v61 = vadd.f32 %v727_v7, %v5914_v26  ;;  %v1785_v29 = vmul.f32 %v5054_v55, %v4120_v56 }
 0x1ac   : > { %v1717_v58 = vadd.f32 %v4879_v13, %v1685_v0  ;;  %v1767_v39 = vadd.f32 %v1751_v42, %v1715_v36  ;;  %v1815_v23 = vmul.f32 %v5054_v55, %v4124_v57  ;;  %v1538_v22 = vmul.f32 %v4912_v21, %v5956_v28  ;;  %v5981_v21 = vld [vmem:[#allocation33_spill] sm:$0xff] }
 0x1ad   : > { %v3566_v38 = vpop.eup %3565  ;;  %989 = vst [vmem:[#allocation2 + $0x1c8] sm:$0xff] %v5051_v54  ;;  %5979 = vst [vmem:[#allocation27_spill] sm:$0xff] %v5066_v34  ;;  %v2029_v17 = vadd.f32 %v2028_v3, %v5066_v34  ;;  %v3082_v26 = vmul.f32 -1.442695, %v5057_v2  ;;  %v5084_v12 = vmul.f32 %v3564_v47, %v4712_v51  ;;  %v1817_v53 = vmul.f32 %v1737_v62, %v4124_v57 }
 0x1ae   : > { %v3568_v31 = vpop.eup %3567  ;;  %v5069_v6 = vmul.f32 %v3566_v38, %v4752_v41  ;;  %v1769_v37 = vadd.f32 %v1753_v8, %v1717_v58  ;;  %v1799_v13 = vadd.f32 %v1783_v14, %v1767_v39  ;;  %v1554_v52 = vmul.f32 %v4928_v27, %v4102_v46  ;;  %v5985_v38 = vld [vmem:[#allocation38_spill] sm:$0xff] }
 0x1af   : > { %v3570_v35 = vpop.eup %3569  ;;  %5980 = vst [vmem:[#allocation28_spill] sm:$0xff] %v5084_v12  ;;  %v3080_v45 = vmul.f32 -1.442695, %v5072_v61  ;;  %v5091_v63 = vmul.f32 %v1530_v32, %v4104_v48  ;;  %v5095_v16 = vmul.f32 %v5981_v21, %v5939_v24  ;;  %v5098_v51 = vmul.f32 %v3560_v33, %v5982_v43  ;;  %v5991_v21 = vld [vmem:[#allocation41_spill] sm:$0xff] }
 0x1b0   : > { %987 = vst [vmem:[#allocation2 + $0x1a8] sm:$0xff] %v5069_v6  ;;  %v3572_v41 = vpop.eup %3571  ;;  %v1801_v44 = vadd.f32 %v1785_v29, %v1769_v37  ;;  %v1831_v59 = vadd.f32 %v1815_v23, %v1799_v13  ;;  %v1540_v15 = vmul.f32 %v4928_v27, %v5956_v28  ;;  %v1570_v7 = vadd.f32 %v1554_v52, %v1538_v22  ;;  %v5987_v37 = vld [vmem:[#allocation36_spill] sm:$0xff] }
 0x1b1   : > { %v3574_v18 = vpop.eup %3573  ;;  %5983 = vst [vmem:[#allocation22_spill] sm:$0xff] %v5098_v51  ;;  %v5107_v47 = vmul.f32 %v5001_v11, %v5956_v28  ;;  %v1555_v3 = vmul.f32 %v5001_v11, %v4102_v46  ;;  %v2030_v14 = vadd.f32 %v2029_v17, %v5084_v12  ;;  %v5117_v27 = vmul.f32 %v5011_v10, %v4108_v49 }
 0x1b2   : > { %v1833_v42 = vadd.f32 %v1817_v53, %v1801_v44  ;;  %v5103_v0 = vadd.f32 %v1831_v59, %v4162_v50  ;;  %v3576_v36 = vpop.eup %3575  ;;  %v5112_v8 = vmul.f32 %v3574_v18, %v5985_v38  ;;  %v5120_v58 = vmul.f32 %v1737_v62, %v4108_v49  ;;  %v5988_v44 = vld [vmem:[#allocation40_spill] sm:$0xff]  ;;  %v5990_v59 = vld [vmem:[#allocation13_spill] sm:$0xff] }
 0x1b3   : > { %v3578_v33 = vpop.eup %3577  ;;  %3585 = vpow2.f32 %v3082_v26  ;;  %v5123_v29 = vmul.f32 %v3568_v31, %v5987_v37  ;;  %v1445_v13 = vadd.f32 1.0, %v3570_v35  ;;  %v5127_v11 = vmul.f32 %v5011_v10, %v4120_v56 }
 0x1b4   : > { %5984 = vst [vmem:[#allocation33_spill] sm:$0xff] %v5103_v0  ;;  %5986 = vst [vmem:[#allocation34_spill] sm:$0xff] %v5112_v8  ;;  %v3580_v39 = vpop.eup %3579  ;;  %v5130_v23 = vmul.f32 %v1737_v62, %v4120_v56  ;;  %v1908_v17 = vadd.f32 1.0, %v3572_v41  ;;  %v1524_v22 = vld [vmem:[#allocation2 + $0x1c7] sm:$0xff]  ;;  %v5134_v26 = vmul.f32 %v3578_v33, %v5988_v44  ;;  %v5140_v35 = vadd.f32 %v1833_v42, %v4162_v50 }
 0x1b5   : > { %990 = vst [vmem:[#allocation2 + $0x1d0] sm:$0xff] %v5112_v8  ;;  %v3582_v32 = vpop.eup %3581  ;;  %v5137_v31 = vmul.f32 %v3580_v39, %v5990_v59  ;;  %v3101_v10 = vmul.f32 -1.442695, %v5034_v9  ;;  %v5149_v43 = vadd.f32 %v2030_v14, %v5098_v51  ;;  %v1446_v38 = vadd.f32 1.0, %v3576_v36 }
 0x1b6   : > { %5989 = vst [vmem:[#allocation38_spill] sm:$0xff] %v5134_v26  ;;  %v5146_v18 = vmul.f32 %v3582_v32, %v5991_v21  ;;  %v3584_v41 = vpop.eup %3583  ;;  %v1539_v33 = vmul.f32 %v5013_v19, %v5956_v28  ;;  %988 = vst [vmem:[#allocation2 + $0x1b0] sm:$0xff] %v5134_v26  ;;  %3587 = vpow2.f32 %v3080_v45  ;;  %v1588_v42 = vmul.f32 %v1524_v22, %v4104_v48 }
 0x1b7   : > { %v1522_v53 = vld [vmem:[#allocation2 + $0x1a7] sm:$0xff]  ;;  %993 = vst [vmem:[#allocation2 + $0x208] sm:$0xff] %v5137_v31  ;;  %3589 = vrcp.f32 %v1445_v13  ;;  %v1754_v14 = vmul.f32 %v5015_v1, %v4108_v49  ;;  %v5161_v36 = vmul.f32 %v5054_v55, %v4108_v49  ;;  %v3103_v19 = vmul.f32 -1.442695, %v5045_v30  ;;  %v5992_v13 = vld [vmem:[#allocation25_spill] sm:$0xff] }
 0x1b8   : > { %v1556_v62 = vmul.f32 %v1522_v53, %v4102_v46  ;;  %v1586_v52 = vmul.f32 %v1522_v53, %v4104_v48  ;;  %991 = vst [vmem:[#allocation2 + $0x1e8] sm:$0xff] %v5146_v18  ;;  %3591 = vrcp.f32 %v1908_v17  ;;  %v1909_v32 = vadd.f32 1.0, %v3584_v41  ;;  %v5993_v55 = vld [vmem:[#allocation32_spill] sm:$0xff] }
 0x1b9   : > { %3593 = vpow2.f32 %v3101_v10  ;;  %v1672_v1 = vmul.f32 %v4063_v5, %v5069_v6  ;;  %v3102_v17 = vmul.f32 -1.442695, %v5103_v0  ;;  %v1702_v10 = vmul.f32 %v5939_v24, %v5069_v6 }
 0x1ba   : > { %v1572_v39 = vadd.f32 %v1556_v62, %v1540_v15  ;;  %v1602_v37 = vadd.f32 %v1586_v52, %v1570_v7  ;;  %3595 = vrcp.f32 %v1446_v38  ;;  %v1571_v15 = vadd.f32 %v1555_v3, %v1539_v33  ;;  %v5994_v62 = vld [vmem:[#allocation10_spill] sm:$0xff] }
 0x1bb   : > { %v5167_v7 = vmul.f32 %v4061_v4, %v5051_v54  ;;  %3597 = vpow2.f32 %v3103_v19  ;;  %v5178_v3 = vmul.f32 %v4063_v5, %v5051_v54  ;;  %v1704_v21 = vmul.f32 %v5939_v24, %v5051_v54 }
 0x1bc   : > { %v1604_v45 = vadd.f32 %v1588_v42, %v1572_v39  ;;  %v1654_v44 = vadd.f32 %v5992_v13, %v1602_v37  ;;  %v5184_v41 = vmul.f32 %v4061_v4, %v5069_v6  ;;  %3599 = vrcp.f32 %v1909_v32  ;;  %v5187_v39 = vld [vmem:[#allocation2 + $0x1cf] sm:$0xff] }
 0x1bd   : > { %v1544_v38 = vmul.f32 %v1524_v22, %v5956_v28  ;;  %5995 = vst [vmem:[#allocation36_spill] sm:$0xff] %v5187_v39  ;;  %v5189_v37 = vld [vmem:[#allocation2 + $0x1af] sm:$0xff]  ;;  %v1558_v19 = vmul.f32 %v1524_v22, %v4102_v46  ;;  %v1705_v54 = vmul.f32 %v5939_v24, %v5112_v8  ;;  %3601 = vpow2.f32 %v3102_v17 }
 0x1be   : > { %v1656_v59 = vadd.f32 %v5993_v55, %v1604_v45  ;;  %v1686_v52 = vadd.f32 %v5994_v62, %v1654_v44  ;;  %v1542_v45 = vmul.f32 %v1522_v53, %v5956_v28  ;;  %v1557_v6 = vmul.f32 %v5189_v37, %v4102_v46  ;;  %v5197_v13 = vld [vmem:[#allocation2 + $0x1a9] sm:$0xff] }
 0x1bf   : > { %v1587_v55 = vmul.f32 %v5189_v37, %v4104_v48  ;;  %v1589_v22 = vmul.f32 %v5187_v39, %v4104_v48  ;;  %v1703_v62 = vmul.f32 %v5939_v24, %v5134_v26  ;;  %v1528_v17 = vld [vmem:[#allocation2 + $0x207] sm:$0xff] }
 0x1c0   : > { %v1688_v33 = vadd.f32 %v1672_v1, %v1656_v59  ;;  %v1718_v42 = vadd.f32 %v1702_v10, %v1686_v52  ;;  %v3586_v32 = vpop.eup %3585  ;;  %v1573_v53 = vadd.f32 %v1557_v6, %v5107_v47  ;;  %v1673_v59 = vmul.f32 %v4063_v5, %v5134_v26  ;;  %v1526_v6 = vld [vmem:[#allocation2 + $0x1e7] sm:$0xff] }
 0x1c1   : > { %v1603_v52 = vadd.f32 %v1587_v55, %v1571_v15  ;;  %v866_v51 = vadd.f32 1.0, %v3586_v32  ;;  %v1676_v15 = vmul.f32 %v4063_v5, %v5146_v18  ;;  %v5996_v55 = vld [vmem:[#allocation19_spill] sm:$0xff]  ;;  %v1592_v26 = vmul.f32 %v1528_v17, %v4104_v48 }
 0x1c2   : > { %v1720_v44 = vadd.f32 %v1704_v21, %v1688_v33  ;;  %v1770_v1 = vadd.f32 %v1754_v14, %v1718_v42  ;;  %v1788_v14 = vmul.f32 %v5197_v13, %v4120_v56  ;;  %v1678_v21 = vmul.f32 %v4063_v5, %v5137_v31 }
 0x1c3   : > { %v1574_v33 = vadd.f32 %v1558_v19, %v1542_v45  ;;  %v1605_v42 = vadd.f32 %v1589_v22, %v1573_v53  ;;  %v3588_v12 = vpop.eup %3587  ;;  %v1655_v34 = vadd.f32 %v4984_v25, %v1603_v52  ;;  %v1818_v19 = vmul.f32 %v5197_v13, %v4124_v57  ;;  %v1740_v25 = vld [vmem:[#allocation2 + $0x1c9] sm:$0xff] }
 0x1c4   : > { %v1772_v10 = vadd.f32 %v5117_v27, %v1720_v44  ;;  %v1802_v47 = vadd.f32 %v5127_v11, %v1770_v1  ;;  %v1646_v27 = vmul.f32 %v4061_v4, %v5146_v18  ;;  %v3590_v44 = vpop.eup %3589  ;;  %v1562_v11 = vmul.f32 %v1528_v17, %v4102_v46  ;;  %v5997_v1 = vld [vmem:[#allocation17_spill] sm:$0xff] }
 0x1c5   : > { %v1657_v40 = vadd.f32 %v5996_v55, %v1605_v42  ;;  %v1706_v45 = vmul.f32 %v5939_v24, %v5146_v18  ;;  %v5225_v32 = vpop.eup %3591  ;;  %v1687_v22 = vadd.f32 %v5997_v1, %v1655_v34  ;;  %v1546_v53 = vmul.f32 %v1526_v6, %v5956_v28  ;;  %v5231_v55 = vld [vmem:[#allocation2 + $0x1b1] sm:$0xff] }
 0x1c6   : > { %v1804_v20 = vadd.f32 %v1788_v14, %v1772_v10  ;;  %v1560_v52 = vmul.f32 %v1526_v6, %v4102_v46  ;;  %v1590_v10 = vmul.f32 %v1526_v6, %v4104_v48  ;;  %v3594_v14 = vpop.eup %3593  ;;  %v1834_v30 = vadd.f32 %v1818_v19, %v1802_v47  ;;  %v5235_v6 = vld [vmem:[#allocation2 + $0x1d1] sm:$0xff] }
 0x1c7   : > { %v1689_v42 = vadd.f32 %v1673_v59, %v1657_v40  ;;  %3603 = vrcp.f32 %v866_v51  ;;  %v864_v0 = vadd.f32 1.0, %v3588_v12  ;;  %v3596_v9 = vpop.eup %3595  ;;  %v1719_v18 = vadd.f32 %v1703_v62, %v1687_v22 }
 0x1c8   : > { %v1576_v5 = vadd.f32 %v1560_v52, %v1544_v38  ;;  %v1578_v4 = vadd.f32 %v1562_v11, %v1546_v53  ;;  %v1820_v34 = vmul.f32 %v1740_v25, %v4124_v57  ;;  %v1606_v8 = vadd.f32 %v1590_v10, %v1574_v33  ;;  %v3598_v39 = vpop.eup %3597 }
 0x1c9   : > { %v1721_v1 = vadd.f32 %v1705_v54, %v1689_v42  ;;  %3605 = vrcp.f32 %v864_v0  ;;  %v1771_v40 = vadd.f32 %v5161_v36, %v1719_v18  ;;  %v1789_v51 = vmul.f32 %v5231_v55, %v4120_v56  ;;  %v3600_v62 = vpop.eup %3599  ;;  %v5999_v42 = vld [vmem:[#allocation21_spill] sm:$0xff] }
 0x1ca   : > { %v1608_v12 = vadd.f32 %v1592_v26, %v1576_v5  ;;  %v1610_v59 = vadd.f32 %v5091_v63, %v1578_v4  ;;  %v1658_v38 = vadd.f32 %v5184_v41, %v1606_v8  ;;  %v1836_v47 = vadd.f32 %v1820_v34, %v1804_v20  ;;  %v3602_v5 = vpop.eup %3601 }
 0x1cb   : > { %v1773_v17 = vadd.f32 %v5120_v58, %v1721_v1  ;;  %v5244_v54 = vadd.f32 %v1834_v30, %v4162_v50  ;;  %v1803_v0 = vadd.f32 %v5130_v23, %v1771_v40  ;;  %v1819_v36 = vmul.f32 %v5231_v55, %v4124_v57 }
 0x1cc   : > { %v1660_v33 = vadd.f32 %v5167_v7, %v1608_v12  ;;  %v1662_v19 = vadd.f32 %v1646_v27, %v1610_v59  ;;  %v1821_v4 = vmul.f32 %v5235_v6, %v4124_v57  ;;  %v1690_v63 = vadd.f32 %v5178_v3, %v1658_v38  ;;  %v1531_v38 = vld [vmem:[#allocation2 + $0x22f] sm:$0xff] }
 0x1cd   : > { %v1805_v8 = vadd.f32 %v1789_v51, %v1773_v17  ;;  %v5254_v20 = vadd.f32 %v1836_v47, %v4162_v50  ;;  %v1835_v30 = vadd.f32 %v1819_v36, %v1803_v0  ;;  %v1708_v58 = vmul.f32 %v5939_v24, %v5137_v31  ;;  %v5998_v31 = vld [vmem:[#allocation31_spill] sm:$0xff]  ;;  %v6000_v47 = vld [vmem:[#allocation30_spill] sm:$0xff] }
 0x1ce   : > { %v1692_v23 = vadd.f32 %v1676_v15, %v1660_v33  ;;  %v1694_v26 = vadd.f32 %v1678_v21, %v1662_v19  ;;  %v2032_v7 = vadd.f32 %v5149_v43, %v5123_v29  ;;  %v1758_v41 = vmul.f32 %v5197_v13, %v4108_v49  ;;  %v1747_v36 = vld [vmem:[#allocation2 + $0x231] sm:$0xff] }
 0x1cf   : > { %v1722_v27 = vadd.f32 %v1706_v45, %v1690_v63  ;;  %v1837_v11 = vadd.f32 %v1821_v4, %v1805_v8  ;;  %v1760_v53 = vmul.f32 %v1740_v25, %v4108_v49  ;;  %v5267_v52 = vadd.f32 %v1835_v30, %v4162_v50  ;;  %v6001_v30 = vld [vmem:[#allocation36_spill] sm:$0xff] }
 0x1d0   : > { %v1724_v22 = vadd.f32 %v1708_v58, %v1692_v23  ;;  %v5263_v3 = vadd.f32 %v5095_v16, %v1694_v26  ;;  %v5270_v15 = vmul.f32 %v3590_v44, %v5998_v31  ;;  %v1790_v21 = vmul.f32 %v1740_v25, %v4120_v56  ;;  %v6002_v23 = vld [vmem:[#allocation34_spill] sm:$0xff]  ;;  %v6003_v26 = vld [vmem:[#allocation11_spill] sm:$0xff] }
 0x1d1   : > { %v1774_v43 = vadd.f32 %v1758_v41, %v1722_v27  ;;  %v5274_v10 = vadd.f32 %v1837_v11, %v4162_v50  ;;  %v3104_v45 = vmul.f32 -1.442695, %v5140_v35  ;;  %v5280_v18 = vmul.f32 %v3596_v9, %v5999_v42  ;;  %v6004_v41 = vld [vmem:[#allocation12_spill] sm:$0xff]  ;;  %v6005_v11 = vld [vmem:[#allocation38_spill] sm:$0xff] }
 0x1d2   : > { %v5276_v13 = vadd.f32 %v1760_v53, %v1724_v22  ;;  %v2033_v34 = vadd.f32 %v2032_v7, %v5270_v15  ;;  %v3105_v51 = vmul.f32 -1.442695, %v5244_v54  ;;  %v1910_v59 = vadd.f32 1.0, %v3594_v14 }
 0x1d3   : > { %v5283_v1 = vadd.f32 %v1790_v21, %v1774_v43  ;;  %3607 = vpow2.f32 %v3104_v45  ;;  %v1912_v17 = vadd.f32 1.0, %v3598_v39  ;;  %v5294_v0 = vmul.f32 %v5225_v32, %v6000_v47 }
 0x1d4   : > { %v3604_v40 = vpop.eup %3603  ;;  %v2034_v12 = vadd.f32 %v2033_v34, %v5280_v18  ;;  %v3106_v33 = vmul.f32 -1.442695, %v5267_v52  ;;  %v1911_v19 = vadd.f32 1.0, %v3602_v5  ;;  %v1595_v4 = vmul.f32 %v1531_v38, %v4104_v48 }
 0x1d5   : > { %v5286_v44 = vmul.f32 %v3604_v40, %v5057_v2  ;;  %v1746_v2 = vld [vmem:[#allocation2 + $0x229] sm:$0xff]  ;;  %3609 = vpow2.f32 %v3105_v51  ;;  %v3107_v39 = vmul.f32 -1.442695, %v5254_v20  ;;  %v5304_v63 = vmul.f32 %v1747_v36, %v4124_v57 }
 0x1d6   : > { %v3606_v25 = vpop.eup %3605  ;;  %v2035_v14 = vadd.f32 %v2034_v12, %v5294_v0  ;;  %3611 = vrcp.f32 %v1910_v59  ;;  %v1826_v32 = vmul.f32 %v1746_v2, %v4124_v57  ;;  %v3108_v8 = vmul.f32 -1.442695, %v5274_v10 }
 0x1d7   : > { %994 = vst [vmem:[#allocation2 + $0x210] sm:$0xff] %v5286_v44  ;;  %v960_v9 = vmul.f32 %v3606_v25, %v5072_v61  ;;  %v1543_v61 = vmul.f32 %v5189_v37, %v5956_v28  ;;  %3613 = vrcp.f32 %v1912_v17  ;;  %v5308_v5 = vmul.f32 %v3600_v62, %v4993_v60 }
 0x1d8   : > { %v1559_v58 = vmul.f32 %v6001_v30, %v4102_v46  ;;  %v1645_v7 = vmul.f32 %v6003_v26, %v6002_v23  ;;  %3615 = vpow2.f32 %v3106_v33  ;;  %v1545_v37 = vmul.f32 %v6001_v30, %v5956_v28 }
 0x1d9   : > { %992 = vst [vmem:[#allocation2 + $0x1f0] sm:$0xff] %v960_v9  ;;  %3617 = vrcp.f32 %v1911_v19  ;;  %v1675_v27 = vmul.f32 %v6004_v41, %v6002_v23  ;;  %v1643_v22 = vmul.f32 %v6003_v26, %v6005_v11  ;;  %v5321_v60 = vadd.f32 %v2035_v14, %v5308_v5 }
 0x1da   : > { %v1575_v62 = vadd.f32 %v1559_v58, %v1543_v61  ;;  %v1759_v31 = vmul.f32 %v5231_v55, %v4108_v49  ;;  %3619 = vpow2.f32 %v3107_v39  ;;  %v1677_v42 = vmul.f32 %v6004_v41, %v960_v9 }
 0x1db   : > { %v1679_v34 = vmul.f32 %v6004_v41, %v5286_v44  ;;  %3621 = vpow2.f32 %v3108_v8  ;;  %v1707_v23 = vmul.f32 %v5939_v24, %v960_v9 }
 0x1de   : > { %v1529_v53 = vld [vmem:[#allocation2 + $0x20f] sm:$0xff] }
 0x1df   : > { %v1744_v21 = vld [vmem:[#allocation2 + $0x209] sm:$0xff]  ;;  %v1563_v43 = vmul.f32 %v1529_v53, %v4102_v46  ;;  %v1593_v59 = vmul.f32 %v1529_v53, %v4104_v48 }
 0x1e0   : > { %v1527_v45 = vld [vmem:[#allocation2 + $0x1ef] sm:$0xff]  ;;  %v1794_v17 = vmul.f32 %v1744_v21, %v4120_v56  ;;  %v3608_v2 = vpop.eup %3607  ;;  %v1824_v61 = vmul.f32 %v1744_v21, %v4124_v57 }
 0x1e1   : > { %v1742_v40 = vld [vmem:[#allocation2 + $0x1e9] sm:$0xff]  ;;  %v1547_v25 = vmul.f32 %v1527_v45, %v5956_v28  ;;  %v1561_v51 = vmul.f32 %v1527_v45, %v4102_v46  ;;  %v1591_v12 = vmul.f32 %v1527_v45, %v4104_v48  ;;  %v1647_v46 = vmul.f32 %v6003_v26, %v960_v9 }
 0x1e2   : > { %v1762_v55 = vmul.f32 %v1742_v40, %v4108_v49  ;;  %v1792_v38 = vmul.f32 %v1742_v40, %v4120_v56  ;;  %v1822_v47 = vmul.f32 %v1742_v40, %v4124_v57  ;;  %v1913_v11 = vadd.f32 1.0, %v3608_v2 }
 0x1e3   : > { %v1577_v36 = vadd.f32 %v1561_v51, %v1545_v37  ;;  %v1607_v33 = vadd.f32 %v1591_v12, %v1575_v62  ;;  %v1579_v19 = vadd.f32 %v1563_v43, %v1547_v25  ;;  %v1745_v51 = vld [vmem:[#allocation2 + $0x211] sm:$0xff] }
 0x1e4   : > { %v1778_v28 = vadd.f32 %v1762_v55, %v5263_v3  ;;  %v1808_v14 = vadd.f32 %v1792_v38, %v5276_v13  ;;  %v1838_v48 = vadd.f32 %v1822_v47, %v5283_v1  ;;  %v3610_v3 = vpop.eup %3609  ;;  %v1743_v13 = vld [vmem:[#allocation2 + $0x1f1] sm:$0xff]  ;;  %v1709_v1 = vmul.f32 %v5939_v24, %v5286_v44 }
 0x1e5   : > { %v1659_v39 = vadd.f32 %v1643_v22, %v1607_v33  ;;  %v1609_v8 = vadd.f32 %v1593_v59, %v1577_v36  ;;  %v1611_v30 = vadd.f32 %v1595_v4, %v1579_v19  ;;  %v3612_v21 = vpop.eup %3611  ;;  %v1761_v4 = vmul.f32 %v5235_v6, %v4108_v49 }
 0x1e6   : > { %v1810_v58 = vadd.f32 %v1794_v17, %v1778_v28  ;;  %v1840_v41 = vadd.f32 %v1824_v61, %v1808_v14  ;;  %v5344_v37 = vadd.f32 %v1838_v48, %v4162_v50  ;;  %v3614_v45 = vpop.eup %3613  ;;  %v1763_v12 = vmul.f32 %v1743_v13, %v4108_v49 }
 0x1e7   : > { %v1661_v53 = vadd.f32 %v1645_v7, %v1609_v8  ;;  %v1663_v26 = vadd.f32 %v1647_v46, %v1611_v30  ;;  %v1691_v62 = vadd.f32 %v1675_v27, %v1659_v39  ;;  %v1791_v24 = vmul.f32 %v5235_v6, %v4120_v56  ;;  %v6006_v46 = vld [vmem:[#allocation26_spill] sm:$0xff]  ;;  %v6007_v39 = vld [vmem:[#allocation33_spill] sm:$0xff] }
 0x1e8   : > { %v1842_v43 = vadd.f32 %v1826_v32, %v1810_v58  ;;  %v5351_v9 = vadd.f32 %v1840_v41, %v4162_v50  ;;  %v3109_v22 = vmul.f32 -1.442695, %v5344_v37  ;;  %v3616_v32 = vpop.eup %3615  ;;  %v1914_v44 = vadd.f32 1.0, %v3610_v3 }
 0x1e9   : > { %v1693_v40 = vadd.f32 %v1677_v42, %v1661_v53  ;;  %v1695_v25 = vadd.f32 %v1679_v34, %v1663_v26  ;;  %v1723_v7 = vadd.f32 %v1707_v23, %v1691_v62  ;;  %3623 = vrcp.f32 %v1913_v11  ;;  %v3618_v55 = vpop.eup %3617 }
 0x1ea   : > { %v5355_v27 = vadd.f32 %v1842_v43, %v4162_v50  ;;  %3625 = vpow2.f32 %v3109_v22  ;;  %v3620_v42 = vpop.eup %3619  ;;  %v1793_v34 = vmul.f32 %v1743_v13, %v4120_v56  ;;  %v1795_v47 = vmul.f32 %v1745_v51, %v4120_v56 }
 0x1eb   : > { %v1725_v59 = vadd.f32 %v1709_v1, %v1693_v40  ;;  %v1727_v38 = vadd.f32 %v5095_v16, %v1695_v25  ;;  %v1775_v17 = vadd.f32 %v1759_v31, %v1723_v7  ;;  %v1823_v2 = vmul.f32 %v1743_v13, %v4124_v57  ;;  %v3622_v36 = vpop.eup %3621 }
 0x1ec   : > { %v3111_v49 = vmul.f32 -1.442695, %v5351_v9  ;;  %v1915_v28 = vadd.f32 1.0, %v3616_v32  ;;  %v5366_v14 = vmul.f32 %v3612_v21, %v6006_v46  ;;  %v1825_v16 = vmul.f32 %v1745_v51, %v4124_v57 }
 0x1ed   : > { %v1777_v33 = vadd.f32 %v1761_v4, %v1725_v59  ;;  %v1779_v6 = vadd.f32 %v1763_v12, %v1727_v38  ;;  %v1807_v19 = vadd.f32 %v1791_v24, %v1775_v17  ;;  %3627 = vrcp.f32 %v1914_v44 }
 0x1ee   : > { %v5370_v56 = vmul.f32 %v3618_v55, %v6007_v39  ;;  %3629 = vpow2.f32 %v3111_v49  ;;  %v3113_v8 = vmul.f32 -1.442695, %v5355_v27  ;;  %v2037_v30 = vadd.f32 %v5321_v60, %v5366_v14 }
 0x1ef   : > { %v1809_v31 = vadd.f32 %v1793_v34, %v1777_v33  ;;  %v1811_v61 = vadd.f32 %v1795_v47, %v1779_v6  ;;  %v1839_v48 = vadd.f32 %v1823_v2, %v1807_v19  ;;  %3631 = vrcp.f32 %v1915_v28 }
 0x1f0   : > { %v1916_v57 = vadd.f32 1.0, %v3620_v42  ;;  %3633 = vpow2.f32 %v3113_v8  ;;  %v2038_v13 = vadd.f32 %v2037_v30, %v5370_v56  ;;  %v1917_v43 = vadd.f32 1.0, %v3622_v36 }
 0x1f1   : > { %v1841_v58 = vadd.f32 %v1825_v16, %v1809_v31  ;;  %v1843_v23 = vadd.f32 %v5304_v63, %v1811_v61  ;;  %v1855_v41 = vadd.f32 %v1839_v48, %v4162_v50  ;;  %v6008_v63 = vld [vmem:[#allocation29_spill] sm:$0xff] }
 0x1f2   : > { %v5381_v21 = vmul.f32 %v3614_v45, %v6008_v63 }
 0x1f3   : > { %v1857_v11 = vadd.f32 %v1841_v58, %v4162_v50  ;;  %v1859_v3 = vadd.f32 %v1843_v23, %v4162_v50  ;;  %v3110_v53 = vmul.f32 -1.442695, %v1855_v41 }
 0x1f4   : > { %v2039_v4 = vadd.f32 %v2038_v13, %v5381_v21 }
 0x1f5   : > { %3635 = vpow2.f32 %v3110_v53  ;;  %v3112_v26 = vmul.f32 -1.442695, %v1857_v11  ;;  %v3114_v62 = vmul.f32 -1.442695, %v1859_v3 }
 0x1f6   : > { %3637 = vrcp.f32 %v1916_v57  ;;  %v3624_v60 = vpop.eup %3623 }
 0x1f7   : > { %3639 = vpow2.f32 %v3112_v26  ;;  %v3626_v1 = vpop.eup %3625  ;;  %v5385_v50 = vmul.f32 %v3624_v60, %v5140_v35 }
 0x1f8   : > { %3641 = vpow2.f32 %v3114_v62  ;;  %v1918_v22 = vadd.f32 1.0, %v3626_v1 }
 0x1f9   : > { %3643 = vrcp.f32 %v1917_v43  ;;  %v2040_v7 = vadd.f32 %v2039_v4, %v5385_v50  ;;  %v3666_v43 = vld [vmem:[#allocation2] sm:$0xff] }
 0x1fa   : > { %v3628_v40 = vpop.eup %3627  ;;  %3645 = vrcp.f32 %v1918_v22 }
 0x1fb   : > { %v3630_v25 = vpop.eup %3629  ;;  %v5389_v32 = vmul.f32 %v3628_v40, %v5244_v54 }
 0x1fc   : > { %v3632_v51 = vpop.eup %3631  ;;  %v1920_v45 = vadd.f32 1.0, %v3630_v25 }
 0x1fd   : > { %v3634_v12 = vpop.eup %3633  ;;  %v5392_v24 = vmul.f32 %v3632_v51, %v5267_v52  ;;  %v2041_v44 = vadd.f32 %v2040_v7, %v5389_v32 }
 0x1fe   : > { %3647 = vrcp.f32 %v1920_v45  ;;  %v1922_v34 = vadd.f32 1.0, %v3634_v12  ;;  %v3393_v12 = vld [vmem:[%s5818_s5 + $0x38] sm:$0xff]  }
 0x1ff   : > { %v2042_v47 = vadd.f32 %v2041_v44, %v5392_v24  ;;  %3298 = vmatprep.subr.bf16.mxu1 %v3393_v12  ;;  %v3394_v44 = vld [vmem:[%s5818_s5 + $0x30] sm:$0xff]  }
 0x200   : > { %3299 = vmatpush3.bf16.msra.mxu1 %v3393_v12  ;;  %v6021_v12 = vld [vmem:[#allocation28_spill] sm:$0xff] }
 0x201   : > { %3300 = vmatprep.subr.bf16.mxu1 %v3394_v44 }
 0x202   : > { %v3636_v55 = vpop.eup %3635 }
 0x203   : > { %v3638_v59 = vpop.eup %3637  ;;  %v1919_v35 = vadd.f32 1.0, %v3636_v55  ;;  %v3395_v55 = vld [vmem:[%s5818_s5 + $0x28] sm:$0xff]  }
 0x204   : > { %v3640_v38 = vpop.eup %3639  ;;  %v5397_v2 = vmul.f32 %v3638_v59, %v5254_v20  ;;  %3301 = vmatpush3.bf16.msra.mxu1 %v3394_v44  ;;  %v3396_v59 = vld [vmem:[%s5818_s5 + $0x20] sm:$0xff]  }
 0x205   : > { %v3642_v17 = vpop.eup %3641  ;;  %v1921_v42 = vadd.f32 1.0, %v3640_v38  ;;  %3649 = vrcp.f32 %v1919_v35  ;;  %3302 = vmatprep.subr.bf16.mxu1 %v3395_v55  ;;  %v3397_v35 = vld [vmem:[%s5818_s5 + $0x18] sm:$0xff]   ;;  %v3398_v38 = vld [vmem:[%s5818_s5 + $0x10] sm:$0xff]  }
 0x206   : > { %v1923_v54 = vadd.f32 1.0, %v3642_v17  ;;  %v3644_v52 = vpop.eup %3643  ;;  %v2043_v49 = vadd.f32 %v2042_v47, %v5397_v2  ;;  %v3399_v17 = vld [vmem:[%s5818_s5 + $0x8] sm:$0xff]  }
 0x207   : > { %3651 = vrcp.f32 %v1921_v42  ;;  %v5401_v36 = vmul.f32 %v3644_v52, %v5274_v10  ;;  %v3646_v33 = vpop.eup %3645  ;;  %v3400_v42 = vld [vmem:[%s5818_s5] sm:$0xff]  }
 0x208   : > { %3653 = vrcp.f32 %v1922_v34  ;;  %v5405_v19 = vmul.f32 %v3646_v33, %v5344_v37  ;;  %3303 = vmatpush3.bf16.msra.mxu1 %v3395_v55  ;;  %v6022_v55 = vld [vmem:[#allocation22_spill] sm:$0xff] }
 0x209   : > { %3655 = vrcp.f32 %v1923_v54  ;;  %v2044_v6 = vadd.f32 %v2043_v49, %v5401_v36  ;;  %3304 = vmatprep.subr.bf16.mxu1 %v3396_v59 }
 0x20b   : > { %v3648_v28 = vpop.eup %3647  ;;  %v2045_v46 = vadd.f32 %v2044_v6, %v5405_v19 }
 0x20c   : > { %v5411_v61 = vmul.f32 %v3648_v28, %v5351_v9  ;;  %3305 = vmatpush3.bf16.msra.mxu1 %v3396_v59 }
 0x20d   : > { %3306 = vmatprep.subr.bf16.mxu1 %v3397_v35 }
 0x210   : > { %3307 = vmatpush3.bf16.msra.mxu1 %v3397_v35 }
 0x211   : > { %3308 = vmatprep.subr.bf16.mxu1 %v3398_v38 }
 0x212   : > { %v3650_v16 = vpop.eup %3649 }
 0x213   : > { %v5408_v20 = vmul.f32 %v3650_v16, %v1855_v41 }
 0x214   : > { %v3652_v31 = vpop.eup %3651  ;;  %3309 = vmatpush3.bf16.msra.mxu1 %v3398_v38 }
 0x215   : > { %v2046_v48 = vadd.f32 %v2045_v46, %v5408_v20  ;;  %v3654_v10 = vpop.eup %3653  ;;  %v5414_v39 = vmul.f32 %v3652_v31, %v1857_v11  ;;  %3310 = vmatprep.subr.bf16.mxu1 %v3399_v17  ;;  %v6009_v46 = vld [vmem:[#allocation7_spill] sm:$0xff]  ;;  %v6010_v31 = vld [vmem:[#allocation37_spill] sm:$0xff] }
 0x216   : > { %v3656_v30 = vpop.eup %3655  ;;  %v5418_v37 = vmul.f32 %v3654_v10, %v5355_v27  ;;  %v2155_v27 = vld [vmem:[%s5817_s4] sm:$0xff] }
 0x217   : > { %v2047_v8 = vadd.f32 %v2046_v48, %v5411_v61  ;;  %v5421_v23 = vmul.f32 %v3656_v30, %v1859_v3  ;;  %v3667_v3 = vld [vmem:[%s5820_s7 + $0x8] sm:$0x1f]  ;;  %v6011_v10 = vld [vmem:[#allocation35_spill] sm:$0xff] }
 0x218   : > { %v2076_v63 = vrot.slane %v3667_v3, 4  ;;  %3311 = vmatpush3.bf16.msra.mxu1 %v3399_v17  ;;  %v2156_v34 = vrot.slane %v3667_v3, 3  ;;  %v6012_v30 = vld [vmem:[#allocation39_spill] sm:$0xff]  ;;  %v6017_v3 = vld [vmem:[#allocation20_spill] sm:$0xff] }
 0x219   : > { %v2048_v58 = vadd.f32 %v2047_v8, %v5414_v39  ;;  %3312 = vmatprep.subr.bf16.mxu1 %v3400_v42 }
 0x21b   : > { %v2049_v41 = vadd.f32 %v2048_v58, %v5418_v37 }
 0x21c   : > { %3313 = vmatpush3.bf16.msra.mxu1 %v3400_v42 }
 0x21d   : > { %v2050_v9 = vadd.f32 %v2049_v41, %v5421_v23  ;;  %v6013_v41 = vld [vmem:[#allocation16_spill] sm:$0xff] }
 0x21f   : > { %v2051_v57 = vrot.slane %v2050_v9, 4 }
 0x221   : > { %v2052_v53 = vadd.f32 %v2051_v57, %v2050_v9  ;;  %v6014_v57 = vld [vmem:[#allocation23_spill] sm:$0xff] }
 0x223   : > { %v2053_v26 = vrot.slane %v2052_v53, 2 }
 0x225   : > { %v2054_v62 = vadd.f32 %v2053_v26, %v2052_v53  ;;  %v6015_v26 = vld [vmem:[#allocation24_spill] sm:$0xff] }
 0x227   : > { %v2055_v11 = vrot.slane %v2054_v62, 1 }
 0x229   : > { %v2056_v13 = vadd.f32 %v2055_v11, %v2054_v62 }
 0x22b   : > { %v2058_v60 = vmul.f32 0.00390625, %v2056_v13 }
 0x22d   : > { %3291 = vmatmul.mubr.f32.vlgmr.msra.gmra.mxu0 %v2058_v60 }
 0x22e   : > { %3295 = vmatprep.mubr.msk.f32.mxu0 %vm3732_vm0, %v3666_v43  ;;  %3294 = vmatpush3.msra.mxu0 %v2155_v27  ;;  %v6016_v43 = vld [vmem:[#allocation14_spill] sm:$0xff] }
 0x2ed   : > { %v2144_v1 = vpop.f32.mrf.mxu0 }
 0x2ee   : > { %v2145_v4 = vadd.f32 %v2144_v1, %v2076_v63  ;;  %v6018_v1 = vld [vmem:[#allocation18_spill] sm:$0xff] }
 0x2ef   : > { %v3292_v22 = vpop.f32.mrf.mxu0 }
 0x2f0   : > { %v3115_v40 = vmul.f32 -1.442695, %v2145_v4  ;;  %v6019_v22 = vld [vmem:[#allocation15_spill] sm:$0xff] }
 0x2f2   : > { %3657 = vpow2.f32 %v3115_v40 }
 0x2ff   : > { %v3658_v25 = vpop.eup %3657 }
 0x300   : > { %v2151_v7 = vadd.f32 1.0, %v3658_v25 }
 0x302   : > { %3659 = vrcp.f32 %v2151_v7 }
 0x30f   : > { %v3660_v51 = vpop.eup %3659 }
 0x310   : > { %v2154_v45 = vmul.f32 %v3660_v51, %v2145_v4  ;;  %v6020_v51 = vld [vmem:[#allocation27_spill] sm:$0xff] }
 0x312   : > { %3296 = vmatmul.mubr.msk.f32.vlgmr.msra.gmra.mxu0 %vm2158_vm3, %v2154_v45 }
 0x3d2   : > { %v2228_v47 = vpop.f32.mrf.mxu0 }
 0x3d3   : > { %v2229_v54 = vadd.f32 %v2228_v47, %v2156_v34 }
 0x3d4   : > { %v3297_v52 = vpop.f32.mrf.mxu0 }
 0x3d5   : > { %v3117_v49 = vmul.f32 -1.442695, %v2229_v54 }
 0x3d7   : > { %3661 = vpow2.f32 %v3117_v49 }
 0x3e4   : > { %v3662_v33 = vpop.eup %3661 }
 0x3e5   : > { %v2235_v6 = vadd.f32 1.0, %v3662_v33 }
 0x3e7   : > { %3663 = vrcp.f32 %v2235_v6 }
 0x3f4   : > { %v3664_v28 = vpop.eup %3663 }
 0x3f5   : > { %v2241_v16 = vrot.slane %v3664_v28, %v6009_v46 }
 0x3f7   : > { %v2242_v48 = vmul.f32 %v2241_v16, %v6010_v31  ;;  %v2243_v8 = vmul.f32 %v2241_v16, %v6011_v10  ;;  %v2244_v58 = vmul.f32 %v2241_v16, %v6012_v30  ;;  %v2245_v9 = vmul.f32 %v2241_v16, %v6013_v41 }
 0x3f8   : > { %v2246_v53 = vmul.f32 %v2241_v16, %v6014_v57  ;;  %v2247_v62 = vmul.f32 %v2241_v16, %v6015_v26  ;;  %v2248_v27 = vmul.f32 %v2241_v16, %v6016_v43  ;;  %v2249_v63 = vmul.f32 %v2241_v16, %v6017_v3  ;;  %v2519_v57 = vld [vmem:[%s3902_s23] sm:$0xff] }
 0x3f9   : > { %v2274_v11 = vpack.c.bf16 %v2243_v8, %v2242_v48  ;;  %v2275_v13 = vpack.c.bf16 %v2245_v9, %v2244_v58  ;;  %v2250_v4 = vmul.f32 %v2241_v16, %v6018_v1  ;;  %v2251_v40 = vmul.f32 %v2241_v16, %v6019_v22  ;;  %v2521_v58 = vld [vmem:[%s3902_s23 + $0x10] sm:$0xff] }
 0x3fa   : > { %v2276_v60 = vpack.c.bf16 %v2247_v62, %v2246_v53  ;;  %v2277_v25 = vpack.c.bf16 %v2249_v63, %v2248_v27  ;;  %v2252_v45 = vmul.f32 %v2241_v16, %v6020_v51  ;;  %v2253_v44 = vmul.f32 %v2241_v16, %v6021_v12  ;;  %v2522_v53 = vld [vmem:[%s3902_s23 + $0x18] sm:$0xff]  ;;  %v2525_v1 = vld [vmem:[%s3902_s23 + $0x30] sm:$0xff] }
 0x3fb   : > { %3314 = vmatprep.mubr.bf16.mxu1 %v2274_v11  ;;  %v2278_v7 = vpack.c.bf16 %v2251_v40, %v2250_v4  ;;  %v2254_v59 = vmul.f32 %v2241_v16, %v6022_v55  ;;  %v2255_v35 = vmul.f32 %v2241_v16, %v5123_v29  ;;  %v2256_v42 = vmul.f32 %v2241_v16, %v5270_v15  ;;  %v2526_v40 = vld [vmem:[%s3902_s23 + $0x38] sm:$0xff] }
 0x3fc   : > { %3315 = vmatmul.mubr.bf16.vlgmr.msra.gmra.mxu1 %v2275_v13  ;;  %v2279_v38 = vpack.c.bf16 %v2253_v44, %v2252_v45  ;;  %v2257_v34 = vmul.f32 %v2241_v16, %v5280_v18  ;;  %v2258_v47 = vmul.f32 %v2241_v16, %v5294_v0  ;;  %v2259_v54 = vmul.f32 %v2241_v16, %v5308_v5  ;;  %v2520_v13 = vld [vmem:[%s3902_s23 + $0x8] sm:$0xff]  ;;  %v2523_v45 = vld [vmem:[%s3902_s23 + $0x20] sm:$0xff] }
 0x3fd   : > { %3318 = vmatprep.mubr.bf16.mxu1 %v2276_v60  ;;  %v2280_v17 = vpack.c.bf16 %v2255_v35, %v2254_v59  ;;  %v2260_v33 = vmul.f32 %v2241_v16, %v5366_v14  ;;  %v2261_v29 = vmul.f32 %v2241_v16, %v5370_v56  ;;  %v2262_v6 = vmul.f32 %v2241_v16, %v5381_v21  ;;  %v2524_v59 = vld [vmem:[%s3902_s23 + $0x28] sm:$0xff] }
 0x3fe   : > { %v2281_v52 = vpack.c.bf16 %v2257_v34, %v2256_v42  ;;  %v2282_v49 = vpack.c.bf16 %v2259_v54, %v2258_v47  ;;  %v2263_v28 = vmul.f32 %v2241_v16, %v5385_v50  ;;  %v2264_v18 = vmul.f32 %v2241_v16, %v5389_v32  ;;  %v2529_v42 = vld [vmem:[%s3902_s23 + $0x50] sm:$0xff] }
 0x3ff   : > { %v2283_v31 = vpack.c.bf16 %v2261_v29, %v2260_v33  ;;  %v2265_v0 = vmul.f32 %v2241_v16, %v5392_v24  ;;  %v2266_v5 = vmul.f32 %v2241_v16, %v5397_v2  ;;  %v2267_v48 = vmul.f32 %v2241_v16, %v5401_v36 }
 0x400   : > { %v2284_v15 = vpack.c.bf16 %v2263_v28, %v2262_v6  ;;  %v2268_v56 = vmul.f32 %v2241_v16, %v5405_v19  ;;  %v2269_v21 = vmul.f32 %v2241_v16, %v5408_v20  ;;  %v2270_v50 = vmul.f32 %v2241_v16, %v5411_v61  ;;  %v3668_v19 = vld [vmem:[%s5821_s8] sm:$0x3]  ;;  %v6023_v20 = vld [vmem:[#allocation9_spill] sm:$0xff] }
 0x401   : > { %v2285_v10 = vpack.c.bf16 %v2265_v0, %v2264_v18  ;;  %v2286_v14 = vpack.c.bf16 %v2267_v48, %v2266_v5  ;;  %v2271_v32 = vmul.f32 %v2241_v16, %v5414_v39  ;;  %v2272_v2 = vmul.f32 %v2241_v16, %v5418_v37  ;;  %v2527_v6 = vld [vmem:[%s3902_s23 + $0x40] sm:$0xff]  ;;  %v2528_v18 = vld [vmem:[%s3902_s23 + $0x48] sm:$0xff] }
 0x402   : > { %v2287_v8 = vpack.c.bf16 %v2269_v21, %v2268_v56  ;;  %v2273_v36 = vmul.f32 %v2241_v16, %v5421_v23  ;;  %v5493_v61 = vrot.slane %v3668_v19, %v6023_v20  ;;  %v2532_v20 = vld [vmem:[%s3902_s23 + $0x68] sm:$0xff] }
 0x403   : > { %v2288_v24 = vpack.c.bf16 %v2271_v32, %v2270_v50  ;;  %v2534_v50 = vld [vmem:[%s3902_s23 + $0x78] sm:$0xff] }
 0x404   : > { %3319 = vmatmul.mubr.bf16.gmra.mxu1 %v2277_v25  ;;  %v2289_v30 = vpack.c.bf16 %v2273_v36, %v2272_v2  ;;  %v2531_v2 = vld [vmem:[%s3902_s23 + $0x60] sm:$0xff] }
 0x405   : > { %3322 = vmatprep.mubr.bf16.mxu1 %v2278_v7 }
 0x40c   : > { %3323 = vmatmul.mubr.bf16.gmra.mxu1 %v2279_v38 }
 0x40d   : > { %3326 = vmatprep.mubr.bf16.mxu1 %v2280_v17 }
 0x414   : > { %3327 = vmatmul.mubr.bf16.gmra.mxu1 %v2281_v52  ;;  %v2530_v52 = vld [vmem:[%s3902_s23 + $0x58] sm:$0xff] }
 0x415   : > { %3330 = vmatprep.mubr.bf16.mxu1 %v2282_v49 }
 0x41c   : > { %3331 = vmatmul.mubr.bf16.gmra.mxu1 %v2283_v31 }
 0x41d   : > { %3334 = vmatprep.mubr.bf16.mxu1 %v2284_v15 }
 0x424   : > { %3335 = vmatmul.mubr.bf16.gmra.mxu1 %v2285_v10  ;;  %v2533_v10 = vld [vmem:[%s3902_s23 + $0x70] sm:$0xff] }
 0x425   : > { %3338 = vmatprep.mubr.bf16.mxu1 %v2286_v14 }
 0x42c   : > { %3339 = vmatmul.mubr.bf16.gmra.mxu1 %v2287_v8 }
 0x42d   : > { %3342 = vmatprep.mubr.bf16.mxu1 %v2288_v24 }
 0x434   : > { %3343 = vmatmul.mubr.bf16.gmra.mxu1 %v2289_v30 }
 0x4bc   : > { %v3316_v39 = vpop.f32.mrf.mxu1 }
 0x4bd   : > { %v2401_v41 = vadd.f32 %v3316_v39, %v5493_v61 }
 0x4be   : > { %v2392_v9 = vpop.f32.mrf.mxu1 }
 0x4bf   : > { %v2393_v37 = vadd.f32 %v2392_v9, %v5493_v61  ;;  %v2553_v23 = vadd.f32 %v2521_v58, %v2401_v41  ;;  %v2537_v9 = vld [vmem:[%s3902_s23 + $0x90] sm:$0xff] }
 0x4c0   : > { %v3317_v16 = vpop.f32.mrf.mxu1 }
 0x4c1   : > { %v2551_v26 = vadd.f32 %v2519_v57, %v2393_v37  ;;  %v2404_v62 = vadd.f32 %v3317_v16, %v5493_v61  ;;  %2624 = vrot.lane.b32.xlu1 %v2553_v23, %s3733_s14  ;;  %v2538_v16 = vld [vmem:[%s3902_s23 + $0x98] sm:$0xff] }
 0x4c2   : > { %v2395_v11 = vpop.f32.mrf.mxu1 }
 0x4c3   : > { %v2554_v60 = vadd.f32 %v2522_v53, %v2404_v62  ;;  %v2396_v43 = vadd.f32 %v2395_v11, %v5493_v61  ;;  %2620 = vrot.lane.b32.xlu0 %v2551_v26, %s3733_s14  ;;  %v2535_v11 = vld [vmem:[%s3902_s23 + $0x80] sm:$0xff] }
 0x4c4   : > { %v3320_v27 = vpop.f32.mrf.mxu1 }
 0x4c5   : > { %v2552_v3 = vadd.f32 %v2520_v13, %v2396_v43  ;;  %v2417_v63 = vadd.f32 %v3320_v27, %v5493_v61  ;;  %2626 = vrot.lane.b32.xlu1 %v2554_v60, %s3733_s14  ;;  %v2536_v27 = vld [vmem:[%s3902_s23 + $0x88] sm:$0xff] }
 0x4c6   : > { %v2408_v4 = vpop.f32.mrf.mxu1 }
 0x4c7   : > { %2622 = vrot.lane.b32.xlu0 %v2552_v3, %s3733_s14  ;;  %v2557_v25 = vadd.f32 %v2525_v1, %v2417_v63  ;;  %v2409_v7 = vadd.f32 %v2408_v4, %v5493_v61  ;;  %v2541_v4 = vld [vmem:[%s3902_s23 + $0xb0] sm:$0xff] }
 0x4c8   : > { %v3321_v22 = vpop.f32.mrf.mxu1 }
 0x4c9   : > { %v2420_v51 = vadd.f32 %v3321_v22, %v5493_v61  ;;  %v2555_v38 = vadd.f32 %v2523_v45, %v2409_v7  ;;  %v2542_v7 = vld [vmem:[%s3902_s23 + $0xb8] sm:$0xff] }
 0x4ca   : > { %v2411_v12 = vpop.f32.mrf.mxu1 }
 0x4cb   : > { %v2558_v44 = vadd.f32 %v2526_v40, %v2420_v51  ;;  %v2412_v55 = vadd.f32 %v2411_v12, %v5493_v61  ;;  %2632 = vrot.lane.b32.xlu0 %v2557_v25, %s3733_s14 }
 0x4cc   : > { %v3324_v35 = vpop.f32.mrf.mxu1 }
 0x4cd   : > { %v2433_v17 = vadd.f32 %v3324_v35, %v5493_v61  ;;  %2634 = vrot.lane.b32.xlu1 %v2558_v44, %s3733_s14  ;;  %v2556_v47 = vadd.f32 %v2524_v59, %v2412_v55  ;;  %v2539_v44 = vld [vmem:[%s3902_s23 + $0xa0] sm:$0xff] }
 0x4ce   : > { %v2424_v34 = vpop.f32.mrf.mxu1 }
 0x4cf   : > { %2628 = vrot.lane.b32.xlu0 %v2555_v38, %s3733_s14  ;;  %v2561_v49 = vadd.f32 %v2529_v42, %v2433_v17  ;;  %v2425_v33 = vadd.f32 %v2424_v34, %v5493_v61  ;;  %v2540_v38 = vld [vmem:[%s3902_s23 + $0xa8] sm:$0xff] }
 0x4d0   : > { %v3325_v54 = vpop.f32.mrf.mxu1 }
 0x4d1   : > { %v2436_v29 = vadd.f32 %v3325_v54, %v5493_v61  ;;  %2630 = vrot.lane.b32.xlu1 %v2556_v47, %s3733_s14  ;;  %v2559_v5 = vadd.f32 %v2527_v6, %v2425_v33  ;;  %v2545_v47 = vld [vmem:[%s3902_s23 + $0xd0] sm:$0xff]  ;;  %v2546_v33 = vld [vmem:[%s3902_s23 + $0xd8] sm:$0xff] }
 0x4d2   : > { %v2427_v28 = vpop.f32.mrf.mxu1 }
 0x4d3   : > { %v2562_v31 = vadd.f32 %v2530_v52, %v2436_v29  ;;  %v2428_v15 = vadd.f32 %v2427_v28, %v5493_v61  ;;  %2640 = vrot.lane.b32.xlu0 %v2561_v49, %s3733_s14 }
 0x4d4   : > { %v3328_v0 = vpop.f32.mrf.mxu1 }
 0x4d5   : > { %v2449_v48 = vadd.f32 %v3328_v0, %v5493_v61  ;;  %2642 = vrot.lane.b32.xlu1 %v2562_v31, %s3733_s14  ;;  %v2560_v56 = vadd.f32 %v2528_v18, %v2428_v15  ;;  %v2543_v31 = vld [vmem:[%s3902_s23 + $0xc0] sm:$0xff] }
 0x4d6   : > { %v2440_v14 = vpop.f32.mrf.mxu1 }
 0x4d7   : > { %2636 = vrot.lane.b32.xlu0 %v2559_v5, %s3733_s14  ;;  %v2565_v32 = vadd.f32 %v2533_v10, %v2449_v48  ;;  %v2441_v8 = vadd.f32 %v2440_v14, %v5493_v61  ;;  %v2544_v5 = vld [vmem:[%s3902_s23 + $0xc8] sm:$0xff] }
 0x4d8   : > { %v3329_v21 = vpop.f32.mrf.mxu1 }
 0x4d9   : > { %v2452_v24 = vadd.f32 %v3329_v21, %v5493_v61  ;;  %2638 = vrot.lane.b32.xlu1 %v2560_v56, %s3733_s14  ;;  %v2563_v58 = vadd.f32 %v2531_v2, %v2441_v8  ;;  %v2549_v56 = vld [vmem:[%s3902_s23 + $0xf0] sm:$0xff]  ;;  %v2550_v8 = vld [vmem:[%s3902_s23 + $0xf8] sm:$0xff] }
 0x4da   : > { %v2443_v36 = vpop.f32.mrf.mxu1 }
 0x4db   : > { %v2566_v30 = vadd.f32 %v2534_v50, %v2452_v24  ;;  %v2444_v19 = vadd.f32 %v2443_v36, %v5493_v61  ;;  %2648 = vrot.lane.b32.xlu0 %v2565_v32, %s3733_s14 }
 0x4dc   : > { %v3332_v39 = vpop.f32.mrf.mxu1 }
 0x4dd   : > { %v2465_v41 = vadd.f32 %v3332_v39, %v5493_v61  ;;  %2650 = vrot.lane.b32.xlu1 %v2566_v30, %s3733_s14  ;;  %v2564_v37 = vadd.f32 %v2532_v20, %v2444_v19  ;;  %v2547_v30 = vld [vmem:[%s3902_s23 + $0xe0] sm:$0xff] }
 0x4de   : > { %v2456_v57 = vpop.f32.mrf.mxu1 }
 0x4df   : > { %2644 = vrot.lane.b32.xlu0 %v2563_v58, %s3733_s14  ;;  %v2569_v53 = vadd.f32 %v2537_v9, %v2465_v41  ;;  %v2457_v26 = vadd.f32 %v2456_v57, %v5493_v61  ;;  %v2548_v58 = vld [vmem:[%s3902_s23 + $0xe8] sm:$0xff]  ;;  %s3734_s23 = smov 96  }
 0x4e0   : > { %v3333_v23 = vpop.f32.mrf.mxu1  ;;  %v6024_v57 = vld [vmem:[#allocation8_spill] sm:$0xff] }
 0x4e1   : > { %v2468_v62 = vadd.f32 %v3333_v23, %v5493_v61  ;;  %2646 = vrot.lane.b32.xlu1 %v2564_v37, %s3733_s14  ;;  %v2567_v63 = vadd.f32 %v2535_v11, %v2457_v26  ;;  %v2583_v37 = vadd.f32 1.0, %v6024_v57  ;;  %v5592_v23 = vpop.permute.xlu0 %2753 }
 0x4e2   : > { %v2459_v13 = vpop.f32.mrf.mxu1 }
 0x4e3   : > { %v2570_v60 = vadd.f32 %v2538_v16, %v2468_v62  ;;  %v2460_v43 = vadd.f32 %v2459_v13, %v5493_v61  ;;  %2656 = vrot.lane.b32.xlu0 %v2569_v53, %s3733_s14  ;;  %v5595_v16 = vrot.slane %v2583_v37, %v6009_v46 }
 0x4e4   : > { %v3336_v3 = vpop.f32.mrf.mxu1 }
 0x4e5   : > { %v2481_v1 = vadd.f32 %v3336_v3, %v5493_v61  ;;  %2658 = vrot.lane.b32.xlu1 %v2570_v60, %s3733_s14  ;;  %v2568_v40 = vadd.f32 %v2536_v27, %v2460_v43 }
 0x4e6   : > { %v2472_v22 = vpop.f32.mrf.mxu1 }
 0x4e7   : > { %2652 = vrot.lane.b32.xlu0 %v2567_v63, %s3733_s14  ;;  %v2573_v51 = vadd.f32 %v2541_v4, %v2481_v1  ;;  %v2473_v45 = vadd.f32 %v2472_v22, %v5493_v61 }
 0x4e8   : > { %v3337_v25 = vpop.f32.mrf.mxu1 }
 0x4e9   : > { %v2484_v12 = vadd.f32 %v3337_v25, %v5493_v61  ;;  %2654 = vrot.lane.b32.xlu1 %v2568_v40, %s3733_s14  ;;  %v2571_v42 = vadd.f32 %v2539_v44, %v2473_v45 }
 0x4ea   : > { %v2475_v55 = vpop.f32.mrf.mxu1 }
 0x4eb   : > { %v2574_v59 = vadd.f32 %v2542_v7, %v2484_v12  ;;  %v2476_v35 = vadd.f32 %v2475_v55, %v5493_v61  ;;  %2664 = vrot.lane.b32.xlu0 %v2573_v51, %s3733_s14 }
 0x4ec   : > { %v3340_v17 = vpop.f32.mrf.mxu1 }
 0x4ed   : > { %v2497_v34 = vadd.f32 %v3340_v17, %v5493_v61  ;;  %2666 = vrot.lane.b32.xlu1 %v2574_v59, %s3733_s14  ;;  %v2572_v52 = vadd.f32 %v2540_v38, %v2476_v35 }
 0x4ee   : > { %v2488_v54 = vpop.f32.mrf.mxu1 }
 0x4ef   : > { %2660 = vrot.lane.b32.xlu0 %v2571_v42, %s3733_s14  ;;  %v2577_v29 = vadd.f32 %v2545_v47, %v2497_v34  ;;  %v2489_v6 = vadd.f32 %v2488_v54, %v5493_v61 }
 0x4f0   : > { %v3341_v49 = vpop.f32.mrf.mxu1 }
 0x4f1   : > { %v2500_v28 = vadd.f32 %v3341_v49, %v5493_v61  ;;  %2662 = vrot.lane.b32.xlu1 %v2572_v52, %s3733_s14  ;;  %v2575_v10 = vadd.f32 %v2543_v31, %v2489_v6 }
 0x4f2   : > { %v2491_v15 = vpop.f32.mrf.mxu1 }
 0x4f3   : > { %v2578_v18 = vadd.f32 %v2546_v33, %v2500_v28  ;;  %v2492_v0 = vadd.f32 %v2491_v15, %v5493_v61  ;;  %2672 = vrot.lane.b32.xlu0 %v2577_v29, %s3733_s14 }
 0x4f4   : > { %v3344_v48 = vpop.f32.mrf.mxu1 }
 0x4f5   : > { %v2513_v14 = vadd.f32 %v3344_v48, %v5493_v61  ;;  %2674 = vrot.lane.b32.xlu1 %v2578_v18, %s3733_s14  ;;  %v2576_v50 = vadd.f32 %v2544_v5, %v2492_v0 }
 0x4f6   : > { %v2504_v21 = vpop.f32.mrf.mxu1 }
 0x4f7   : > { %2668 = vrot.lane.b32.xlu0 %v2575_v10, %s3733_s14  ;;  %v2581_v24 = vadd.f32 %v2549_v56, %v2513_v14  ;;  %v2505_v2 = vadd.f32 %v2504_v21, %v5493_v61 }
 0x4f8   : > { %v3345_v32 = vpop.f32.mrf.mxu1 }
 0x4f9   : > { %v2516_v36 = vadd.f32 %v3345_v32, %v5493_v61  ;;  %2670 = vrot.lane.b32.xlu1 %v2576_v50, %s3733_s14  ;;  %v2579_v41 = vadd.f32 %v2547_v30, %v2505_v2 }
 0x4fa   : > { %v2507_v19 = vpop.f32.mrf.mxu1 }
 0x4fb   : > { %v2582_v20 = vadd.f32 %v2550_v8, %v2516_v36  ;;  %v2508_v39 = vadd.f32 %v2507_v19, %v5493_v61  ;;  %2680 = vrot.lane.b32.xlu0 %v2581_v24, %s3733_s14 }
 0x4fd   : > { %2682 = vrot.lane.b32.xlu1 %v2582_v20, %s3733_s14  ;;  %v2580_v9 = vadd.f32 %v2548_v58, %v2508_v39 }
 0x4ff   : > { %2676 = vrot.lane.b32.xlu0 %v2579_v41, %s3733_s14 }
 0x501   : > { %2678 = vrot.lane.b32.xlu1 %v2580_v9, %s3733_s14  ;;  %s323_s14 = sand.u32 1, %s3721_s10  }
 0x502   : > { %s3029_s26 = sshll.u32 %s323_s14, 8  ;;  %s5773_s13 = scalar_lea.sflag [#allocation5], %s323_s14 }
 0x503   : > { %s5696_s27 = scalar_lea.vmem [#allocation4], %s3029_s26 }
 0x504   : > { %s2962_s29 = sshll.u32 %s5696_s27, 4  ;;  %s5765_s29 = int_to_ptr.vmem [resolvable:$true] %s2962_s29 }
 0x505   : > { %s3669_s22 = scalar_lea.vmem %s5765_s29, 4096  ;;  %p3676_p0 = scmp.lt.s32.totalorder %s5765_s29, %s3674_s25 }
 0x506   : > { %p3670_p11 = scmp.ne.s32.totalorder %s5765_s29, %s3669_s22 }
 0x508   : > { %p3671_p12 = pnand %p3670_p11, %p3826_p5 }
 0x50a   : > { %p3672_p13 = pneg %p3671_p12 }
 0x533   : > { %v2625_v53 = vpop.permute.xlu1 %2624 }
 0x534   : > { %v2718_v61 = vmul.f32 %v2625_v53, %v5595_v16 }
 0x535   : > { %v2621_v26 = vpop.permute.xlu0 %2620 }
 0x536   : > { %v2758_v62 = vadd.f32 %v5592_v23, %v2718_v61  ;;  %v2716_v11 = vmul.f32 %v2621_v26, %v5595_v16 }
 0x537   : > { %v2627_v13 = vpop.permute.xlu1 %2626 }
 0x538   : > { %v2719_v60 = vmul.f32 %v2627_v13, %v5595_v16  ;;  %2824 = vrot.lane.b32.xlu1 %v2758_v62, %s3734_s23  ;;  %v2756_v27 = vadd.f32 %v5592_v23, %v2716_v11 }
 0x539   : > { %v2623_v43 = vpop.permute.xlu0 %2622 }
 0x53a   : > { %v2759_v46 = vadd.f32 %v5592_v23, %v2719_v60  ;;  %v2717_v3 = vmul.f32 %v2623_v43, %v5595_v16 }
 0x53c   : > { %2826 = vrot.lane.b32.xlu0 %v2759_v46, %s3734_s23  ;;  %2820 = vrot.lane.b32.xlu1 %v2756_v27, %s3734_s23  ;;  %v2757_v1 = vadd.f32 %v5592_v23, %v2717_v3 }
 0x53d   : > { %v2633_v63 = vpop.permute.xlu0 %2632 }
 0x53e   : > { %v2722_v4 = vmul.f32 %v2633_v63, %v5595_v16 }
 0x53f   : > { %v2635_v22 = vpop.permute.xlu1 %2634 }
 0x540   : > { %v2762_v40 = vadd.f32 %v5592_v23, %v2722_v4  ;;  %v2723_v25 = vmul.f32 %v2635_v22, %v5595_v16  ;;  %2822 = vrot.lane.b32.xlu0 %v2757_v1, %s3734_s23 }
 0x541   : > { %v2629_v7 = vpop.permute.xlu0 %2628 }
 0x542   : > { %v2763_v51 = vadd.f32 %v5592_v23, %v2723_v25  ;;  %v2720_v45 = vmul.f32 %v2629_v7, %v5595_v16  ;;  %2832 = vrot.lane.b32.xlu1 %v2762_v40, %s3734_s23 }
 0x543   : > { %v2631_v12 = vpop.permute.xlu1 %2630 }
 0x544   : > { %v2760_v44 = vadd.f32 %v5592_v23, %v2720_v45  ;;  %v2721_v55 = vmul.f32 %v2631_v12, %v5595_v16  ;;  %2834 = vrot.lane.b32.xlu0 %v2763_v51, %s3734_s23 }
 0x545   : > { %v2641_v59 = vpop.permute.xlu0 %2640 }
 0x546   : > { %v2761_v35 = vadd.f32 %v5592_v23, %v2721_v55  ;;  %v2726_v38 = vmul.f32 %v2641_v59, %v5595_v16  ;;  %2828 = vrot.lane.b32.xlu1 %v2760_v44, %s3734_s23 }
 0x547   : > { %v2643_v17 = vpop.permute.xlu1 %2642 }
 0x548   : > { %v2766_v42 = vadd.f32 %v5592_v23, %v2726_v38  ;;  %v2727_v34 = vmul.f32 %v2643_v17, %v5595_v16  ;;  %2830 = vrot.lane.b32.xlu0 %v2761_v35, %s3734_s23 }
 0x549   : > { %v2637_v47 = vpop.permute.xlu0 %2636 }
 0x54a   : > { %v2767_v54 = vadd.f32 %v5592_v23, %v2727_v34  ;;  %v2724_v52 = vmul.f32 %v2637_v47, %v5595_v16  ;;  %2840 = vrot.lane.b32.xlu1 %v2766_v42, %s3734_s23 }
 0x54b   : > { %v2639_v49 = vpop.permute.xlu1 %2638 }
 0x54c   : > { %v2764_v33 = vadd.f32 %v5592_v23, %v2724_v52  ;;  %v2725_v29 = vmul.f32 %v2639_v49, %v5595_v16  ;;  %2842 = vrot.lane.b32.xlu0 %v2767_v54, %s3734_s23 }
 0x54d   : > { %v2649_v6 = vpop.permute.xlu0 %2648 }
 0x54e   : > { %v2765_v28 = vadd.f32 %v5592_v23, %v2725_v29  ;;  %v2730_v31 = vmul.f32 %v2649_v6, %v5595_v16  ;;  %2836 = vrot.lane.b32.xlu1 %v2764_v33, %s3734_s23 }
 0x54f   : > { %v2651_v15 = vpop.permute.xlu1 %2650 }
 0x550   : > { %v2770_v18 = vadd.f32 %v5592_v23, %v2730_v31  ;;  %v2731_v0 = vmul.f32 %v2651_v15, %v5595_v16  ;;  %2838 = vrot.lane.b32.xlu0 %v2765_v28, %s3734_s23 }
 0x551   : > { %v2645_v5 = vpop.permute.xlu0 %2644 }
 0x552   : > { %v2771_v48 = vadd.f32 %v5592_v23, %v2731_v0  ;;  %v2728_v10 = vmul.f32 %v2645_v5, %v5595_v16  ;;  %2848 = vrot.lane.b32.xlu1 %v2770_v18, %s3734_s23 }
 0x553   : > { %v2647_v14 = vpop.permute.xlu1 %2646 }
 0x554   : > { %v2768_v56 = vadd.f32 %v5592_v23, %v2728_v10  ;;  %v2729_v21 = vmul.f32 %v2647_v14, %v5595_v16  ;;  %2850 = vrot.lane.b32.xlu0 %v2771_v48, %s3734_s23 }
 0x555   : > { %v2657_v50 = vpop.permute.xlu0 %2656 }
 0x556   : > { %v2769_v32 = vadd.f32 %v5592_v23, %v2729_v21  ;;  %v2734_v8 = vmul.f32 %v2657_v50, %v5595_v16  ;;  %2844 = vrot.lane.b32.xlu1 %v2768_v56, %s3734_s23 }
 0x557   : > { %v2659_v24 = vpop.permute.xlu1 %2658 }
 0x558   : > { %v2774_v2 = vadd.f32 %v5592_v23, %v2734_v8  ;;  %v2735_v36 = vmul.f32 %v2659_v24, %v5595_v16  ;;  %2846 = vrot.lane.b32.xlu0 %v2769_v32, %s3734_s23 }
 0x559   : > { %v2653_v30 = vpop.permute.xlu0 %2652 }
 0x55a   : > { %v2775_v19 = vadd.f32 %v5592_v23, %v2735_v36  ;;  %v2732_v20 = vmul.f32 %v2653_v30, %v5595_v16  ;;  %2856 = vrot.lane.b32.xlu1 %v2774_v2, %s3734_s23 }
 0x55b   : > { %v2655_v39 = vpop.permute.xlu1 %2654 }
 0x55c   : > { %v2772_v58 = vadd.f32 %v5592_v23, %v2732_v20  ;;  %v2733_v41 = vmul.f32 %v2655_v39, %v5595_v16  ;;  %2858 = vrot.lane.b32.xlu0 %v2775_v19, %s3734_s23 }
 0x55d   : > { %v2665_v9 = vpop.permute.xlu0 %2664 }
 0x55e   : > { %v2773_v57 = vadd.f32 %v5592_v23, %v2733_v41  ;;  %v2738_v37 = vmul.f32 %v2665_v9, %v5595_v16  ;;  %2852 = vrot.lane.b32.xlu1 %v2772_v58, %s3734_s23 }
 0x55f   : > { %v2667_v53 = vpop.permute.xlu1 %2666 }
 0x560   : > { %v2778_v61 = vadd.f32 %v5592_v23, %v2738_v37  ;;  %v2739_v26 = vmul.f32 %v2667_v53, %v5595_v16  ;;  %2854 = vrot.lane.b32.xlu0 %v2773_v57, %s3734_s23 }
 0x561   : > { %v2661_v62 = vpop.permute.xlu0 %2660 }
 0x562   : > { %v2779_v11 = vadd.f32 %v5592_v23, %v2739_v26  ;;  %v2736_v13 = vmul.f32 %v2661_v62, %v5595_v16  ;;  %2864 = vrot.lane.b32.xlu1 %v2778_v61, %s3734_s23 }
 0x563   : > { %v2663_v60 = vpop.permute.xlu1 %2662 }
 0x564   : > { %v2776_v43 = vadd.f32 %v5592_v23, %v2736_v13  ;;  %v2737_v27 = vmul.f32 %v2663_v60, %v5595_v16  ;;  %2866 = vrot.lane.b32.xlu0 %v2779_v11, %s3734_s23 }
 0x565   : > { %v2673_v46 = vpop.permute.xlu0 %2672 }
 0x566   : > { %v2777_v3 = vadd.f32 %v5592_v23, %v2737_v27  ;;  %v2742_v63 = vmul.f32 %v2673_v46, %v5595_v16  ;;  %2860 = vrot.lane.b32.xlu1 %v2776_v43, %s3734_s23 }
 0x567   : > { %v2675_v1 = vpop.permute.xlu1 %2674 }
 0x568   : > { %v2782_v4 = vadd.f32 %v5592_v23, %v2742_v63  ;;  %v2743_v22 = vmul.f32 %v2675_v1, %v5595_v16  ;;  %2862 = vrot.lane.b32.xlu0 %v2777_v3, %s3734_s23 }
 0x569   : > { %v2669_v40 = vpop.permute.xlu0 %2668 }
 0x56a   : > { %v2783_v25 = vadd.f32 %v5592_v23, %v2743_v22  ;;  %v2740_v7 = vmul.f32 %v2669_v40, %v5595_v16  ;;  %2872 = vrot.lane.b32.xlu1 %v2782_v4, %s3734_s23 }
 0x56b   : > { %v2671_v51 = vpop.permute.xlu1 %2670 }
 0x56c   : > { %v2780_v45 = vadd.f32 %v5592_v23, %v2740_v7  ;;  %v2741_v12 = vmul.f32 %v2671_v51, %v5595_v16  ;;  %2874 = vrot.lane.b32.xlu0 %v2783_v25, %s3734_s23 }
 0x56d   : > { %v2681_v44 = vpop.permute.xlu0 %2680 }
 0x56e   : > { %v2781_v55 = vadd.f32 %v5592_v23, %v2741_v12  ;;  %2868 = vrot.lane.b32.xlu1 %v2780_v45, %s3734_s23  ;;  %v2746_v42 = vmul.f32 %v2681_v44, %v5595_v16 }
 0x56f   : > { %v2683_v59 = vpop.permute.xlu1 %2682 }
 0x570   : > { %2870 = vrot.lane.b32.xlu0 %v2781_v55, %s3734_s23  ;;  %v2747_v54 = vmul.f32 %v2683_v59, %v5595_v16  ;;  %v2786_v49 = vadd.f32 %v5592_v23, %v2746_v42 }
 0x571   : > { %v2677_v35 = vpop.permute.xlu0 %2676 }
 0x572   : > { %v2744_v38 = vmul.f32 %v2677_v35, %v5595_v16  ;;  %v2787_v33 = vadd.f32 %v5592_v23, %v2747_v54 }
 0x573   : > { %v2679_v17 = vpop.permute.xlu1 %2678 }
 0x574   : > { %v2784_v34 = vadd.f32 %v5592_v23, %v2744_v38  ;;  %v2745_v47 = vmul.f32 %v2679_v17, %v5595_v16 }
 0x576   : > { %v2785_v52 = vadd.f32 %v5592_v23, %v2745_v47  ;;  %2876 = vrot.lane.b32.xlu1 %v2784_v34, %s3734_s23 }
 0x578   : > { %2878 = vrot.lane.b32.xlu0 %v2785_v52, %s3734_s23 }
 0x57a   : > { %2880 = vrot.lane.b32.xlu1 %v2786_v49, %s3734_s23 }
 0x57c   : > { %2882 = vrot.lane.b32.xlu0 %v2787_v33, %s3734_s23  ;;  %s3675_s23 = scalar_lea.vmem %s3674_s25, 8192 }
 0x57d   : > { %p3677_p1 = scmp.lt.s32.totalorder %s3675_s23, %s3669_s22 }
 0x57f   : > { %p3678_p2 = por %p3677_p1, %p3676_p0 }
 0x581   : > { %p3679_p3 = pnand %p3678_p2, %p3672_p13 }
 0x5aa   : > { %v2825_v29 = vpop.permute.xlu1 %2824 }
 0x5ab   : > { %2918 = vst.msk [vmem:[%s5696_s27 + $0x10] sm:$0xff] %vm529_vm2, %v2825_v29 }
 0x5ae   : > { %v2821_v23 = vpop.permute.xlu1 %2820  ;;  %v2827_v16 = vpop.permute.xlu0 %2826 }
 0x5af   : > { %2916 = vst.msk [vmem:[%s5696_s27] sm:$0xff] %vm529_vm2, %v2821_v23  ;;  %2919 = vst.msk [vmem:[%s5696_s27 + $0x18] sm:$0xff] %vm529_vm2, %v2827_v16 }
 0x5b2   : > { %v2823_v6 = vpop.permute.xlu0 %2822 }
 0x5b3   : > { %2917 = vst.msk [vmem:[%s5696_s27 + $0x8] sm:$0xff] %vm529_vm2, %v2823_v6 }
 0x5b4   : > { %v2833_v28 = vpop.permute.xlu1 %2832 }
 0x5b5   : > { %2922 = vst.msk [vmem:[%s5696_s27 + $0x30] sm:$0xff] %vm529_vm2, %v2833_v28 }
 0x5b6   : > { %v2835_v31 = vpop.permute.xlu0 %2834 }
 0x5b7   : > { %2923 = vst.msk [vmem:[%s5696_s27 + $0x38] sm:$0xff] %vm529_vm2, %v2835_v31 }
 0x5b8   : > { %v2829_v15 = vpop.permute.xlu1 %2828 }
 0x5b9   : > { %2920 = vst.msk [vmem:[%s5696_s27 + $0x20] sm:$0xff] %vm529_vm2, %v2829_v15 }
 0x5ba   : > { %v2831_v18 = vpop.permute.xlu0 %2830 }
 0x5bb   : > { %2921 = vst.msk [vmem:[%s5696_s27 + $0x28] sm:$0xff] %vm529_vm2, %v2831_v18 }
 0x5bc   : > { %v2841_v0 = vpop.permute.xlu1 %2840 }
 0x5bd   : > { %2926 = vst.msk [vmem:[%s5696_s27 + $0x50] sm:$0xff] %vm529_vm2, %v2841_v0 }
 0x5be   : > { %v2843_v5 = vpop.permute.xlu0 %2842 }
 0x5bf   : > { %2927 = vst.msk [vmem:[%s5696_s27 + $0x58] sm:$0xff] %vm529_vm2, %v2843_v5 }
 0x5c0   : > { %v2837_v48 = vpop.permute.xlu1 %2836 }
 0x5c1   : > { %2924 = vst.msk [vmem:[%s5696_s27 + $0x40] sm:$0xff] %vm529_vm2, %v2837_v48 }
 0x5c2   : > { %v2839_v10 = vpop.permute.xlu0 %2838 }
 0x5c3   : > { %2925 = vst.msk [vmem:[%s5696_s27 + $0x48] sm:$0xff] %vm529_vm2, %v2839_v10 }
 0x5c4   : > { %v2849_v14 = vpop.permute.xlu1 %2848 }
 0x5c5   : > { %2930 = vst.msk [vmem:[%s5696_s27 + $0x70] sm:$0xff] %vm529_vm2, %v2849_v14 }
 0x5c6   : > { %v2851_v56 = vpop.permute.xlu0 %2850 }
 0x5c7   : > { %2931 = vst.msk [vmem:[%s5696_s27 + $0x78] sm:$0xff] %vm529_vm2, %v2851_v56 }
 0x5c8   : > { %v2845_v21 = vpop.permute.xlu1 %2844 }
 0x5c9   : > { %2928 = vst.msk [vmem:[%s5696_s27 + $0x60] sm:$0xff] %vm529_vm2, %v2845_v21 }
 0x5ca   : > { %v2847_v50 = vpop.permute.xlu0 %2846 }
 0x5cb   : > { %2929 = vst.msk [vmem:[%s5696_s27 + $0x68] sm:$0xff] %vm529_vm2, %v2847_v50 }
 0x5cc   : > { %v2857_v32 = vpop.permute.xlu1 %2856 }
 0x5cd   : > { %2934 = vst.msk [vmem:[%s5696_s27 + $0x90] sm:$0xff] %vm529_vm2, %v2857_v32 }
 0x5ce   : > { %v2859_v8 = vpop.permute.xlu0 %2858 }
 0x5cf   : > { %2935 = vst.msk [vmem:[%s5696_s27 + $0x98] sm:$0xff] %vm529_vm2, %v2859_v8 }
 0x5d0   : > { %v2853_v24 = vpop.permute.xlu1 %2852 }
 0x5d1   : > { %2932 = vst.msk [vmem:[%s5696_s27 + $0x80] sm:$0xff] %vm529_vm2, %v2853_v24 }
 0x5d2   : > { %v2855_v2 = vpop.permute.xlu0 %2854 }
 0x5d3   : > { %2933 = vst.msk [vmem:[%s5696_s27 + $0x88] sm:$0xff] %vm529_vm2, %v2855_v2 }
 0x5d4   : > { %v2865_v36 = vpop.permute.xlu1 %2864 }
 0x5d5   : > { %2938 = vst.msk [vmem:[%s5696_s27 + $0xb0] sm:$0xff] %vm529_vm2, %v2865_v36 }
 0x5d6   : > { %v2867_v30 = vpop.permute.xlu0 %2866 }
 0x5d7   : > { %2939 = vst.msk [vmem:[%s5696_s27 + $0xb8] sm:$0xff] %vm529_vm2, %v2867_v30 }
 0x5d8   : > { %v2861_v19 = vpop.permute.xlu1 %2860 }
 0x5d9   : > { %2936 = vst.msk [vmem:[%s5696_s27 + $0xa0] sm:$0xff] %vm529_vm2, %v2861_v19 }
 0x5da   : > { %v2863_v20 = vpop.permute.xlu0 %2862 }
 0x5db   : > { %2937 = vst.msk [vmem:[%s5696_s27 + $0xa8] sm:$0xff] %vm529_vm2, %v2863_v20 }
 0x5dc   : > { %v2873_v39 = vpop.permute.xlu1 %2872 }
 0x5dd   : > { %2942 = vst.msk [vmem:[%s5696_s27 + $0xd0] sm:$0xff] %vm529_vm2, %v2873_v39 }
 0x5de   : > { %v2875_v58 = vpop.permute.xlu0 %2874 }
 0x5df   : > { %2943 = vst.msk [vmem:[%s5696_s27 + $0xd8] sm:$0xff] %vm529_vm2, %v2875_v58 }
 0x5e0   : > { %v2869_v41 = vpop.permute.xlu1 %2868 }
 0x5e1   : > { %2940 = vst.msk [vmem:[%s5696_s27 + $0xc0] sm:$0xff] %vm529_vm2, %v2869_v41 }
 0x5e2   : > { %v2871_v9 = vpop.permute.xlu0 %2870 }
 0x5e3   : > { %2941 = vst.msk [vmem:[%s5696_s27 + $0xc8] sm:$0xff] %vm529_vm2, %v2871_v9 }
 0x5e8   : > { %v2877_v57 = vpop.permute.xlu1 %2876 }
 0x5e9   : > { %2944 = vst.msk [vmem:[%s5696_s27 + $0xe0] sm:$0xff] %vm529_vm2, %v2877_v57 }
 0x5ea   : > { %v2879_v37 = vpop.permute.xlu0 %2878 }
 0x5eb   : > { %2945 = vst.msk [vmem:[%s5696_s27 + $0xe8] sm:$0xff] %vm529_vm2, %v2879_v37 }
 0x5ec   : > { %v2881_v53 = vpop.permute.xlu1 %2880 }
 0x5ed   : > { %2946 = vst.msk [vmem:[%s5696_s27 + $0xf0] sm:$0xff] %vm529_vm2, %v2881_v53 }
 0x5ee   : > { %v2883_v61 = vpop.permute.xlu0 %2882 }
 0x5ef   : > { %2947 = vst.msk [vmem:[%s5696_s27 + $0xf8] sm:$0xff] %vm529_vm2, %v2883_v61 }
 0x5f0   : > { %3682 = shalt.err (!%p3679_p3)
}
 0x5f1   : > { %s3683_s14 = scalar_lea.hbm %s5763_s21, 4096  ;;  %s3687_s28 = scalar_lea.hbm %s5822_s9, 8192 }
 0x5f2   : > { %p3684_p4 = scmp.ne.s32.totalorder %s5763_s21, %s3683_s14  ;;  %p3688_p9 = scmp.lt.s32.totalorder %s5763_s21, %s5822_s9 }
 0x5f3   : > { %p3689_p10 = scmp.lt.s32.totalorder %s3687_s28, %s3683_s14 }
 0x5f4   : > { %p3685_p7 = pnand %p3684_p4, %p3826_p5 }
 0x5f5   : > { %p3690_p11 = por %p3689_p10, %p3688_p9 }
 0x5f6   : > { %p3686_p8 = pneg %p3685_p7 }
 0x5f8   : > { %p3691_p12 = pnand %p3690_p11, %p3686_p8 }
 0x5fa   : > { %3694 = shalt.err (!%p3691_p12)
}
 0x5fb   : > { %s3736_s22 = smov 128   ;;  %s3737_s24 = smov 8  }
 0x5fc   : > { %3346 = dma.vmem_to_hbm [thread:$0]  (%p3826_p5), %s5765_s29, 4096, %s5763_s21, %s5773_s13, %s3736_s22, %s3736_s22, %s3737_s24  }
 0x5fd PF: > { %p3352_p13 = scmp.ge.s32.totalorder %s3729_s12, 2  ;;  %s2977_s25 = sand.u32 1, %s3717_s30  }
 0x5fe   : > { %s2978_s23 = scalar_lea.sflag [#allocation5], %s2977_s25 }
 0x5ff   : > { %p3349_p0 = pnand %p3352_p13, %p3830_p6 }
 0x601   : > { %p3350_p1 = pneg %p3349_p0 }
 0x603   : > { %3712 = dma.done.wait (%p3350_p1), %s2978_s23, 4096  }
 0x604   : > { %3714 = vsyncadd (%p3350_p1), %s2978_s23, 4294963200  ;;  %p19_p2 = scmp.ge.s32.totalorder %s3813_s15, 4   ;;  %s6025_s30 = smov %s3721_s10 }
 0x605   : > { %s6026_s10 = smov %s3725_s11  ;;  %s6027_s11 = smov %s3824_s18 }
 0x606   : > { %s6028_s12 = smov %s3813_s15  ;;  %21 = sbr.rel (!%p19_p2) target bundleno = 3 (0x3), region = 95 }
 0x60b   :  { %2983 = vsyncpa [#allocation5], 1 }
 0x60c   :  { %2985 = vsyncpa [#allocation5 + $0x1], 1 }

</bundles_post_ra>
